<compile_context>
chip_gen: v5e
topology: v5e:2x2
jax: 0.10.0
libtpu: 0.0.40
codegen_flags: <defaults>
</compile_context>

<pallas_src>
import math

import jax
import jax.numpy as jnp
from jax.experimental import pallas as pl
from jax.experimental.pallas import tpu as pltpu

# ---------------- configuration (small, deterministic) ----------------
B = 2              # batch
S = 8              # sequence length
H = 32             # hidden size
N_HEADS = 4
D_HEAD = H // N_HEADS
FFN = 4 * H        # 128 -> lane-dense FFN up-projection
N_LAYERS = 2
VOCAB = 128
N_CLASSES = 3
N_CLASSES_PAD = 128    # lane-dense classifier output; sliced to N_CLASSES outside
BS = B * S
LN_EPS = 1e-12     # BERT LayerNorm eps
BN_EPS = 1e-5      # nn.BatchNorm1d default eps

# ---- row layout of the (W32_ROWS, H) packed "->H" weight matrix ----
W32_WORD = 0                        # word embedding                 (VOCAB rows)
W32_PT = VOCAB                      # pre-tiled pos+type embedding   (BS rows)
W32_WO = W32_PT + BS                # per-(layer,head) attn out-proj (L*H rows)
W32_W2 = W32_WO + N_LAYERS * H      # FFN down-proj                  (L*FFN rows)
W32_WP = W32_W2 + N_LAYERS * FFN    # pooler weight                  (H rows)
W32_ROWS = W32_WP + H               # 496 (all row offsets are multiples of 8)

# ---- row layout of the (V32_ROWS, H) packed small-vector matrix ----
V_EMB_LN_G, V_EMB_LN_B = 0, 1
V_LAYER0 = 2                        # per layer: [bo, ln1_g, ln1_b, b2, ln2_g, ln2_b]
V_PER_LAYER = 6
V_BP = V_LAYER0 + V_PER_LAYER * N_LAYERS
V_BN_G, V_BN_B, V_BN_MU, V_BN_VAR = V_BP + 1, V_BP + 2, V_BP + 3, V_BP + 4
V32_ROWS = 24                       # 19 used, padded to a multiple of 8

# ---- row layout of the (V128_ROWS, 128) packed wide-vector matrix ----
# rows 0..N_LAYERS-1: FFN up-proj bias b1[l]; row N_LAYERS: classifier bias (padded)
V128_ROWS = 8

# advisory cost estimate for XLA scheduling around the call
_FLOPS = 2 * (
    BS * VOCAB * H
    + N_LAYERS * (3 * N_HEADS * BS * H * D_HEAD
                  + 2 * N_HEADS * BS * BS * D_HEAD
                  + N_HEADS * BS * D_HEAD * H
                  + 2 * BS * H * FFN)
    + B * BS * H + B * H * H + B * H * N_CLASSES_PAD
)
_TRANSCENDENTALS = (N_LAYERS * (N_HEADS * BS * BS + BS * FFN)
                    + B * H + B * N_CLASSES_PAD)


def _full_spec(shape):
    """BlockSpec covering the whole array (grid index ignored)."""
    return pl.BlockSpec(shape, lambda i, _n=len(shape): (0,) * _n)


def _ln(x, g, b):
    mu = jnp.mean(x, axis=-1, keepdims=True)
    var = jnp.mean(jnp.square(x - mu), axis=-1, keepdims=True)
    return (x - mu) * jax.lax.rsqrt(var + LN_EPS) * g + b


# ---------------- the single fused forward kernel ----------------
def fused_forward_kernel(ids_ref, mask_ref, statics_ref,
                         qkv_w_ref, qkv_b_ref, w32_ref, w128_ref,
                         vecs32_ref, vecs128_ref, o_ref):
    f32 = jnp.float32

    def vec32(r):                      # one (1, H) row of the small-vector pack
        return vecs32_ref[r:r + 1, :]

    # ---- embeddings: one-hot gather (MXU) + pre-tiled pos/type + LayerNorm ----
    ids = ids_ref[...]                                               # (BS, 1) int32
    one_hot = (jax.lax.broadcasted_iota(jnp.int32, (BS, VOCAB), 1) == ids).astype(f32)
    emb = jnp.dot(one_hot, w32_ref[W32_WORD:W32_WORD + VOCAB, :],
                  preferred_element_type=f32)                        # (BS, H)
    emb = emb + w32_ref[W32_PT:W32_PT + BS, :]
    h = _ln(emb, vec32(V_EMB_LN_G), vec32(V_EMB_LN_B))

    # ---- additive attention bias: precomputed block-diagonal mask + padding mask ----
    # (a fully padded sequence degrades to a uniform distribution over its own
    #  padded keys -- same behavior as HF BERT)
    pad_bias = (1.0 - mask_ref[...]) * -10000.0                      # (1, BS)
    attn_bias = statics_ref[0:BS, :] + pad_bias                      # (BS, BS)

    inv_sqrt_d = 1.0 / math.sqrt(D_HEAD)

    # ---- encoder layers (unrolled at trace time) ----
    for l in range(N_LAYERS):
        vb = V_LAYER0 + V_PER_LAYER * l
        # Heads live on a leading axis -> no lane slicing, no concat; the output
        # projection is accumulated head by head (ctx_h @ wo_h == concat @ wo).
        attn_out = vec32(vb + 0)                                     # bo, (1, H)
        for hd in range(N_HEADS):
            j = (l * N_HEADS + hd) * 3
            qh = jnp.dot(h, qkv_w_ref[j + 0], preferred_element_type=f32) + qkv_b_ref[j + 0:j + 1, :]
            kh = jnp.dot(h, qkv_w_ref[j + 1], preferred_element_type=f32) + qkv_b_ref[j + 1:j + 2, :]
            vh = jnp.dot(h, qkv_w_ref[j + 2], preferred_element_type=f32) + qkv_b_ref[j + 2:j + 3, :]
            # contract the last axis of both q and k directly (no kh.T materialized)
            s = jax.lax.dot_general(qh, kh, (((1,), (1,)), ((), ())),
                                    preferred_element_type=f32)
            s = s * inv_sqrt_d + attn_bias
            s = s - jnp.max(s, axis=-1, keepdims=True)
            p = jnp.exp(s)
            p = p / jnp.sum(p, axis=-1, keepdims=True)               # exact division
            ctx_h = jnp.dot(p, vh, preferred_element_type=f32)       # (BS, D_HEAD)
            wo_row = W32_WO + (l * N_HEADS + hd) * D_HEAD
            attn_out = attn_out + jnp.dot(ctx_h, w32_ref[wo_row:wo_row + D_HEAD, :],
                                          preferred_element_type=f32)
        h = _ln(attn_out + h, vec32(vb + 1), vec32(vb + 2))

        # FFN
        ffn = jnp.dot(h, w128_ref[l], preferred_element_type=f32) + vecs128_ref[l:l + 1, :]
        # TODO(synk): PyTorch BERT uses exact erf-GELU; tanh approximation used here.
        ffn = jax.nn.gelu(ffn, approximate=True)
        w2_row = W32_W2 + l * FFN
        ffn = jnp.dot(ffn, w32_ref[w2_row:w2_row + FFN, :],
                      preferred_element_type=f32) + vec32(vb + 3)
        h = _ln(ffn + h, vec32(vb + 4), vec32(vb + 5))

    # ---- BERT pooler: tanh(Linear(CLS token)), CLS rows via precomputed selector ----
    rowsel = statics_ref[BS:BS + B, :]                               # (B, BS)
    cls = jnp.dot(rowsel, h, preferred_element_type=f32)             # (B, H)
    pooled = jnp.tanh(jnp.dot(cls, w32_ref[W32_WP:W32_WP + H, :],
                              preferred_element_type=f32) + vec32(V_BP))

    # ---- classifier head: BN(eval) -> Dropout(id) -> Linear -> ReLU -> Dropout(id) -> Sigmoid
    # TODO(synk): dropout is identity (inference); BatchNorm1d uses running stats (eval mode).
    xn = (pooled - vec32(V_BN_MU)) * jax.lax.rsqrt(vec32(V_BN_VAR) + BN_EPS)
    xn = xn * vec32(V_BN_G) + vec32(V_BN_B)
    logits = (jnp.dot(xn, w128_ref[N_LAYERS], preferred_element_type=f32)
              + vecs128_ref[N_LAYERS:N_LAYERS + 1, :])
    o_ref[...] = jax.nn.sigmoid(jnp.maximum(logits, 0.0))            # (B, 128) lane-dense


# ---------------- wrapper ----------------
@jax.jit
def sentiment_classifier_forward(params, input_ids, attention_mask):
    ids = input_ids.reshape(BS, 1).astype(jnp.int32)
    mask = attention_mask.reshape(1, BS).astype(jnp.float32)

    args = (ids, mask, params["statics"], params["qkv_w"], params["qkv_b"],
            params["w32"], params["w128"], params["vecs32"], params["vecs128"])

    bytes_accessed = sum(math.prod(a.shape) * a.dtype.itemsize for a in args)
    bytes_accessed += B * N_CLASSES_PAD * 4

    out_pad = pl.pallas_call(
        fused_forward_kernel,
        grid=(1,),
        in_specs=[_full_spec(a.shape) for a in args],
        out_specs=_full_spec((B, N_CLASSES_PAD)),
        out_shape=jax.ShapeDtypeStruct((B, N_CLASSES_PAD), jnp.float32),
        compiler_params=pltpu.CompilerParams(dimension_semantics=("arbitrary",)),
        cost_estimate=pl.CostEstimate(flops=_FLOPS,
                                      transcendentals=_TRANSCENDENTALS,
                                      bytes_accessed=int(bytes_accessed)),
    )(*args)

    # lane-dense (B, 128) kernel output; real class columns are the first N_CLASSES
    return out_pad[:, :N_CLASSES]


# ---------------- parameter init (deterministic, synthetic) ----------------
def init_params(key):
    keys = iter(jax.random.split(key, 12))
    f32 = jnp.float32

    def w(shape, std=0.02):
        return (std * jax.random.normal(next(keys), shape)).astype(f32)

    # ---- natural-form mini-BERT weights ----
    word_emb = w((VOCAB, H))
    pos_emb = w((S, H))
    type_emb = w((2, H))
    emb_ln_g = jnp.ones((H,), f32)
    emb_ln_b = jnp.zeros((H,), f32)

    wqkv = w((N_LAYERS, H, 3 * H))          # columns: [q | k | v], heads contiguous
    bqkv = jnp.zeros((N_LAYERS, 3 * H), f32)
    wo = w((N_LAYERS, H, H))
    bo = jnp.zeros((N_LAYERS, H), f32)
    ln1_g = jnp.ones((N_LAYERS, H), f32)
    ln1_b = jnp.zeros((N_LAYERS, H), f32)
    w1 = w((N_LAYERS, H, FFN))
    b1 = jnp.zeros((N_LAYERS, FFN), f32)
    w2 = w((N_LAYERS, FFN, H))
    b2 = jnp.zeros((N_LAYERS, H), f32)
    ln2_g = jnp.ones((N_LAYERS, H), f32)
    ln2_b = jnp.zeros((N_LAYERS, H), f32)

    wp = w((H, H))                           # pooler
    bp = jnp.zeros((H,), f32)

    bn_g = jnp.ones((H,), f32)               # BatchNorm1d (eval mode) defaults
    bn_b = jnp.zeros((H,), f32)
    bn_mean = jnp.zeros((H,), f32)
    bn_var = jnp.ones((H,), f32)

    out_w = w((H, N_CLASSES))
    out_b = jnp.zeros((N_CLASSES,), f32)

    # ---- pack into the kernel's consolidated layout ----
    # per-head q/k/v projections, head on the LEADING axis: row (l*NH+hd)*3 + {q,k,v}
    qkv_w = (wqkv.reshape(N_LAYERS, H, 3, N_HEADS, D_HEAD)
                 .transpose(0, 3, 2, 1, 4)
                 .reshape(N_LAYERS * N_HEADS * 3, H, D_HEAD))
    qkv_b = (bqkv.reshape(N_LAYERS, 3, N_HEADS, D_HEAD)
                 .transpose(0, 2, 1, 3)
                 .reshape(N_LAYERS * N_HEADS * 3, D_HEAD))

    # positional + token-type-0 embedding, pre-tiled for all BS token slots
    pt_tiled = jnp.tile(pos_emb + type_emb[0][None, :], (B, 1))      # (BS, H)

    # all weights whose output dimension is H, stacked on the row axis
    w32 = jnp.concatenate([
        word_emb,                               # rows W32_WORD:
        pt_tiled,                               # rows W32_PT:
        wo.reshape(N_LAYERS * H, H),            # rows W32_WO:  per (layer,head) blocks of D_HEAD rows
        w2.reshape(N_LAYERS * FFN, H),          # rows W32_W2:
        wp,                                     # rows W32_WP:
    ], axis=0)
    assert w32.shape == (W32_ROWS, H)

    # lane-dense (128-wide output) weights: FFN up-proj per layer + padded classifier
    out_w_pad = jnp.zeros((H, N_CLASSES_PAD), f32).at[:, :N_CLASSES].set(out_w)
    w128 = jnp.concatenate([w1, out_w_pad[None]], axis=0)            # (L+1, H, 128)

    # small (H,) vectors -> one (V32_ROWS, H) pack
    rows32 = [emb_ln_g, emb_ln_b]
    for l in range(N_LAYERS):
        rows32 += [bo[l], ln1_g[l], ln1_b[l], b2[l], ln2_g[l], ln2_b[l]]
    rows32 += [bp, bn_g, bn_b, bn_mean, bn_var]
    vecs32 = jnp.concatenate(
        [jnp.stack(rows32, axis=0),
         jnp.zeros((V32_ROWS - len(rows32), H), f32)], axis=0)

    # 128-wide vectors -> one (V128_ROWS, 128) pack
    out_b_pad = jnp.zeros((N_CLASSES_PAD,), f32).at[:N_CLASSES].set(out_b)
    rows128 = [b1[l] for l in range(N_LAYERS)] + [out_b_pad]
    vecs128 = jnp.concatenate(
        [jnp.stack(rows128, axis=0),
         jnp.zeros((V128_ROWS - len(rows128), N_CLASSES_PAD), f32)], axis=0)

    # static tensors baked at init: block-diagonal cross-batch bias + CLS row selector
    row_b = jnp.arange(BS, dtype=jnp.int32)[:, None] // S
    col_b = jnp.arange(BS, dtype=jnp.int32)[None, :] // S
    blockdiag = jnp.where(row_b == col_b, 0.0, -10000.0).astype(f32)          # (BS, BS)
    rowsel = (jnp.arange(BS)[None, :] == (S * jnp.arange(B))[:, None]).astype(f32)  # (B, BS)
    statics = jnp.concatenate([blockdiag, rowsel], axis=0)                    # (BS+B, BS)

    return {
        "qkv_w": qkv_w, "qkv_b": qkv_b, "w32": w32, "w128": w128,
        "vecs32": vecs32, "vecs128": vecs128, "statics": statics,
    }


if __name__ == "__main__":
    key = jax.random.PRNGKey(0)
    k_param, k_ids = jax.random.split(key)
    params = init_params(k_param)

    input_ids = jax.random.randint(k_ids, (B, S), 0, VOCAB, dtype=jnp.int32)
    attention_mask = jnp.ones((B, S), dtype=jnp.int32)

    out = sentiment_classifier_forward(params, input_ids, attention_mask)
    out = jax.block_until_ready(out)

    assert out.shape == (B, N_CLASSES)
    assert bool(jnp.all((out >= 0.0) & (out <= 1.0)))
    print("KERNEL_OK")
</pallas_src>

<mosaic_0001>
module attributes {stable_mosaic.version = 11 : i64} {
  func.func @fused_forward_kernel(%arg0: i32, %arg1: memref<16x1xi32, #tpu.memory_space<vmem>>, %arg2: memref<1x16xf32, #tpu.memory_space<vmem>>, %arg3: memref<18x16xf32, #tpu.memory_space<vmem>>, %arg4: memref<24x32x8xf32, #tpu.memory_space<vmem>>, %arg5: memref<24x8xf32, #tpu.memory_space<vmem>>, %arg6: memref<496x32xf32, #tpu.memory_space<vmem>>, %arg7: memref<3x32x128xf32, #tpu.memory_space<vmem>>, %arg8: memref<24x32xf32, #tpu.memory_space<vmem>>, %arg9: memref<8x128xf32, #tpu.memory_space<vmem>>, %arg10: memref<2x128xf32, #tpu.memory_space<vmem>>) attributes {dimension_semantics = [#tpu.dimension_semantics<arbitrary>], iteration_bounds = array<i64: 1>, scalar_prefetch = 0 : i64, scratch_operands = 0 : i64, tpu.core_type = #tpu.core_type<tc>, window_params = [{pipeline_mode = #tpu.pipeline_mode<synchronous>, transform_indices = @transform_0, window_bounds = array<i64: 16, 1>}, {pipeline_mode = #tpu.pipeline_mode<synchronous>, transform_indices = @transform_1, window_bounds = array<i64: 1, 16>}, {pipeline_mode = #tpu.pipeline_mode<synchronous>, transform_indices = @transform_2, window_bounds = array<i64: 18, 16>}, {pipeline_mode = #tpu.pipeline_mode<synchronous>, transform_indices = @transform_3, window_bounds = array<i64: 24, 32, 8>}, {pipeline_mode = #tpu.pipeline_mode<synchronous>, transform_indices = @transform_4, window_bounds = array<i64: 24, 8>}, {pipeline_mode = #tpu.pipeline_mode<synchronous>, transform_indices = @transform_5, window_bounds = array<i64: 496, 32>}, {pipeline_mode = #tpu.pipeline_mode<synchronous>, transform_indices = @transform_6, window_bounds = array<i64: 3, 32, 128>}, {pipeline_mode = #tpu.pipeline_mode<synchronous>, transform_indices = @transform_7, window_bounds = array<i64: 24, 32>}, {pipeline_mode = #tpu.pipeline_mode<synchronous>, transform_indices = @transform_8, window_bounds = array<i64: 8, 128>}, {pipeline_mode = #tpu.pipeline_mode<synchronous>, transform_indices = @transform_9, window_bounds = array<i64: 2, 128>}]} {
    %c0 = arith.constant 0 : index
    %c0_0 = arith.constant 0 : index
    %0 = vector.load %arg1[%c0, %c0_0] : memref<16x1xi32, #tpu.memory_space<vmem>>, vector<16x1xi32>
    %1 = tpu.iota {dimensions = array<i32: 1>} : vector<16x128xi32>
    %2 = vector.broadcast %0 : vector<16x1xi32> to vector<16x128xi32>
    %3 = arith.cmpi eq, %1, %2 : vector<16x128xi32>
    %4 = arith.extui %3 : vector<16x128xi1> to vector<16x128xi32>
    %5 = arith.sitofp %4 : vector<16x128xi32> to vector<16x128xf32>
    %c0_1 = arith.constant 0 : index
    %c0_2 = arith.constant 0 : index
    %6 = vector.load %arg6[%c0_1, %c0_2] : memref<496x32xf32, #tpu.memory_space<vmem>>, vector<128x32xf32>
    %cst = arith.constant dense<0.000000e+00> : vector<16x32xf32>
    %7 = tpu.matmul %5, %6, %cst {dimension_numbers = #tpu.dot_dimension_numbers<[1], [0], [0], [1], [0, 0, 1, 1], [], []>} : vector<16x128xf32>, vector<128x32xf32>, vector<16x32xf32> -> vector<16x32xf32>
    %c128 = arith.constant 128 : index
    %c0_3 = arith.constant 0 : index
    %8 = vector.load %arg6[%c128, %c0_3] : memref<496x32xf32, #tpu.memory_space<vmem>>, vector<16x32xf32>
    %9 = arith.addf %7, %8 : vector<16x32xf32>
    %c0_4 = arith.constant 0 : index
    %c0_5 = arith.constant 0 : index
    %10 = vector.load %arg8[%c0_4, %c0_5] : memref<24x32xf32, #tpu.memory_space<vmem>>, vector<1x32xf32>
    %c1 = arith.constant 1 : index
    %c0_6 = arith.constant 0 : index
    %11 = vector.load %arg8[%c1, %c0_6] : memref<24x32xf32, #tpu.memory_space<vmem>>, vector<1x32xf32>
    %cst_7 = arith.constant dense<0.000000e+00> : vector<16xf32>
    %12 = vector.multi_reduction <add>, %9, %cst_7 [1] : vector<16x32xf32> to vector<16xf32>
    %13 = vector.shape_cast %12 : vector<16xf32> to vector<16x1xf32>
    %cst_8 = arith.constant 3.200000e+01 : f32
    %14 = vector.broadcast %cst_8 : f32 to vector<16x1xf32>
    %15 = arith.divf %13, %14 : vector<16x1xf32>
    %16 = vector.broadcast %15 : vector<16x1xf32> to vector<16x32xf32>
    %17 = arith.subf %9, %16 : vector<16x32xf32>
    %18 = arith.mulf %17, %17 : vector<16x32xf32>
    %cst_9 = arith.constant dense<0.000000e+00> : vector<16xf32>
    %19 = vector.multi_reduction <add>, %18, %cst_9 [1] : vector<16x32xf32> to vector<16xf32>
    %20 = vector.shape_cast %19 : vector<16xf32> to vector<16x1xf32>
    %cst_10 = arith.constant 3.200000e+01 : f32
    %21 = vector.broadcast %cst_10 : f32 to vector<16x1xf32>
    %22 = arith.divf %20, %21 : vector<16x1xf32>
    %23 = vector.broadcast %15 : vector<16x1xf32> to vector<16x32xf32>
    %24 = arith.subf %9, %23 : vector<16x32xf32>
    %cst_11 = arith.constant 9.99999996E-13 : f32
    %25 = vector.broadcast %cst_11 : f32 to vector<16x1xf32>
    %26 = arith.addf %22, %25 : vector<16x1xf32>
    %27 = math.rsqrt %26 : vector<16x1xf32>
    %28 = vector.broadcast %27 : vector<16x1xf32> to vector<16x32xf32>
    %29 = arith.mulf %24, %28 : vector<16x32xf32>
    %30 = vector.broadcast %10 : vector<1x32xf32> to vector<16x32xf32>
    %31 = arith.mulf %29, %30 : vector<16x32xf32>
    %32 = vector.broadcast %11 : vector<1x32xf32> to vector<16x32xf32>
    %33 = arith.addf %31, %32 : vector<16x32xf32>
    %c0_12 = arith.constant 0 : index
    %c0_13 = arith.constant 0 : index
    %34 = vector.load %arg2[%c0_12, %c0_13] : memref<1x16xf32, #tpu.memory_space<vmem>>, vector<1x16xf32>
    %cst_14 = arith.constant 1.000000e+00 : f32
    %35 = vector.broadcast %cst_14 : f32 to vector<1x16xf32>
    %36 = arith.subf %35, %34 : vector<1x16xf32>
    %cst_15 = arith.constant -1.000000e+04 : f32
    %37 = vector.broadcast %cst_15 : f32 to vector<1x16xf32>
    %38 = arith.mulf %36, %37 : vector<1x16xf32>
    %c0_16 = arith.constant 0 : index
    %c0_17 = arith.constant 0 : index
    %39 = vector.load %arg3[%c0_16, %c0_17] : memref<18x16xf32, #tpu.memory_space<vmem>>, vector<16x16xf32>
    %40 = vector.broadcast %38 : vector<1x16xf32> to vector<16x16xf32>
    %41 = arith.addf %39, %40 : vector<16x16xf32>
    %c2 = arith.constant 2 : index
    %c0_18 = arith.constant 0 : index
    %42 = vector.load %arg8[%c2, %c0_18] : memref<24x32xf32, #tpu.memory_space<vmem>>, vector<1x32xf32>
    %c0_19 = arith.constant 0 : index
    %c0_20 = arith.constant 0 : index
    %c0_21 = arith.constant 0 : index
    %43 = vector.load %arg4[%c0_19, %c0_20, %c0_21] : memref<24x32x8xf32, #tpu.memory_space<vmem>>, vector<1x32x8xf32>
    %44 = vector.shape_cast %43 : vector<1x32x8xf32> to vector<32x8xf32>
    %cst_22 = arith.constant dense<0.000000e+00> : vector<16x8xf32>
    %45 = tpu.matmul %33, %44, %cst_22 {dimension_numbers = #tpu.dot_dimension_numbers<[1], [0], [0], [1], [0, 0, 1, 1], [], []>} : vector<16x32xf32>, vector<32x8xf32>, vector<16x8xf32> -> vector<16x8xf32>
    %c0_23 = arith.constant 0 : index
    %c0_24 = arith.constant 0 : index
    %46 = vector.load %arg5[%c0_23, %c0_24] : memref<24x8xf32, #tpu.memory_space<vmem>>, vector<1x8xf32>
    %47 = vector.broadcast %46 : vector<1x8xf32> to vector<16x8xf32>
    %48 = arith.addf %45, %47 : vector<16x8xf32>
    %c1_25 = arith.constant 1 : index
    %c0_26 = arith.constant 0 : index
    %c0_27 = arith.constant 0 : index
    %49 = vector.load %arg4[%c1_25, %c0_26, %c0_27] : memref<24x32x8xf32, #tpu.memory_space<vmem>>, vector<1x32x8xf32>
    %50 = vector.shape_cast %49 : vector<1x32x8xf32> to vector<32x8xf32>
    %cst_28 = arith.constant dense<0.000000e+00> : vector<16x8xf32>
    %51 = tpu.matmul %33, %50, %cst_28 {dimension_numbers = #tpu.dot_dimension_numbers<[1], [0], [0], [1], [0, 0, 1, 1], [], []>} : vector<16x32xf32>, vector<32x8xf32>, vector<16x8xf32> -> vector<16x8xf32>
    %c1_29 = arith.constant 1 : index
    %c0_30 = arith.constant 0 : index
    %52 = vector.load %arg5[%c1_29, %c0_30] : memref<24x8xf32, #tpu.memory_space<vmem>>, vector<1x8xf32>
    %53 = vector.broadcast %52 : vector<1x8xf32> to vector<16x8xf32>
    %54 = arith.addf %51, %53 : vector<16x8xf32>
    %c2_31 = arith.constant 2 : index
    %c0_32 = arith.constant 0 : index
    %c0_33 = arith.constant 0 : index
    %55 = vector.load %arg4[%c2_31, %c0_32, %c0_33] : memref<24x32x8xf32, #tpu.memory_space<vmem>>, vector<1x32x8xf32>
    %56 = vector.shape_cast %55 : vector<1x32x8xf32> to vector<32x8xf32>
    %cst_34 = arith.constant dense<0.000000e+00> : vector<16x8xf32>
    %57 = tpu.matmul %33, %56, %cst_34 {dimension_numbers = #tpu.dot_dimension_numbers<[1], [0], [0], [1], [0, 0, 1, 1], [], []>} : vector<16x32xf32>, vector<32x8xf32>, vector<16x8xf32> -> vector<16x8xf32>
    %c2_35 = arith.constant 2 : index
    %c0_36 = arith.constant 0 : index
    %58 = vector.load %arg5[%c2_35, %c0_36] : memref<24x8xf32, #tpu.memory_space<vmem>>, vector<1x8xf32>
    %59 = vector.broadcast %58 : vector<1x8xf32> to vector<16x8xf32>
    %60 = arith.addf %57, %59 : vector<16x8xf32>
    %cst_37 = arith.constant dense<0.000000e+00> : vector<16x16xf32>
    %61 = tpu.matmul %48, %54, %cst_37 {dimension_numbers = #tpu.dot_dimension_numbers<[1], [1], [0], [0], [0, 0, 1, 0], [], []>} : vector<16x8xf32>, vector<16x8xf32>, vector<16x16xf32> -> vector<16x16xf32>
    %cst_38 = arith.constant 0.353553385 : f32
    %62 = vector.broadcast %cst_38 : f32 to vector<16x16xf32>
    %63 = arith.mulf %61, %62 : vector<16x16xf32>
    %64 = arith.addf %63, %41 : vector<16x16xf32>
    %cst_39 = arith.constant dense<0xFF800000> : vector<16xf32>
    %65 = vector.multi_reduction <maximumf>, %64, %cst_39 [1] : vector<16x16xf32> to vector<16xf32>
    %66 = vector.shape_cast %65 : vector<16xf32> to vector<16x1xf32>
    %67 = vector.broadcast %66 : vector<16x1xf32> to vector<16x16xf32>
    %68 = arith.subf %64, %67 : vector<16x16xf32>
    %69 = math.exp %68 : vector<16x16xf32>
    %cst_40 = arith.constant dense<0.000000e+00> : vector<16xf32>
    %70 = vector.multi_reduction <add>, %69, %cst_40 [1] : vector<16x16xf32> to vector<16xf32>
    %71 = vector.shape_cast %70 : vector<16xf32> to vector<16x1xf32>
    %72 = vector.broadcast %71 : vector<16x1xf32> to vector<16x16xf32>
    %73 = arith.divf %69, %72 : vector<16x16xf32>
    %cst_41 = arith.constant dense<0.000000e+00> : vector<16x8xf32>
    %74 = tpu.matmul %73, %60, %cst_41 {dimension_numbers = #tpu.dot_dimension_numbers<[1], [0], [0], [1], [0, 0, 1, 1], [], []>} : vector<16x16xf32>, vector<16x8xf32>, vector<16x8xf32> -> vector<16x8xf32>
    %c144 = arith.constant 144 : index
    %c0_42 = arith.constant 0 : index
    %75 = vector.load %arg6[%c144, %c0_42] : memref<496x32xf32, #tpu.memory_space<vmem>>, vector<8x32xf32>
    %cst_43 = arith.constant dense<0.000000e+00> : vector<16x32xf32>
    %76 = tpu.matmul %74, %75, %cst_43 {dimension_numbers = #tpu.dot_dimension_numbers<[1], [0], [0], [1], [0, 0, 1, 1], [], []>} : vector<16x8xf32>, vector<8x32xf32>, vector<16x32xf32> -> vector<16x32xf32>
    %77 = vector.broadcast %42 : vector<1x32xf32> to vector<16x32xf32>
    %78 = arith.addf %77, %76 : vector<16x32xf32>
    %c3 = arith.constant 3 : index
    %c0_44 = arith.constant 0 : index
    %c0_45 = arith.constant 0 : index
    %79 = vector.load %arg4[%c3, %c0_44, %c0_45] : memref<24x32x8xf32, #tpu.memory_space<vmem>>, vector<1x32x8xf32>
    %80 = vector.shape_cast %79 : vector<1x32x8xf32> to vector<32x8xf32>
    %cst_46 = arith.constant dense<0.000000e+00> : vector<16x8xf32>
    %81 = tpu.matmul %33, %80, %cst_46 {dimension_numbers = #tpu.dot_dimension_numbers<[1], [0], [0], [1], [0, 0, 1, 1], [], []>} : vector<16x32xf32>, vector<32x8xf32>, vector<16x8xf32> -> vector<16x8xf32>
    %c3_47 = arith.constant 3 : index
    %c0_48 = arith.constant 0 : index
    %82 = vector.load %arg5[%c3_47, %c0_48] : memref<24x8xf32, #tpu.memory_space<vmem>>, vector<1x8xf32>
    %83 = vector.broadcast %82 : vector<1x8xf32> to vector<16x8xf32>
    %84 = arith.addf %81, %83 : vector<16x8xf32>
    %c4 = arith.constant 4 : index
    %c0_49 = arith.constant 0 : index
    %c0_50 = arith.constant 0 : index
    %85 = vector.load %arg4[%c4, %c0_49, %c0_50] : memref<24x32x8xf32, #tpu.memory_space<vmem>>, vector<1x32x8xf32>
    %86 = vector.shape_cast %85 : vector<1x32x8xf32> to vector<32x8xf32>
    %cst_51 = arith.constant dense<0.000000e+00> : vector<16x8xf32>
    %87 = tpu.matmul %33, %86, %cst_51 {dimension_numbers = #tpu.dot_dimension_numbers<[1], [0], [0], [1], [0, 0, 1, 1], [], []>} : vector<16x32xf32>, vector<32x8xf32>, vector<16x8xf32> -> vector<16x8xf32>
    %c4_52 = arith.constant 4 : index
    %c0_53 = arith.constant 0 : index
    %88 = vector.load %arg5[%c4_52, %c0_53] : memref<24x8xf32, #tpu.memory_space<vmem>>, vector<1x8xf32>
    %89 = vector.broadcast %88 : vector<1x8xf32> to vector<16x8xf32>
    %90 = arith.addf %87, %89 : vector<16x8xf32>
    %c5 = arith.constant 5 : index
    %c0_54 = arith.constant 0 : index
    %c0_55 = arith.constant 0 : index
    %91 = vector.load %arg4[%c5, %c0_54, %c0_55] : memref<24x32x8xf32, #tpu.memory_space<vmem>>, vector<1x32x8xf32>
    %92 = vector.shape_cast %91 : vector<1x32x8xf32> to vector<32x8xf32>
    %cst_56 = arith.constant dense<0.000000e+00> : vector<16x8xf32>
    %93 = tpu.matmul %33, %92, %cst_56 {dimension_numbers = #tpu.dot_dimension_numbers<[1], [0], [0], [1], [0, 0, 1, 1], [], []>} : vector<16x32xf32>, vector<32x8xf32>, vector<16x8xf32> -> vector<16x8xf32>
    %c5_57 = arith.constant 5 : index
    %c0_58 = arith.constant 0 : index
    %94 = vector.load %arg5[%c5_57, %c0_58] : memref<24x8xf32, #tpu.memory_space<vmem>>, vector<1x8xf32>
    %95 = vector.broadcast %94 : vector<1x8xf32> to vector<16x8xf32>
    %96 = arith.addf %93, %95 : vector<16x8xf32>
    %cst_59 = arith.constant dense<0.000000e+00> : vector<16x16xf32>
    %97 = tpu.matmul %84, %90, %cst_59 {dimension_numbers = #tpu.dot_dimension_numbers<[1], [1], [0], [0], [0, 0, 1, 0], [], []>} : vector<16x8xf32>, vector<16x8xf32>, vector<16x16xf32> -> vector<16x16xf32>
    %cst_60 = arith.constant 0.353553385 : f32
    %98 = vector.broadcast %cst_60 : f32 to vector<16x16xf32>
    %99 = arith.mulf %97, %98 : vector<16x16xf32>
    %100 = arith.addf %99, %41 : vector<16x16xf32>
    %cst_61 = arith.constant dense<0xFF800000> : vector<16xf32>
    %101 = vector.multi_reduction <maximumf>, %100, %cst_61 [1] : vector<16x16xf32> to vector<16xf32>
    %102 = vector.shape_cast %101 : vector<16xf32> to vector<16x1xf32>
    %103 = vector.broadcast %102 : vector<16x1xf32> to vector<16x16xf32>
    %104 = arith.subf %100, %103 : vector<16x16xf32>
    %105 = math.exp %104 : vector<16x16xf32>
    %cst_62 = arith.constant dense<0.000000e+00> : vector<16xf32>
    %106 = vector.multi_reduction <add>, %105, %cst_62 [1] : vector<16x16xf32> to vector<16xf32>
    %107 = vector.shape_cast %106 : vector<16xf32> to vector<16x1xf32>
    %108 = vector.broadcast %107 : vector<16x1xf32> to vector<16x16xf32>
    %109 = arith.divf %105, %108 : vector<16x16xf32>
    %cst_63 = arith.constant dense<0.000000e+00> : vector<16x8xf32>
    %110 = tpu.matmul %109, %96, %cst_63 {dimension_numbers = #tpu.dot_dimension_numbers<[1], [0], [0], [1], [0, 0, 1, 1], [], []>} : vector<16x16xf32>, vector<16x8xf32>, vector<16x8xf32> -> vector<16x8xf32>
    %c152 = arith.constant 152 : index
    %c0_64 = arith.constant 0 : index
    %111 = vector.load %arg6[%c152, %c0_64] : memref<496x32xf32, #tpu.memory_space<vmem>>, vector<8x32xf32>
    %cst_65 = arith.constant dense<0.000000e+00> : vector<16x32xf32>
    %112 = tpu.matmul %110, %111, %cst_65 {dimension_numbers = #tpu.dot_dimension_numbers<[1], [0], [0], [1], [0, 0, 1, 1], [], []>} : vector<16x8xf32>, vector<8x32xf32>, vector<16x32xf32> -> vector<16x32xf32>
    %113 = arith.addf %78, %112 : vector<16x32xf32>
    %c6 = arith.constant 6 : index
    %c0_66 = arith.constant 0 : index
    %c0_67 = arith.constant 0 : index
    %114 = vector.load %arg4[%c6, %c0_66, %c0_67] : memref<24x32x8xf32, #tpu.memory_space<vmem>>, vector<1x32x8xf32>
    %115 = vector.shape_cast %114 : vector<1x32x8xf32> to vector<32x8xf32>
    %cst_68 = arith.constant dense<0.000000e+00> : vector<16x8xf32>
    %116 = tpu.matmul %33, %115, %cst_68 {dimension_numbers = #tpu.dot_dimension_numbers<[1], [0], [0], [1], [0, 0, 1, 1], [], []>} : vector<16x32xf32>, vector<32x8xf32>, vector<16x8xf32> -> vector<16x8xf32>
    %c6_69 = arith.constant 6 : index
    %c0_70 = arith.constant 0 : index
    %117 = vector.load %arg5[%c6_69, %c0_70] : memref<24x8xf32, #tpu.memory_space<vmem>>, vector<1x8xf32>
    %118 = vector.broadcast %117 : vector<1x8xf32> to vector<16x8xf32>
    %119 = arith.addf %116, %118 : vector<16x8xf32>
    %c7 = arith.constant 7 : index
    %c0_71 = arith.constant 0 : index
    %c0_72 = arith.constant 0 : index
    %120 = vector.load %arg4[%c7, %c0_71, %c0_72] : memref<24x32x8xf32, #tpu.memory_space<vmem>>, vector<1x32x8xf32>
    %121 = vector.shape_cast %120 : vector<1x32x8xf32> to vector<32x8xf32>
    %cst_73 = arith.constant dense<0.000000e+00> : vector<16x8xf32>
    %122 = tpu.matmul %33, %121, %cst_73 {dimension_numbers = #tpu.dot_dimension_numbers<[1], [0], [0], [1], [0, 0, 1, 1], [], []>} : vector<16x32xf32>, vector<32x8xf32>, vector<16x8xf32> -> vector<16x8xf32>
    %c7_74 = arith.constant 7 : index
    %c0_75 = arith.constant 0 : index
    %123 = vector.load %arg5[%c7_74, %c0_75] : memref<24x8xf32, #tpu.memory_space<vmem>>, vector<1x8xf32>
    %124 = vector.broadcast %123 : vector<1x8xf32> to vector<16x8xf32>
    %125 = arith.addf %122, %124 : vector<16x8xf32>
    %c8 = arith.constant 8 : index
    %c0_76 = arith.constant 0 : index
    %c0_77 = arith.constant 0 : index
    %126 = vector.load %arg4[%c8, %c0_76, %c0_77] : memref<24x32x8xf32, #tpu.memory_space<vmem>>, vector<1x32x8xf32>
    %127 = vector.shape_cast %126 : vector<1x32x8xf32> to vector<32x8xf32>
    %cst_78 = arith.constant dense<0.000000e+00> : vector<16x8xf32>
    %128 = tpu.matmul %33, %127, %cst_78 {dimension_numbers = #tpu.dot_dimension_numbers<[1], [0], [0], [1], [0, 0, 1, 1], [], []>} : vector<16x32xf32>, vector<32x8xf32>, vector<16x8xf32> -> vector<16x8xf32>
    %c8_79 = arith.constant 8 : index
    %c0_80 = arith.constant 0 : index
    %129 = vector.load %arg5[%c8_79, %c0_80] : memref<24x8xf32, #tpu.memory_space<vmem>>, vector<1x8xf32>
    %130 = vector.broadcast %129 : vector<1x8xf32> to vector<16x8xf32>
    %131 = arith.addf %128, %130 : vector<16x8xf32>
    %cst_81 = arith.constant dense<0.000000e+00> : vector<16x16xf32>
    %132 = tpu.matmul %119, %125, %cst_81 {dimension_numbers = #tpu.dot_dimension_numbers<[1], [1], [0], [0], [0, 0, 1, 0], [], []>} : vector<16x8xf32>, vector<16x8xf32>, vector<16x16xf32> -> vector<16x16xf32>
    %cst_82 = arith.constant 0.353553385 : f32
    %133 = vector.broadcast %cst_82 : f32 to vector<16x16xf32>
    %134 = arith.mulf %132, %133 : vector<16x16xf32>
    %135 = arith.addf %134, %41 : vector<16x16xf32>
    %cst_83 = arith.constant dense<0xFF800000> : vector<16xf32>
    %136 = vector.multi_reduction <maximumf>, %135, %cst_83 [1] : vector<16x16xf32> to vector<16xf32>
    %137 = vector.shape_cast %136 : vector<16xf32> to vector<16x1xf32>
    %138 = vector.broadcast %137 : vector<16x1xf32> to vector<16x16xf32>
    %139 = arith.subf %135, %138 : vector<16x16xf32>
    %140 = math.exp %139 : vector<16x16xf32>
    %cst_84 = arith.constant dense<0.000000e+00> : vector<16xf32>
    %141 = vector.multi_reduction <add>, %140, %cst_84 [1] : vector<16x16xf32> to vector<16xf32>
    %142 = vector.shape_cast %141 : vector<16xf32> to vector<16x1xf32>
    %143 = vector.broadcast %142 : vector<16x1xf32> to vector<16x16xf32>
    %144 = arith.divf %140, %143 : vector<16x16xf32>
    %cst_85 = arith.constant dense<0.000000e+00> : vector<16x8xf32>
    %145 = tpu.matmul %144, %131, %cst_85 {dimension_numbers = #tpu.dot_dimension_numbers<[1], [0], [0], [1], [0, 0, 1, 1], [], []>} : vector<16x16xf32>, vector<16x8xf32>, vector<16x8xf32> -> vector<16x8xf32>
    %c160 = arith.constant 160 : index
    %c0_86 = arith.constant 0 : index
    %146 = vector.load %arg6[%c160, %c0_86] : memref<496x32xf32, #tpu.memory_space<vmem>>, vector<8x32xf32>
    %cst_87 = arith.constant dense<0.000000e+00> : vector<16x32xf32>
    %147 = tpu.matmul %145, %146, %cst_87 {dimension_numbers = #tpu.dot_dimension_numbers<[1], [0], [0], [1], [0, 0, 1, 1], [], []>} : vector<16x8xf32>, vector<8x32xf32>, vector<16x32xf32> -> vector<16x32xf32>
    %148 = arith.addf %113, %147 : vector<16x32xf32>
    %c9 = arith.constant 9 : index
    %c0_88 = arith.constant 0 : index
    %c0_89 = arith.constant 0 : index
    %149 = vector.load %arg4[%c9, %c0_88, %c0_89] : memref<24x32x8xf32, #tpu.memory_space<vmem>>, vector<1x32x8xf32>
    %150 = vector.shape_cast %149 : vector<1x32x8xf32> to vector<32x8xf32>
    %cst_90 = arith.constant dense<0.000000e+00> : vector<16x8xf32>
    %151 = tpu.matmul %33, %150, %cst_90 {dimension_numbers = #tpu.dot_dimension_numbers<[1], [0], [0], [1], [0, 0, 1, 1], [], []>} : vector<16x32xf32>, vector<32x8xf32>, vector<16x8xf32> -> vector<16x8xf32>
    %c9_91 = arith.constant 9 : index
    %c0_92 = arith.constant 0 : index
    %152 = vector.load %arg5[%c9_91, %c0_92] : memref<24x8xf32, #tpu.memory_space<vmem>>, vector<1x8xf32>
    %153 = vector.broadcast %152 : vector<1x8xf32> to vector<16x8xf32>
    %154 = arith.addf %151, %153 : vector<16x8xf32>
    %c10 = arith.constant 10 : index
    %c0_93 = arith.constant 0 : index
    %c0_94 = arith.constant 0 : index
    %155 = vector.load %arg4[%c10, %c0_93, %c0_94] : memref<24x32x8xf32, #tpu.memory_space<vmem>>, vector<1x32x8xf32>
    %156 = vector.shape_cast %155 : vector<1x32x8xf32> to vector<32x8xf32>
    %cst_95 = arith.constant dense<0.000000e+00> : vector<16x8xf32>
    %157 = tpu.matmul %33, %156, %cst_95 {dimension_numbers = #tpu.dot_dimension_numbers<[1], [0], [0], [1], [0, 0, 1, 1], [], []>} : vector<16x32xf32>, vector<32x8xf32>, vector<16x8xf32> -> vector<16x8xf32>
    %c10_96 = arith.constant 10 : index
    %c0_97 = arith.constant 0 : index
    %158 = vector.load %arg5[%c10_96, %c0_97] : memref<24x8xf32, #tpu.memory_space<vmem>>, vector<1x8xf32>
    %159 = vector.broadcast %158 : vector<1x8xf32> to vector<16x8xf32>
    %160 = arith.addf %157, %159 : vector<16x8xf32>
    %c11 = arith.constant 11 : index
    %c0_98 = arith.constant 0 : index
    %c0_99 = arith.constant 0 : index
    %161 = vector.load %arg4[%c11, %c0_98, %c0_99] : memref<24x32x8xf32, #tpu.memory_space<vmem>>, vector<1x32x8xf32>
    %162 = vector.shape_cast %161 : vector<1x32x8xf32> to vector<32x8xf32>
    %cst_100 = arith.constant dense<0.000000e+00> : vector<16x8xf32>
    %163 = tpu.matmul %33, %162, %cst_100 {dimension_numbers = #tpu.dot_dimension_numbers<[1], [0], [0], [1], [0, 0, 1, 1], [], []>} : vector<16x32xf32>, vector<32x8xf32>, vector<16x8xf32> -> vector<16x8xf32>
    %c11_101 = arith.constant 11 : index
    %c0_102 = arith.constant 0 : index
    %164 = vector.load %arg5[%c11_101, %c0_102] : memref<24x8xf32, #tpu.memory_space<vmem>>, vector<1x8xf32>
    %165 = vector.broadcast %164 : vector<1x8xf32> to vector<16x8xf32>
    %166 = arith.addf %163, %165 : vector<16x8xf32>
    %cst_103 = arith.constant dense<0.000000e+00> : vector<16x16xf32>
    %167 = tpu.matmul %154, %160, %cst_103 {dimension_numbers = #tpu.dot_dimension_numbers<[1], [1], [0], [0], [0, 0, 1, 0], [], []>} : vector<16x8xf32>, vector<16x8xf32>, vector<16x16xf32> -> vector<16x16xf32>
    %cst_104 = arith.constant 0.353553385 : f32
    %168 = vector.broadcast %cst_104 : f32 to vector<16x16xf32>
    %169 = arith.mulf %167, %168 : vector<16x16xf32>
    %170 = arith.addf %169, %41 : vector<16x16xf32>
    %cst_105 = arith.constant dense<0xFF800000> : vector<16xf32>
    %171 = vector.multi_reduction <maximumf>, %170, %cst_105 [1] : vector<16x16xf32> to vector<16xf32>
    %172 = vector.shape_cast %171 : vector<16xf32> to vector<16x1xf32>
    %173 = vector.broadcast %172 : vector<16x1xf32> to vector<16x16xf32>
    %174 = arith.subf %170, %173 : vector<16x16xf32>
    %175 = math.exp %174 : vector<16x16xf32>
    %cst_106 = arith.constant dense<0.000000e+00> : vector<16xf32>
    %176 = vector.multi_reduction <add>, %175, %cst_106 [1] : vector<16x16xf32> to vector<16xf32>
    %177 = vector.shape_cast %176 : vector<16xf32> to vector<16x1xf32>
    %178 = vector.broadcast %177 : vector<16x1xf32> to vector<16x16xf32>
    %179 = arith.divf %175, %178 : vector<16x16xf32>
    %cst_107 = arith.constant dense<0.000000e+00> : vector<16x8xf32>
    %180 = tpu.matmul %179, %166, %cst_107 {dimension_numbers = #tpu.dot_dimension_numbers<[1], [0], [0], [1], [0, 0, 1, 1], [], []>} : vector<16x16xf32>, vector<16x8xf32>, vector<16x8xf32> -> vector<16x8xf32>
    %c168 = arith.constant 168 : index
    %c0_108 = arith.constant 0 : index
    %181 = vector.load %arg6[%c168, %c0_108] : memref<496x32xf32, #tpu.memory_space<vmem>>, vector<8x32xf32>
    %cst_109 = arith.constant dense<0.000000e+00> : vector<16x32xf32>
    %182 = tpu.matmul %180, %181, %cst_109 {dimension_numbers = #tpu.dot_dimension_numbers<[1], [0], [0], [1], [0, 0, 1, 1], [], []>} : vector<16x8xf32>, vector<8x32xf32>, vector<16x32xf32> -> vector<16x32xf32>
    %183 = arith.addf %148, %182 : vector<16x32xf32>
    %184 = arith.addf %183, %33 : vector<16x32xf32>
    %c3_110 = arith.constant 3 : index
    %c0_111 = arith.constant 0 : index
    %185 = vector.load %arg8[%c3_110, %c0_111] : memref<24x32xf32, #tpu.memory_space<vmem>>, vector<1x32xf32>
    %c4_112 = arith.constant 4 : index
    %c0_113 = arith.constant 0 : index
    %186 = vector.load %arg8[%c4_112, %c0_113] : memref<24x32xf32, #tpu.memory_space<vmem>>, vector<1x32xf32>
    %cst_114 = arith.constant dense<0.000000e+00> : vector<16xf32>
    %187 = vector.multi_reduction <add>, %184, %cst_114 [1] : vector<16x32xf32> to vector<16xf32>
    %188 = vector.shape_cast %187 : vector<16xf32> to vector<16x1xf32>
    %cst_115 = arith.constant 3.200000e+01 : f32
    %189 = vector.broadcast %cst_115 : f32 to vector<16x1xf32>
    %190 = arith.divf %188, %189 : vector<16x1xf32>
    %191 = vector.broadcast %190 : vector<16x1xf32> to vector<16x32xf32>
    %192 = arith.subf %184, %191 : vector<16x32xf32>
    %193 = arith.mulf %192, %192 : vector<16x32xf32>
    %cst_116 = arith.constant dense<0.000000e+00> : vector<16xf32>
    %194 = vector.multi_reduction <add>, %193, %cst_116 [1] : vector<16x32xf32> to vector<16xf32>
    %195 = vector.shape_cast %194 : vector<16xf32> to vector<16x1xf32>
    %cst_117 = arith.constant 3.200000e+01 : f32
    %196 = vector.broadcast %cst_117 : f32 to vector<16x1xf32>
    %197 = arith.divf %195, %196 : vector<16x1xf32>
    %198 = vector.broadcast %190 : vector<16x1xf32> to vector<16x32xf32>
    %199 = arith.subf %184, %198 : vector<16x32xf32>
    %cst_118 = arith.constant 9.99999996E-13 : f32
    %200 = vector.broadcast %cst_118 : f32 to vector<16x1xf32>
    %201 = arith.addf %197, %200 : vector<16x1xf32>
    %202 = math.rsqrt %201 : vector<16x1xf32>
    %203 = vector.broadcast %202 : vector<16x1xf32> to vector<16x32xf32>
    %204 = arith.mulf %199, %203 : vector<16x32xf32>
    %205 = vector.broadcast %185 : vector<1x32xf32> to vector<16x32xf32>
    %206 = arith.mulf %204, %205 : vector<16x32xf32>
    %207 = vector.broadcast %186 : vector<1x32xf32> to vector<16x32xf32>
    %208 = arith.addf %206, %207 : vector<16x32xf32>
    %c0_119 = arith.constant 0 : index
    %c0_120 = arith.constant 0 : index
    %c0_121 = arith.constant 0 : index
    %209 = vector.load %arg7[%c0_119, %c0_120, %c0_121] : memref<3x32x128xf32, #tpu.memory_space<vmem>>, vector<1x32x128xf32>
    %210 = vector.shape_cast %209 : vector<1x32x128xf32> to vector<32x128xf32>
    %cst_122 = arith.constant dense<0.000000e+00> : vector<16x128xf32>
    %211 = tpu.matmul %208, %210, %cst_122 {dimension_numbers = #tpu.dot_dimension_numbers<[1], [0], [0], [1], [0, 0, 1, 1], [], []>} : vector<16x32xf32>, vector<32x128xf32>, vector<16x128xf32> -> vector<16x128xf32>
    %c0_123 = arith.constant 0 : index
    %c0_124 = arith.constant 0 : index
    %212 = vector.load %arg9[%c0_123, %c0_124] : memref<8x128xf32, #tpu.memory_space<vmem>>, vector<1x128xf32>
    %213 = vector.broadcast %212 : vector<1x128xf32> to vector<16x128xf32>
    %214 = arith.addf %211, %213 : vector<16x128xf32>
    %215 = arith.mulf %214, %214 : vector<16x128xf32>
    %216 = arith.mulf %214, %215 : vector<16x128xf32>
    %cst_125 = arith.constant 4.471500e-02 : f32
    %217 = vector.broadcast %cst_125 : f32 to vector<16x128xf32>
    %218 = arith.mulf %217, %216 : vector<16x128xf32>
    %219 = arith.addf %214, %218 : vector<16x128xf32>
    %cst_126 = arith.constant 0.797884583 : f32
    %220 = vector.broadcast %cst_126 : f32 to vector<16x128xf32>
    %221 = arith.mulf %220, %219 : vector<16x128xf32>
    %222 = math.tanh %221 : vector<16x128xf32>
    %cst_127 = arith.constant 1.000000e+00 : f32
    %223 = vector.broadcast %cst_127 : f32 to vector<16x128xf32>
    %224 = arith.addf %223, %222 : vector<16x128xf32>
    %cst_128 = arith.constant 5.000000e-01 : f32
    %225 = vector.broadcast %cst_128 : f32 to vector<16x128xf32>
    %226 = arith.mulf %225, %224 : vector<16x128xf32>
    %227 = arith.mulf %214, %226 : vector<16x128xf32>
    %c208 = arith.constant 208 : index
    %c0_129 = arith.constant 0 : index
    %228 = vector.load %arg6[%c208, %c0_129] : memref<496x32xf32, #tpu.memory_space<vmem>>, vector<128x32xf32>
    %cst_130 = arith.constant dense<0.000000e+00> : vector<16x32xf32>
    %229 = tpu.matmul %227, %228, %cst_130 {dimension_numbers = #tpu.dot_dimension_numbers<[1], [0], [0], [1], [0, 0, 1, 1], [], []>} : vector<16x128xf32>, vector<128x32xf32>, vector<16x32xf32> -> vector<16x32xf32>
    %c5_131 = arith.constant 5 : index
    %c0_132 = arith.constant 0 : index
    %230 = vector.load %arg8[%c5_131, %c0_132] : memref<24x32xf32, #tpu.memory_space<vmem>>, vector<1x32xf32>
    %231 = vector.broadcast %230 : vector<1x32xf32> to vector<16x32xf32>
    %232 = arith.addf %229, %231 : vector<16x32xf32>
    %233 = arith.addf %232, %208 : vector<16x32xf32>
    %c6_133 = arith.constant 6 : index
    %c0_134 = arith.constant 0 : index
    %234 = vector.load %arg8[%c6_133, %c0_134] : memref<24x32xf32, #tpu.memory_space<vmem>>, vector<1x32xf32>
    %c7_135 = arith.constant 7 : index
    %c0_136 = arith.constant 0 : index
    %235 = vector.load %arg8[%c7_135, %c0_136] : memref<24x32xf32, #tpu.memory_space<vmem>>, vector<1x32xf32>
    %cst_137 = arith.constant dense<0.000000e+00> : vector<16xf32>
    %236 = vector.multi_reduction <add>, %233, %cst_137 [1] : vector<16x32xf32> to vector<16xf32>
    %237 = vector.shape_cast %236 : vector<16xf32> to vector<16x1xf32>
    %cst_138 = arith.constant 3.200000e+01 : f32
    %238 = vector.broadcast %cst_138 : f32 to vector<16x1xf32>
    %239 = arith.divf %237, %238 : vector<16x1xf32>
    %240 = vector.broadcast %239 : vector<16x1xf32> to vector<16x32xf32>
    %241 = arith.subf %233, %240 : vector<16x32xf32>
    %242 = arith.mulf %241, %241 : vector<16x32xf32>
    %cst_139 = arith.constant dense<0.000000e+00> : vector<16xf32>
    %243 = vector.multi_reduction <add>, %242, %cst_139 [1] : vector<16x32xf32> to vector<16xf32>
    %244 = vector.shape_cast %243 : vector<16xf32> to vector<16x1xf32>
    %cst_140 = arith.constant 3.200000e+01 : f32
    %245 = vector.broadcast %cst_140 : f32 to vector<16x1xf32>
    %246 = arith.divf %244, %245 : vector<16x1xf32>
    %247 = vector.broadcast %239 : vector<16x1xf32> to vector<16x32xf32>
    %248 = arith.subf %233, %247 : vector<16x32xf32>
    %cst_141 = arith.constant 9.99999996E-13 : f32
    %249 = vector.broadcast %cst_141 : f32 to vector<16x1xf32>
    %250 = arith.addf %246, %249 : vector<16x1xf32>
    %251 = math.rsqrt %250 : vector<16x1xf32>
    %252 = vector.broadcast %251 : vector<16x1xf32> to vector<16x32xf32>
    %253 = arith.mulf %248, %252 : vector<16x32xf32>
    %254 = vector.broadcast %234 : vector<1x32xf32> to vector<16x32xf32>
    %255 = arith.mulf %253, %254 : vector<16x32xf32>
    %256 = vector.broadcast %235 : vector<1x32xf32> to vector<16x32xf32>
    %257 = arith.addf %255, %256 : vector<16x32xf32>
    %c8_142 = arith.constant 8 : index
    %c0_143 = arith.constant 0 : index
    %258 = vector.load %arg8[%c8_142, %c0_143] : memref<24x32xf32, #tpu.memory_space<vmem>>, vector<1x32xf32>
    %c12 = arith.constant 12 : index
    %c0_144 = arith.constant 0 : index
    %c0_145 = arith.constant 0 : index
    %259 = vector.load %arg4[%c12, %c0_144, %c0_145] : memref<24x32x8xf32, #tpu.memory_space<vmem>>, vector<1x32x8xf32>
    %260 = vector.shape_cast %259 : vector<1x32x8xf32> to vector<32x8xf32>
    %cst_146 = arith.constant dense<0.000000e+00> : vector<16x8xf32>
    %261 = tpu.matmul %257, %260, %cst_146 {dimension_numbers = #tpu.dot_dimension_numbers<[1], [0], [0], [1], [0, 0, 1, 1], [], []>} : vector<16x32xf32>, vector<32x8xf32>, vector<16x8xf32> -> vector<16x8xf32>
    %c12_147 = arith.constant 12 : index
    %c0_148 = arith.constant 0 : index
    %262 = vector.load %arg5[%c12_147, %c0_148] : memref<24x8xf32, #tpu.memory_space<vmem>>, vector<1x8xf32>
    %263 = vector.broadcast %262 : vector<1x8xf32> to vector<16x8xf32>
    %264 = arith.addf %261, %263 : vector<16x8xf32>
    %c13 = arith.constant 13 : index
    %c0_149 = arith.constant 0 : index
    %c0_150 = arith.constant 0 : index
    %265 = vector.load %arg4[%c13, %c0_149, %c0_150] : memref<24x32x8xf32, #tpu.memory_space<vmem>>, vector<1x32x8xf32>
    %266 = vector.shape_cast %265 : vector<1x32x8xf32> to vector<32x8xf32>
    %cst_151 = arith.constant dense<0.000000e+00> : vector<16x8xf32>
    %267 = tpu.matmul %257, %266, %cst_151 {dimension_numbers = #tpu.dot_dimension_numbers<[1], [0], [0], [1], [0, 0, 1, 1], [], []>} : vector<16x32xf32>, vector<32x8xf32>, vector<16x8xf32> -> vector<16x8xf32>
    %c13_152 = arith.constant 13 : index
    %c0_153 = arith.constant 0 : index
    %268 = vector.load %arg5[%c13_152, %c0_153] : memref<24x8xf32, #tpu.memory_space<vmem>>, vector<1x8xf32>
    %269 = vector.broadcast %268 : vector<1x8xf32> to vector<16x8xf32>
    %270 = arith.addf %267, %269 : vector<16x8xf32>
    %c14 = arith.constant 14 : index
    %c0_154 = arith.constant 0 : index
    %c0_155 = arith.constant 0 : index
    %271 = vector.load %arg4[%c14, %c0_154, %c0_155] : memref<24x32x8xf32, #tpu.memory_space<vmem>>, vector<1x32x8xf32>
    %272 = vector.shape_cast %271 : vector<1x32x8xf32> to vector<32x8xf32>
    %cst_156 = arith.constant dense<0.000000e+00> : vector<16x8xf32>
    %273 = tpu.matmul %257, %272, %cst_156 {dimension_numbers = #tpu.dot_dimension_numbers<[1], [0], [0], [1], [0, 0, 1, 1], [], []>} : vector<16x32xf32>, vector<32x8xf32>, vector<16x8xf32> -> vector<16x8xf32>
    %c14_157 = arith.constant 14 : index
    %c0_158 = arith.constant 0 : index
    %274 = vector.load %arg5[%c14_157, %c0_158] : memref<24x8xf32, #tpu.memory_space<vmem>>, vector<1x8xf32>
    %275 = vector.broadcast %274 : vector<1x8xf32> to vector<16x8xf32>
    %276 = arith.addf %273, %275 : vector<16x8xf32>
    %cst_159 = arith.constant dense<0.000000e+00> : vector<16x16xf32>
    %277 = tpu.matmul %264, %270, %cst_159 {dimension_numbers = #tpu.dot_dimension_numbers<[1], [1], [0], [0], [0, 0, 1, 0], [], []>} : vector<16x8xf32>, vector<16x8xf32>, vector<16x16xf32> -> vector<16x16xf32>
    %cst_160 = arith.constant 0.353553385 : f32
    %278 = vector.broadcast %cst_160 : f32 to vector<16x16xf32>
    %279 = arith.mulf %277, %278 : vector<16x16xf32>
    %280 = arith.addf %279, %41 : vector<16x16xf32>
    %cst_161 = arith.constant dense<0xFF800000> : vector<16xf32>
    %281 = vector.multi_reduction <maximumf>, %280, %cst_161 [1] : vector<16x16xf32> to vector<16xf32>
    %282 = vector.shape_cast %281 : vector<16xf32> to vector<16x1xf32>
    %283 = vector.broadcast %282 : vector<16x1xf32> to vector<16x16xf32>
    %284 = arith.subf %280, %283 : vector<16x16xf32>
    %285 = math.exp %284 : vector<16x16xf32>
    %cst_162 = arith.constant dense<0.000000e+00> : vector<16xf32>
    %286 = vector.multi_reduction <add>, %285, %cst_162 [1] : vector<16x16xf32> to vector<16xf32>
    %287 = vector.shape_cast %286 : vector<16xf32> to vector<16x1xf32>
    %288 = vector.broadcast %287 : vector<16x1xf32> to vector<16x16xf32>
    %289 = arith.divf %285, %288 : vector<16x16xf32>
    %cst_163 = arith.constant dense<0.000000e+00> : vector<16x8xf32>
    %290 = tpu.matmul %289, %276, %cst_163 {dimension_numbers = #tpu.dot_dimension_numbers<[1], [0], [0], [1], [0, 0, 1, 1], [], []>} : vector<16x16xf32>, vector<16x8xf32>, vector<16x8xf32> -> vector<16x8xf32>
    %c176 = arith.constant 176 : index
    %c0_164 = arith.constant 0 : index
    %291 = vector.load %arg6[%c176, %c0_164] : memref<496x32xf32, #tpu.memory_space<vmem>>, vector<8x32xf32>
    %cst_165 = arith.constant dense<0.000000e+00> : vector<16x32xf32>
    %292 = tpu.matmul %290, %291, %cst_165 {dimension_numbers = #tpu.dot_dimension_numbers<[1], [0], [0], [1], [0, 0, 1, 1], [], []>} : vector<16x8xf32>, vector<8x32xf32>, vector<16x32xf32> -> vector<16x32xf32>
    %293 = vector.broadcast %258 : vector<1x32xf32> to vector<16x32xf32>
    %294 = arith.addf %293, %292 : vector<16x32xf32>
    %c15 = arith.constant 15 : index
    %c0_166 = arith.constant 0 : index
    %c0_167 = arith.constant 0 : index
    %295 = vector.load %arg4[%c15, %c0_166, %c0_167] : memref<24x32x8xf32, #tpu.memory_space<vmem>>, vector<1x32x8xf32>
    %296 = vector.shape_cast %295 : vector<1x32x8xf32> to vector<32x8xf32>
    %cst_168 = arith.constant dense<0.000000e+00> : vector<16x8xf32>
    %297 = tpu.matmul %257, %296, %cst_168 {dimension_numbers = #tpu.dot_dimension_numbers<[1], [0], [0], [1], [0, 0, 1, 1], [], []>} : vector<16x32xf32>, vector<32x8xf32>, vector<16x8xf32> -> vector<16x8xf32>
    %c15_169 = arith.constant 15 : index
    %c0_170 = arith.constant 0 : index
    %298 = vector.load %arg5[%c15_169, %c0_170] : memref<24x8xf32, #tpu.memory_space<vmem>>, vector<1x8xf32>
    %299 = vector.broadcast %298 : vector<1x8xf32> to vector<16x8xf32>
    %300 = arith.addf %297, %299 : vector<16x8xf32>
    %c16 = arith.constant 16 : index
    %c0_171 = arith.constant 0 : index
    %c0_172 = arith.constant 0 : index
    %301 = vector.load %arg4[%c16, %c0_171, %c0_172] : memref<24x32x8xf32, #tpu.memory_space<vmem>>, vector<1x32x8xf32>
    %302 = vector.shape_cast %301 : vector<1x32x8xf32> to vector<32x8xf32>
    %cst_173 = arith.constant dense<0.000000e+00> : vector<16x8xf32>
    %303 = tpu.matmul %257, %302, %cst_173 {dimension_numbers = #tpu.dot_dimension_numbers<[1], [0], [0], [1], [0, 0, 1, 1], [], []>} : vector<16x32xf32>, vector<32x8xf32>, vector<16x8xf32> -> vector<16x8xf32>
    %c16_174 = arith.constant 16 : index
    %c0_175 = arith.constant 0 : index
    %304 = vector.load %arg5[%c16_174, %c0_175] : memref<24x8xf32, #tpu.memory_space<vmem>>, vector<1x8xf32>
    %305 = vector.broadcast %304 : vector<1x8xf32> to vector<16x8xf32>
    %306 = arith.addf %303, %305 : vector<16x8xf32>
    %c17 = arith.constant 17 : index
    %c0_176 = arith.constant 0 : index
    %c0_177 = arith.constant 0 : index
    %307 = vector.load %arg4[%c17, %c0_176, %c0_177] : memref<24x32x8xf32, #tpu.memory_space<vmem>>, vector<1x32x8xf32>
    %308 = vector.shape_cast %307 : vector<1x32x8xf32> to vector<32x8xf32>
    %cst_178 = arith.constant dense<0.000000e+00> : vector<16x8xf32>
    %309 = tpu.matmul %257, %308, %cst_178 {dimension_numbers = #tpu.dot_dimension_numbers<[1], [0], [0], [1], [0, 0, 1, 1], [], []>} : vector<16x32xf32>, vector<32x8xf32>, vector<16x8xf32> -> vector<16x8xf32>
    %c17_179 = arith.constant 17 : index
    %c0_180 = arith.constant 0 : index
    %310 = vector.load %arg5[%c17_179, %c0_180] : memref<24x8xf32, #tpu.memory_space<vmem>>, vector<1x8xf32>
    %311 = vector.broadcast %310 : vector<1x8xf32> to vector<16x8xf32>
    %312 = arith.addf %309, %311 : vector<16x8xf32>
    %cst_181 = arith.constant dense<0.000000e+00> : vector<16x16xf32>
    %313 = tpu.matmul %300, %306, %cst_181 {dimension_numbers = #tpu.dot_dimension_numbers<[1], [1], [0], [0], [0, 0, 1, 0], [], []>} : vector<16x8xf32>, vector<16x8xf32>, vector<16x16xf32> -> vector<16x16xf32>
    %cst_182 = arith.constant 0.353553385 : f32
    %314 = vector.broadcast %cst_182 : f32 to vector<16x16xf32>
    %315 = arith.mulf %313, %314 : vector<16x16xf32>
    %316 = arith.addf %315, %41 : vector<16x16xf32>
    %cst_183 = arith.constant dense<0xFF800000> : vector<16xf32>
    %317 = vector.multi_reduction <maximumf>, %316, %cst_183 [1] : vector<16x16xf32> to vector<16xf32>
    %318 = vector.shape_cast %317 : vector<16xf32> to vector<16x1xf32>
    %319 = vector.broadcast %318 : vector<16x1xf32> to vector<16x16xf32>
    %320 = arith.subf %316, %319 : vector<16x16xf32>
    %321 = math.exp %320 : vector<16x16xf32>
    %cst_184 = arith.constant dense<0.000000e+00> : vector<16xf32>
    %322 = vector.multi_reduction <add>, %321, %cst_184 [1] : vector<16x16xf32> to vector<16xf32>
    %323 = vector.shape_cast %322 : vector<16xf32> to vector<16x1xf32>
    %324 = vector.broadcast %323 : vector<16x1xf32> to vector<16x16xf32>
    %325 = arith.divf %321, %324 : vector<16x16xf32>
    %cst_185 = arith.constant dense<0.000000e+00> : vector<16x8xf32>
    %326 = tpu.matmul %325, %312, %cst_185 {dimension_numbers = #tpu.dot_dimension_numbers<[1], [0], [0], [1], [0, 0, 1, 1], [], []>} : vector<16x16xf32>, vector<16x8xf32>, vector<16x8xf32> -> vector<16x8xf32>
    %c184 = arith.constant 184 : index
    %c0_186 = arith.constant 0 : index
    %327 = vector.load %arg6[%c184, %c0_186] : memref<496x32xf32, #tpu.memory_space<vmem>>, vector<8x32xf32>
    %cst_187 = arith.constant dense<0.000000e+00> : vector<16x32xf32>
    %328 = tpu.matmul %326, %327, %cst_187 {dimension_numbers = #tpu.dot_dimension_numbers<[1], [0], [0], [1], [0, 0, 1, 1], [], []>} : vector<16x8xf32>, vector<8x32xf32>, vector<16x32xf32> -> vector<16x32xf32>
    %329 = arith.addf %294, %328 : vector<16x32xf32>
    %c18 = arith.constant 18 : index
    %c0_188 = arith.constant 0 : index
    %c0_189 = arith.constant 0 : index
    %330 = vector.load %arg4[%c18, %c0_188, %c0_189] : memref<24x32x8xf32, #tpu.memory_space<vmem>>, vector<1x32x8xf32>
    %331 = vector.shape_cast %330 : vector<1x32x8xf32> to vector<32x8xf32>
    %cst_190 = arith.constant dense<0.000000e+00> : vector<16x8xf32>
    %332 = tpu.matmul %257, %331, %cst_190 {dimension_numbers = #tpu.dot_dimension_numbers<[1], [0], [0], [1], [0, 0, 1, 1], [], []>} : vector<16x32xf32>, vector<32x8xf32>, vector<16x8xf32> -> vector<16x8xf32>
    %c18_191 = arith.constant 18 : index
    %c0_192 = arith.constant 0 : index
    %333 = vector.load %arg5[%c18_191, %c0_192] : memref<24x8xf32, #tpu.memory_space<vmem>>, vector<1x8xf32>
    %334 = vector.broadcast %333 : vector<1x8xf32> to vector<16x8xf32>
    %335 = arith.addf %332, %334 : vector<16x8xf32>
    %c19 = arith.constant 19 : index
    %c0_193 = arith.constant 0 : index
    %c0_194 = arith.constant 0 : index
    %336 = vector.load %arg4[%c19, %c0_193, %c0_194] : memref<24x32x8xf32, #tpu.memory_space<vmem>>, vector<1x32x8xf32>
    %337 = vector.shape_cast %336 : vector<1x32x8xf32> to vector<32x8xf32>
    %cst_195 = arith.constant dense<0.000000e+00> : vector<16x8xf32>
    %338 = tpu.matmul %257, %337, %cst_195 {dimension_numbers = #tpu.dot_dimension_numbers<[1], [0], [0], [1], [0, 0, 1, 1], [], []>} : vector<16x32xf32>, vector<32x8xf32>, vector<16x8xf32> -> vector<16x8xf32>
    %c19_196 = arith.constant 19 : index
    %c0_197 = arith.constant 0 : index
    %339 = vector.load %arg5[%c19_196, %c0_197] : memref<24x8xf32, #tpu.memory_space<vmem>>, vector<1x8xf32>
    %340 = vector.broadcast %339 : vector<1x8xf32> to vector<16x8xf32>
    %341 = arith.addf %338, %340 : vector<16x8xf32>
    %c20 = arith.constant 20 : index
    %c0_198 = arith.constant 0 : index
    %c0_199 = arith.constant 0 : index
    %342 = vector.load %arg4[%c20, %c0_198, %c0_199] : memref<24x32x8xf32, #tpu.memory_space<vmem>>, vector<1x32x8xf32>
    %343 = vector.shape_cast %342 : vector<1x32x8xf32> to vector<32x8xf32>
    %cst_200 = arith.constant dense<0.000000e+00> : vector<16x8xf32>
    %344 = tpu.matmul %257, %343, %cst_200 {dimension_numbers = #tpu.dot_dimension_numbers<[1], [0], [0], [1], [0, 0, 1, 1], [], []>} : vector<16x32xf32>, vector<32x8xf32>, vector<16x8xf32> -> vector<16x8xf32>
    %c20_201 = arith.constant 20 : index
    %c0_202 = arith.constant 0 : index
    %345 = vector.load %arg5[%c20_201, %c0_202] : memref<24x8xf32, #tpu.memory_space<vmem>>, vector<1x8xf32>
    %346 = vector.broadcast %345 : vector<1x8xf32> to vector<16x8xf32>
    %347 = arith.addf %344, %346 : vector<16x8xf32>
    %cst_203 = arith.constant dense<0.000000e+00> : vector<16x16xf32>
    %348 = tpu.matmul %335, %341, %cst_203 {dimension_numbers = #tpu.dot_dimension_numbers<[1], [1], [0], [0], [0, 0, 1, 0], [], []>} : vector<16x8xf32>, vector<16x8xf32>, vector<16x16xf32> -> vector<16x16xf32>
    %cst_204 = arith.constant 0.353553385 : f32
    %349 = vector.broadcast %cst_204 : f32 to vector<16x16xf32>
    %350 = arith.mulf %348, %349 : vector<16x16xf32>
    %351 = arith.addf %350, %41 : vector<16x16xf32>
    %cst_205 = arith.constant dense<0xFF800000> : vector<16xf32>
    %352 = vector.multi_reduction <maximumf>, %351, %cst_205 [1] : vector<16x16xf32> to vector<16xf32>
    %353 = vector.shape_cast %352 : vector<16xf32> to vector<16x1xf32>
    %354 = vector.broadcast %353 : vector<16x1xf32> to vector<16x16xf32>
    %355 = arith.subf %351, %354 : vector<16x16xf32>
    %356 = math.exp %355 : vector<16x16xf32>
    %cst_206 = arith.constant dense<0.000000e+00> : vector<16xf32>
    %357 = vector.multi_reduction <add>, %356, %cst_206 [1] : vector<16x16xf32> to vector<16xf32>
    %358 = vector.shape_cast %357 : vector<16xf32> to vector<16x1xf32>
    %359 = vector.broadcast %358 : vector<16x1xf32> to vector<16x16xf32>
    %360 = arith.divf %356, %359 : vector<16x16xf32>
    %cst_207 = arith.constant dense<0.000000e+00> : vector<16x8xf32>
    %361 = tpu.matmul %360, %347, %cst_207 {dimension_numbers = #tpu.dot_dimension_numbers<[1], [0], [0], [1], [0, 0, 1, 1], [], []>} : vector<16x16xf32>, vector<16x8xf32>, vector<16x8xf32> -> vector<16x8xf32>
    %c192 = arith.constant 192 : index
    %c0_208 = arith.constant 0 : index
    %362 = vector.load %arg6[%c192, %c0_208] : memref<496x32xf32, #tpu.memory_space<vmem>>, vector<8x32xf32>
    %cst_209 = arith.constant dense<0.000000e+00> : vector<16x32xf32>
    %363 = tpu.matmul %361, %362, %cst_209 {dimension_numbers = #tpu.dot_dimension_numbers<[1], [0], [0], [1], [0, 0, 1, 1], [], []>} : vector<16x8xf32>, vector<8x32xf32>, vector<16x32xf32> -> vector<16x32xf32>
    %364 = arith.addf %329, %363 : vector<16x32xf32>
    %c21 = arith.constant 21 : index
    %c0_210 = arith.constant 0 : index
    %c0_211 = arith.constant 0 : index
    %365 = vector.load %arg4[%c21, %c0_210, %c0_211] : memref<24x32x8xf32, #tpu.memory_space<vmem>>, vector<1x32x8xf32>
    %366 = vector.shape_cast %365 : vector<1x32x8xf32> to vector<32x8xf32>
    %cst_212 = arith.constant dense<0.000000e+00> : vector<16x8xf32>
    %367 = tpu.matmul %257, %366, %cst_212 {dimension_numbers = #tpu.dot_dimension_numbers<[1], [0], [0], [1], [0, 0, 1, 1], [], []>} : vector<16x32xf32>, vector<32x8xf32>, vector<16x8xf32> -> vector<16x8xf32>
    %c21_213 = arith.constant 21 : index
    %c0_214 = arith.constant 0 : index
    %368 = vector.load %arg5[%c21_213, %c0_214] : memref<24x8xf32, #tpu.memory_space<vmem>>, vector<1x8xf32>
    %369 = vector.broadcast %368 : vector<1x8xf32> to vector<16x8xf32>
    %370 = arith.addf %367, %369 : vector<16x8xf32>
    %c22 = arith.constant 22 : index
    %c0_215 = arith.constant 0 : index
    %c0_216 = arith.constant 0 : index
    %371 = vector.load %arg4[%c22, %c0_215, %c0_216] : memref<24x32x8xf32, #tpu.memory_space<vmem>>, vector<1x32x8xf32>
    %372 = vector.shape_cast %371 : vector<1x32x8xf32> to vector<32x8xf32>
    %cst_217 = arith.constant dense<0.000000e+00> : vector<16x8xf32>
    %373 = tpu.matmul %257, %372, %cst_217 {dimension_numbers = #tpu.dot_dimension_numbers<[1], [0], [0], [1], [0, 0, 1, 1], [], []>} : vector<16x32xf32>, vector<32x8xf32>, vector<16x8xf32> -> vector<16x8xf32>
    %c22_218 = arith.constant 22 : index
    %c0_219 = arith.constant 0 : index
    %374 = vector.load %arg5[%c22_218, %c0_219] : memref<24x8xf32, #tpu.memory_space<vmem>>, vector<1x8xf32>
    %375 = vector.broadcast %374 : vector<1x8xf32> to vector<16x8xf32>
    %376 = arith.addf %373, %375 : vector<16x8xf32>
    %c23 = arith.constant 23 : index
    %c0_220 = arith.constant 0 : index
    %c0_221 = arith.constant 0 : index
    %377 = vector.load %arg4[%c23, %c0_220, %c0_221] : memref<24x32x8xf32, #tpu.memory_space<vmem>>, vector<1x32x8xf32>
    %378 = vector.shape_cast %377 : vector<1x32x8xf32> to vector<32x8xf32>
    %cst_222 = arith.constant dense<0.000000e+00> : vector<16x8xf32>
    %379 = tpu.matmul %257, %378, %cst_222 {dimension_numbers = #tpu.dot_dimension_numbers<[1], [0], [0], [1], [0, 0, 1, 1], [], []>} : vector<16x32xf32>, vector<32x8xf32>, vector<16x8xf32> -> vector<16x8xf32>
    %c23_223 = arith.constant 23 : index
    %c0_224 = arith.constant 0 : index
    %380 = vector.load %arg5[%c23_223, %c0_224] : memref<24x8xf32, #tpu.memory_space<vmem>>, vector<1x8xf32>
    %381 = vector.broadcast %380 : vector<1x8xf32> to vector<16x8xf32>
    %382 = arith.addf %379, %381 : vector<16x8xf32>
    %cst_225 = arith.constant dense<0.000000e+00> : vector<16x16xf32>
    %383 = tpu.matmul %370, %376, %cst_225 {dimension_numbers = #tpu.dot_dimension_numbers<[1], [1], [0], [0], [0, 0, 1, 0], [], []>} : vector<16x8xf32>, vector<16x8xf32>, vector<16x16xf32> -> vector<16x16xf32>
    %cst_226 = arith.constant 0.353553385 : f32
    %384 = vector.broadcast %cst_226 : f32 to vector<16x16xf32>
    %385 = arith.mulf %383, %384 : vector<16x16xf32>
    %386 = arith.addf %385, %41 : vector<16x16xf32>
    %cst_227 = arith.constant dense<0xFF800000> : vector<16xf32>
    %387 = vector.multi_reduction <maximumf>, %386, %cst_227 [1] : vector<16x16xf32> to vector<16xf32>
    %388 = vector.shape_cast %387 : vector<16xf32> to vector<16x1xf32>
    %389 = vector.broadcast %388 : vector<16x1xf32> to vector<16x16xf32>
    %390 = arith.subf %386, %389 : vector<16x16xf32>
    %391 = math.exp %390 : vector<16x16xf32>
    %cst_228 = arith.constant dense<0.000000e+00> : vector<16xf32>
    %392 = vector.multi_reduction <add>, %391, %cst_228 [1] : vector<16x16xf32> to vector<16xf32>
    %393 = vector.shape_cast %392 : vector<16xf32> to vector<16x1xf32>
    %394 = vector.broadcast %393 : vector<16x1xf32> to vector<16x16xf32>
    %395 = arith.divf %391, %394 : vector<16x16xf32>
    %cst_229 = arith.constant dense<0.000000e+00> : vector<16x8xf32>
    %396 = tpu.matmul %395, %382, %cst_229 {dimension_numbers = #tpu.dot_dimension_numbers<[1], [0], [0], [1], [0, 0, 1, 1], [], []>} : vector<16x16xf32>, vector<16x8xf32>, vector<16x8xf32> -> vector<16x8xf32>
    %c200 = arith.constant 200 : index
    %c0_230 = arith.constant 0 : index
    %397 = vector.load %arg6[%c200, %c0_230] : memref<496x32xf32, #tpu.memory_space<vmem>>, vector<8x32xf32>
    %cst_231 = arith.constant dense<0.000000e+00> : vector<16x32xf32>
    %398 = tpu.matmul %396, %397, %cst_231 {dimension_numbers = #tpu.dot_dimension_numbers<[1], [0], [0], [1], [0, 0, 1, 1], [], []>} : vector<16x8xf32>, vector<8x32xf32>, vector<16x32xf32> -> vector<16x32xf32>
    %399 = arith.addf %364, %398 : vector<16x32xf32>
    %400 = arith.addf %399, %257 : vector<16x32xf32>
    %c9_232 = arith.constant 9 : index
    %c0_233 = arith.constant 0 : index
    %401 = vector.load %arg8[%c9_232, %c0_233] : memref<24x32xf32, #tpu.memory_space<vmem>>, vector<1x32xf32>
    %c10_234 = arith.constant 10 : index
    %c0_235 = arith.constant 0 : index
    %402 = vector.load %arg8[%c10_234, %c0_235] : memref<24x32xf32, #tpu.memory_space<vmem>>, vector<1x32xf32>
    %cst_236 = arith.constant dense<0.000000e+00> : vector<16xf32>
    %403 = vector.multi_reduction <add>, %400, %cst_236 [1] : vector<16x32xf32> to vector<16xf32>
    %404 = vector.shape_cast %403 : vector<16xf32> to vector<16x1xf32>
    %cst_237 = arith.constant 3.200000e+01 : f32
    %405 = vector.broadcast %cst_237 : f32 to vector<16x1xf32>
    %406 = arith.divf %404, %405 : vector<16x1xf32>
    %407 = vector.broadcast %406 : vector<16x1xf32> to vector<16x32xf32>
    %408 = arith.subf %400, %407 : vector<16x32xf32>
    %409 = arith.mulf %408, %408 : vector<16x32xf32>
    %cst_238 = arith.constant dense<0.000000e+00> : vector<16xf32>
    %410 = vector.multi_reduction <add>, %409, %cst_238 [1] : vector<16x32xf32> to vector<16xf32>
    %411 = vector.shape_cast %410 : vector<16xf32> to vector<16x1xf32>
    %cst_239 = arith.constant 3.200000e+01 : f32
    %412 = vector.broadcast %cst_239 : f32 to vector<16x1xf32>
    %413 = arith.divf %411, %412 : vector<16x1xf32>
    %414 = vector.broadcast %406 : vector<16x1xf32> to vector<16x32xf32>
    %415 = arith.subf %400, %414 : vector<16x32xf32>
    %cst_240 = arith.constant 9.99999996E-13 : f32
    %416 = vector.broadcast %cst_240 : f32 to vector<16x1xf32>
    %417 = arith.addf %413, %416 : vector<16x1xf32>
    %418 = math.rsqrt %417 : vector<16x1xf32>
    %419 = vector.broadcast %418 : vector<16x1xf32> to vector<16x32xf32>
    %420 = arith.mulf %415, %419 : vector<16x32xf32>
    %421 = vector.broadcast %401 : vector<1x32xf32> to vector<16x32xf32>
    %422 = arith.mulf %420, %421 : vector<16x32xf32>
    %423 = vector.broadcast %402 : vector<1x32xf32> to vector<16x32xf32>
    %424 = arith.addf %422, %423 : vector<16x32xf32>
    %c1_241 = arith.constant 1 : index
    %c0_242 = arith.constant 0 : index
    %c0_243 = arith.constant 0 : index
    %425 = vector.load %arg7[%c1_241, %c0_242, %c0_243] : memref<3x32x128xf32, #tpu.memory_space<vmem>>, vector<1x32x128xf32>
    %426 = vector.shape_cast %425 : vector<1x32x128xf32> to vector<32x128xf32>
    %cst_244 = arith.constant dense<0.000000e+00> : vector<16x128xf32>
    %427 = tpu.matmul %424, %426, %cst_244 {dimension_numbers = #tpu.dot_dimension_numbers<[1], [0], [0], [1], [0, 0, 1, 1], [], []>} : vector<16x32xf32>, vector<32x128xf32>, vector<16x128xf32> -> vector<16x128xf32>
    %c1_245 = arith.constant 1 : index
    %c0_246 = arith.constant 0 : index
    %428 = vector.load %arg9[%c1_245, %c0_246] : memref<8x128xf32, #tpu.memory_space<vmem>>, vector<1x128xf32>
    %429 = vector.broadcast %428 : vector<1x128xf32> to vector<16x128xf32>
    %430 = arith.addf %427, %429 : vector<16x128xf32>
    %431 = arith.mulf %430, %430 : vector<16x128xf32>
    %432 = arith.mulf %430, %431 : vector<16x128xf32>
    %cst_247 = arith.constant 4.471500e-02 : f32
    %433 = vector.broadcast %cst_247 : f32 to vector<16x128xf32>
    %434 = arith.mulf %433, %432 : vector<16x128xf32>
    %435 = arith.addf %430, %434 : vector<16x128xf32>
    %cst_248 = arith.constant 0.797884583 : f32
    %436 = vector.broadcast %cst_248 : f32 to vector<16x128xf32>
    %437 = arith.mulf %436, %435 : vector<16x128xf32>
    %438 = math.tanh %437 : vector<16x128xf32>
    %cst_249 = arith.constant 1.000000e+00 : f32
    %439 = vector.broadcast %cst_249 : f32 to vector<16x128xf32>
    %440 = arith.addf %439, %438 : vector<16x128xf32>
    %cst_250 = arith.constant 5.000000e-01 : f32
    %441 = vector.broadcast %cst_250 : f32 to vector<16x128xf32>
    %442 = arith.mulf %441, %440 : vector<16x128xf32>
    %443 = arith.mulf %430, %442 : vector<16x128xf32>
    %c336 = arith.constant 336 : index
    %c0_251 = arith.constant 0 : index
    %444 = vector.load %arg6[%c336, %c0_251] : memref<496x32xf32, #tpu.memory_space<vmem>>, vector<128x32xf32>
    %cst_252 = arith.constant dense<0.000000e+00> : vector<16x32xf32>
    %445 = tpu.matmul %443, %444, %cst_252 {dimension_numbers = #tpu.dot_dimension_numbers<[1], [0], [0], [1], [0, 0, 1, 1], [], []>} : vector<16x128xf32>, vector<128x32xf32>, vector<16x32xf32> -> vector<16x32xf32>
    %c11_253 = arith.constant 11 : index
    %c0_254 = arith.constant 0 : index
    %446 = vector.load %arg8[%c11_253, %c0_254] : memref<24x32xf32, #tpu.memory_space<vmem>>, vector<1x32xf32>
    %447 = vector.broadcast %446 : vector<1x32xf32> to vector<16x32xf32>
    %448 = arith.addf %445, %447 : vector<16x32xf32>
    %449 = arith.addf %448, %424 : vector<16x32xf32>
    %c12_255 = arith.constant 12 : index
    %c0_256 = arith.constant 0 : index
    %450 = vector.load %arg8[%c12_255, %c0_256] : memref<24x32xf32, #tpu.memory_space<vmem>>, vector<1x32xf32>
    %c13_257 = arith.constant 13 : index
    %c0_258 = arith.constant 0 : index
    %451 = vector.load %arg8[%c13_257, %c0_258] : memref<24x32xf32, #tpu.memory_space<vmem>>, vector<1x32xf32>
    %cst_259 = arith.constant dense<0.000000e+00> : vector<16xf32>
    %452 = vector.multi_reduction <add>, %449, %cst_259 [1] : vector<16x32xf32> to vector<16xf32>
    %453 = vector.shape_cast %452 : vector<16xf32> to vector<16x1xf32>
    %cst_260 = arith.constant 3.200000e+01 : f32
    %454 = vector.broadcast %cst_260 : f32 to vector<16x1xf32>
    %455 = arith.divf %453, %454 : vector<16x1xf32>
    %456 = vector.broadcast %455 : vector<16x1xf32> to vector<16x32xf32>
    %457 = arith.subf %449, %456 : vector<16x32xf32>
    %458 = arith.mulf %457, %457 : vector<16x32xf32>
    %cst_261 = arith.constant dense<0.000000e+00> : vector<16xf32>
    %459 = vector.multi_reduction <add>, %458, %cst_261 [1] : vector<16x32xf32> to vector<16xf32>
    %460 = vector.shape_cast %459 : vector<16xf32> to vector<16x1xf32>
    %cst_262 = arith.constant 3.200000e+01 : f32
    %461 = vector.broadcast %cst_262 : f32 to vector<16x1xf32>
    %462 = arith.divf %460, %461 : vector<16x1xf32>
    %463 = vector.broadcast %455 : vector<16x1xf32> to vector<16x32xf32>
    %464 = arith.subf %449, %463 : vector<16x32xf32>
    %cst_263 = arith.constant 9.99999996E-13 : f32
    %465 = vector.broadcast %cst_263 : f32 to vector<16x1xf32>
    %466 = arith.addf %462, %465 : vector<16x1xf32>
    %467 = math.rsqrt %466 : vector<16x1xf32>
    %468 = vector.broadcast %467 : vector<16x1xf32> to vector<16x32xf32>
    %469 = arith.mulf %464, %468 : vector<16x32xf32>
    %470 = vector.broadcast %450 : vector<1x32xf32> to vector<16x32xf32>
    %471 = arith.mulf %469, %470 : vector<16x32xf32>
    %472 = vector.broadcast %451 : vector<1x32xf32> to vector<16x32xf32>
    %473 = arith.addf %471, %472 : vector<16x32xf32>
    %c16_264 = arith.constant 16 : index
    %c0_265 = arith.constant 0 : index
    %474 = vector.load %arg3[%c16_264, %c0_265] : memref<18x16xf32, #tpu.memory_space<vmem>>, vector<2x16xf32>
    %cst_266 = arith.constant dense<0.000000e+00> : vector<2x32xf32>
    %475 = tpu.matmul %474, %473, %cst_266 {dimension_numbers = #tpu.dot_dimension_numbers<[1], [0], [0], [1], [0, 0, 1, 1], [], []>} : vector<2x16xf32>, vector<16x32xf32>, vector<2x32xf32> -> vector<2x32xf32>
    %c464 = arith.constant 464 : index
    %c0_267 = arith.constant 0 : index
    %476 = vector.load %arg6[%c464, %c0_267] : memref<496x32xf32, #tpu.memory_space<vmem>>, vector<32x32xf32>
    %cst_268 = arith.constant dense<0.000000e+00> : vector<2x32xf32>
    %477 = tpu.matmul %475, %476, %cst_268 {dimension_numbers = #tpu.dot_dimension_numbers<[1], [0], [0], [1], [0, 0, 1, 1], [], []>} : vector<2x32xf32>, vector<32x32xf32>, vector<2x32xf32> -> vector<2x32xf32>
    %c14_269 = arith.constant 14 : index
    %c0_270 = arith.constant 0 : index
    %478 = vector.load %arg8[%c14_269, %c0_270] : memref<24x32xf32, #tpu.memory_space<vmem>>, vector<1x32xf32>
    %479 = vector.broadcast %478 : vector<1x32xf32> to vector<2x32xf32>
    %480 = arith.addf %477, %479 : vector<2x32xf32>
    %481 = math.tanh %480 : vector<2x32xf32>
    %c17_271 = arith.constant 17 : index
    %c0_272 = arith.constant 0 : index
    %482 = vector.load %arg8[%c17_271, %c0_272] : memref<24x32xf32, #tpu.memory_space<vmem>>, vector<1x32xf32>
    %483 = vector.broadcast %482 : vector<1x32xf32> to vector<2x32xf32>
    %484 = arith.subf %481, %483 : vector<2x32xf32>
    %c18_273 = arith.constant 18 : index
    %c0_274 = arith.constant 0 : index
    %485 = vector.load %arg8[%c18_273, %c0_274] : memref<24x32xf32, #tpu.memory_space<vmem>>, vector<1x32xf32>
    %cst_275 = arith.constant 9.99999974E-6 : f32
    %486 = vector.broadcast %cst_275 : f32 to vector<1x32xf32>
    %487 = arith.addf %485, %486 : vector<1x32xf32>
    %488 = math.rsqrt %487 : vector<1x32xf32>
    %489 = vector.broadcast %488 : vector<1x32xf32> to vector<2x32xf32>
    %490 = arith.mulf %484, %489 : vector<2x32xf32>
    %c15_276 = arith.constant 15 : index
    %c0_277 = arith.constant 0 : index
    %491 = vector.load %arg8[%c15_276, %c0_277] : memref<24x32xf32, #tpu.memory_space<vmem>>, vector<1x32xf32>
    %492 = vector.broadcast %491 : vector<1x32xf32> to vector<2x32xf32>
    %493 = arith.mulf %490, %492 : vector<2x32xf32>
    %c16_278 = arith.constant 16 : index
    %c0_279 = arith.constant 0 : index
    %494 = vector.load %arg8[%c16_278, %c0_279] : memref<24x32xf32, #tpu.memory_space<vmem>>, vector<1x32xf32>
    %495 = vector.broadcast %494 : vector<1x32xf32> to vector<2x32xf32>
    %496 = arith.addf %493, %495 : vector<2x32xf32>
    %c2_280 = arith.constant 2 : index
    %c0_281 = arith.constant 0 : index
    %c0_282 = arith.constant 0 : index
    %497 = vector.load %arg7[%c2_280, %c0_281, %c0_282] : memref<3x32x128xf32, #tpu.memory_space<vmem>>, vector<1x32x128xf32>
    %498 = vector.shape_cast %497 : vector<1x32x128xf32> to vector<32x128xf32>
    %cst_283 = arith.constant dense<0.000000e+00> : vector<2x128xf32>
    %499 = tpu.matmul %496, %498, %cst_283 {dimension_numbers = #tpu.dot_dimension_numbers<[1], [0], [0], [1], [0, 0, 1, 1], [], []>} : vector<2x32xf32>, vector<32x128xf32>, vector<2x128xf32> -> vector<2x128xf32>
    %c2_284 = arith.constant 2 : index
    %c0_285 = arith.constant 0 : index
    %500 = vector.load %arg9[%c2_284, %c0_285] : memref<8x128xf32, #tpu.memory_space<vmem>>, vector<1x128xf32>
    %501 = vector.broadcast %500 : vector<1x128xf32> to vector<2x128xf32>
    %502 = arith.addf %499, %501 : vector<2x128xf32>
    %cst_286 = arith.constant 0.000000e+00 : f32
    %503 = vector.broadcast %cst_286 : f32 to vector<2x128xf32>
    %504 = arith.maximumf %502, %503 : vector<2x128xf32>
    %505 = arith.negf %504 : vector<2x128xf32>
    %506 = math.exp %505 : vector<2x128xf32>
    %cst_287 = arith.constant 1.000000e+00 : f32
    %507 = vector.broadcast %cst_287 : f32 to vector<2x128xf32>
    %508 = arith.addf %507, %506 : vector<2x128xf32>
    %509 = arith.divf %507, %508 : vector<2x128xf32>
    %c0_288 = arith.constant 0 : index
    %c0_289 = arith.constant 0 : index
    %510 = vector.load %arg10[%c0_288, %c0_289] : memref<2x128xf32, #tpu.memory_space<vmem>>, vector<2x128xf32>
    tpu.vector_store %arg10[%c0_288, %c0_289], %509 {strides = array<i32>} : memref<2x128xf32, #tpu.memory_space<vmem>>, vector<2x128xf32>,
    return
  }
  func.func @transform_0(%arg0: i32) -> (i32, i32) {
    %c0_i32 = arith.constant 0 : i32
    %c0_i32_0 = arith.constant 0 : i32
    %c0_i32_1 = arith.constant 0 : i32
    return %c0_i32, %c0_i32_0 : i32, i32
  }
  func.func @transform_1(%arg0: i32) -> (i32, i32) {
    %c0_i32 = arith.constant 0 : i32
    %c0_i32_0 = arith.constant 0 : i32
    %c0_i32_1 = arith.constant 0 : i32
    return %c0_i32, %c0_i32_0 : i32, i32
  }
  func.func @transform_2(%arg0: i32) -> (i32, i32) {
    %c0_i32 = arith.constant 0 : i32
    %c0_i32_0 = arith.constant 0 : i32
    %c0_i32_1 = arith.constant 0 : i32
    return %c0_i32, %c0_i32_0 : i32, i32
  }
  func.func @transform_3(%arg0: i32) -> (i32, i32, i32) {
    %c0_i32 = arith.constant 0 : i32
    %c0_i32_0 = arith.constant 0 : i32
    %c0_i32_1 = arith.constant 0 : i32
    %c0_i32_2 = arith.constant 0 : i32
    return %c0_i32, %c0_i32_0, %c0_i32_1 : i32, i32, i32
  }
  func.func @transform_4(%arg0: i32) -> (i32, i32) {
    %c0_i32 = arith.constant 0 : i32
    %c0_i32_0 = arith.constant 0 : i32
    %c0_i32_1 = arith.constant 0 : i32
    return %c0_i32, %c0_i32_0 : i32, i32
  }
  func.func @transform_5(%arg0: i32) -> (i32, i32) {
    %c0_i32 = arith.constant 0 : i32
    %c0_i32_0 = arith.constant 0 : i32
    %c0_i32_1 = arith.constant 0 : i32
    return %c0_i32, %c0_i32_0 : i32, i32
  }
  func.func @transform_6(%arg0: i32) -> (i32, i32, i32) {
    %c0_i32 = arith.constant 0 : i32
    %c0_i32_0 = arith.constant 0 : i32
    %c0_i32_1 = arith.constant 0 : i32
    %c0_i32_2 = arith.constant 0 : i32
    return %c0_i32, %c0_i32_0, %c0_i32_1 : i32, i32, i32
  }
  func.func @transform_7(%arg0: i32) -> (i32, i32) {
    %c0_i32 = arith.constant 0 : i32
    %c0_i32_0 = arith.constant 0 : i32
    %c0_i32_1 = arith.constant 0 : i32
    return %c0_i32, %c0_i32_0 : i32, i32
  }
  func.func @transform_8(%arg0: i32) -> (i32, i32) {
    %c0_i32 = arith.constant 0 : i32
    %c0_i32_0 = arith.constant 0 : i32
    %c0_i32_1 = arith.constant 0 : i32
    return %c0_i32, %c0_i32_0 : i32, i32
  }
  func.func @transform_9(%arg0: i32) -> (i32, i32) {
    %c0_i32 = arith.constant 0 : i32
    %c0_i32_0 = arith.constant 0 : i32
    %c0_i32_1 = arith.constant 0 : i32
    return %c0_i32, %c0_i32_0 : i32, i32
  }
}

</mosaic_0001>

<bundles_post_ra>
// kernel: sentiment_classifier_forward.1
= control target key start
LH: loop header
LB: loop body
LE: loop exit
PB: predicated region body
PF: predicated region fallthrough
CT: control target
= control target key end

     0   :  { %v3036_v2 = vmov 0   ;;  %s4099_s0 = inlined_call_operand.vmem [shape: s32[16,1], index: 0, kind: input, shape index: {}]   ;;  %s4100_s1 = inlined_call_operand.vmem [shape: f32[1,16], index: 1, kind: input, shape index: {}]   ;;  %s4101_s2 = inlined_call_operand.vmem [shape: f32[18,16], index: 2, kind: input, shape index: {}]   ;;  %s4102_s3 = inlined_call_operand.vmem [shape: f32[24,32,8], index: 3, kind: input, shape index: {}]   ;;  %s4103_s4 = inlined_call_operand.vmem [shape: f32[24,8], index: 4, kind: input, shape index: {}]   ;;  %s4104_s5 = inlined_call_operand.vmem [shape: f32[496,32], index: 5, kind: input, shape index: {}]   ;;  %s4105_s6 = inlined_call_operand.vmem [shape: f32[3,32,128], index: 6, kind: input, shape index: {}]   ;;  %s4106_s7 = inlined_call_operand.vmem [shape: f32[24,32], index: 7, kind: input, shape index: {}]   ;;  %s4107_s8 = inlined_call_operand.vmem [shape: f32[8,128], index: 8, kind: input, shape index: {}]   ;;  %s4108_s9 = inlined_call_operand.hbm [shape: f32[2,128], index: 9, kind: output, shape index: {}]  }
   0x1   :  { %v33_v0 = vld [vmem:[%s4099_s0] sm:$0xff]  ;;  %v64_v1 = vld [vmem:[%s4104_s5 + $0x78] sm:$0xff]  ;;  %2862 = vset.pattern.permute.xlu0 %v3036_v2  ;;  %v63_v3 = vld [vmem:[%s4104_s5 + $0x70] sm:$0xff] }
   0x2   :  { %67 = vmatpush.msra.mxu0 %v64_v1  ;;  %38 = vperm.xlu0 %2862, %v33_v0   ;;  %v62_v4 = vld [vmem:[%s4104_s5 + $0x68] sm:$0xff]  ;;  %v61_v5 = vld [vmem:[%s4104_s5 + $0x60] sm:$0xff]  ;;  %v60_v7 = vld [vmem:[%s4104_s5 + $0x58] sm:$0xff] }
   0x3   :  { %v34_v6 = vld [vmem:[%s4099_s0 + $0x8] sm:$0xff]  ;;  %v59_v8 = vld [vmem:[%s4104_s5 + $0x50] sm:$0xff]  ;;  %v57_v10 = vld [vmem:[%s4104_s5 + $0x40] sm:$0xff] }
   0x4   :  { %68 = vmatpush.msra.mxu0 %v63_v3  ;;  %v58_v9 = vld [vmem:[%s4104_s5 + $0x48] sm:$0xff]  ;;  %v56_v11 = vld [vmem:[%s4104_s5 + $0x38] sm:$0xff]  ;;  %v55_v12 = vld [vmem:[%s4104_s5 + $0x30] sm:$0xff] }
   0x5   :  { %v54_v13 = vld [vmem:[%s4104_s5 + $0x28] sm:$0xff]  ;;  %v53_v14 = vld [vmem:[%s4104_s5 + $0x20] sm:$0xff] }
   0x6   :  { %69 = vmatpush.msra.mxu0 %v62_v4 }
   0x8   :  { %70 = vmatpush.msra.mxu0 %v61_v5 }
   0xa   :  { %71 = vmatpush.msra.mxu0 %v60_v7  ;;  %41 = vperm.xlu0 %2862, %v34_v6  }
   0xc   :  { %72 = vmatpush.msra.mxu0 %v59_v8 }
   0xe   :  { %73 = vmatpush.msra.mxu0 %v58_v9 }
  0x10   :  { %74 = vmatpush.msra.mxu0 %v57_v10 }
  0x12   :  { %75 = vmatpush.msra.mxu0 %v56_v11 }
  0x14   :  { %76 = vmatpush.msra.mxu0 %v55_v12 }
  0x15   :  { %14 = vsyncpa [#allocation3], 0  ;;  %v52_v15 = vld [vmem:[%s4104_s5 + $0x18] sm:$0xff]  ;;  %v51_v16 = vld [vmem:[%s4104_s5 + $0x10] sm:$0xff]  ;;  %v35_v19 = vlaneseq  ;;  %v3037_v22 = vmov 1.0   ;;  %vm92_vm2 = vcmask 261120  }
  0x16   :  { %77 = vmatpush.msra.mxu0 %v54_v13  ;;  %v50_v17 = vld [vmem:[%s4104_s5 + $0x8] sm:$0xff]  ;;  %v49_v18 = vld [vmem:[%s4104_s5] sm:$0xff]  ;;  %v3038_v32 = vmov 32.0   ;;  %v164_v49 = vld [vmem:[%s4102_s3 + $0x18] sm:$0xff]  ;;  %vm256_vm10 = vcmask 64512   ;;  %vm296_vm11 = vcmask 130048  }
  0x17   :  { %v36_v20 = vand.u32 127, %v35_v19  ;;  %v65_v24 = vld [vmem:[%s4104_s5 + $0x80] sm:$0xff]  ;;  %v66_v28 = vld [vmem:[%s4104_s5 + $0x88] sm:$0xff]  ;;  %2908 = vrcp.f32 %v3038_v32  ;;  %v2639_v50 = vld [vmem:[%s4102_s3 + $0x38] sm:$0xff]  ;;  %185 = vmatpush.msra.mxu1 %v164_v49 }
  0x18   :  { %78 = vmatpush.msra.mxu0 %v53_v14  ;;  %215 = vmatpush.msra.mxu2 %v2639_v50  ;;  %v163_v51 = vld [vmem:[%s4102_s3 + $0x10] sm:$0xff]  ;;  %v162_v53 = vld [vmem:[%s4102_s3 + $0x8] sm:$0xff]  ;;  %v161_v55 = vld [vmem:[%s4102_s3] sm:$0xff] }
  0x19   :  { %v2638_v52 = vld [vmem:[%s4102_s3 + $0x30] sm:$0xff]  ;;  %186 = vmatpush.msra.mxu1 %v163_v51  ;;  %v2637_v54 = vld [vmem:[%s4102_s3 + $0x28] sm:$0xff]  ;;  %v2636_v56 = vld [vmem:[%s4102_s3 + $0x20] sm:$0xff] }
  0x1a   :  { %79 = vmatpush.msra.mxu0 %v52_v15  ;;  %216 = vmatpush.msra.mxu2 %v2638_v52  ;;  %v2645_v57 = vld [vmem:[%s4102_s3 + $0x58] sm:$0xff]  ;;  %v2644_v58 = vld [vmem:[%s4102_s3 + $0x50] sm:$0xff]  ;;  %v2643_v61 = vld [vmem:[%s4102_s3 + $0x48] sm:$0xff] }
  0x1b   :  { %187 = vmatpush.msra.mxu1 %v162_v53  ;;  %2854 = vmatpush.msra.mxu3 %v2645_v57  ;;  %v2642_v63 = vld [vmem:[%s4102_s3 + $0x40] sm:$0xff] }
  0x1c   :  { %80 = vmatpush.msra.mxu0 %v51_v16  ;;  %217 = vmatpush.msra.mxu2 %v2637_v54  ;;  %v2863_v11 = vld [vmem:[%s4106_s7] ss:$0 sm:$0xff]  ;;  %v2864_v14 = vld [vmem:[%s4106_s7 + $0x1] ss:$0 sm:$0xff]  ;;  %v154_v54 = vld [vmem:[%s4101_s2 + $0x8] sm:$0xff] }
  0x1d   :  { %v2909_v33 = vpop.eup %2908  ;;  %188 = vmatpush.msra.mxu1 %v161_v55  ;;  %2855 = vmatpush.msra.mxu3 %v2644_v58  ;;  %v153_v49 = vld [vmem:[%s4101_s2] sm:$0xff] }
  0x1e   :  { %81 = vmatpush.msra.mxu0 %v50_v17  ;;  %v100_v34 = vmul.f32 32.0, %v2909_v33  ;;  %vm104_vm3 = vweird.f32 %v2909_v33  ;;  %218 = vmatpush.msra.mxu2 %v2636_v56 }
  0x1f   :  { %2856 = vmatpush.msra.mxu3 %v2643_v61 }
  0x20   :  { %82 = vmatpush.msra.mxu0 %v49_v18  ;;  %v101_v35 = vsub.f32 1.0, %v100_v34  ;;  %245 = vmatpush.msrb.mxu2 %v2645_v57 }
  0x21   :  { %2857 = vmatpush.msra.mxu3 %v2642_v63 }
  0x22   :  { %v102_v36 = vmul.f32 %v2909_v33, %v101_v35  ;;  %246 = vmatpush.msrb.mxu2 %v2644_v58  ;;  %v2659_v35 = vld [vmem:[%s4102_s3 + $0x78] sm:$0xff] }
  0x24   :  { %v103_v37 = vadd.f32 %v2909_v33, %v102_v36  ;;  %247 = vmatpush.msrb.mxu2 %v2643_v61 }
  0x26   :  { %v3152_v38 = vsel %vm104_vm3, %v2909_v33, %v103_v37  ;;  %248 = vmatpush.msrb.mxu2 %v2642_v63  ;;  %v2865_v33 = vld [vmem:[%s4103_s4] ss:$0 sm:$0xff] }
  0x74   :  { %v39_v21 = vpop.permute.xlu0 %38 }
  0x75   :  { %vm43_vm0 = vcmp.eq.s32.totalorder %v36_v20, %v39_v21 }
  0x76   :  { %2632 = vmatmul.msk.f32.vlgmr.msra.gmra.mxu0 %vm43_vm0, %v3037_v22 }
  0x7c   :  { %v42_v23 = vpop.permute.xlu0 %41 }
  0x7d   :  { %vm44_vm1 = vcmp.eq.s32.totalorder %v36_v20, %v42_v23 }
  0x7e   :  { %2633 = vmatmul.msk.f32.gmra.mxu0 %vm44_vm1, %v3037_v22 }
  0xf3   :  { %v84_v25 = vpop.f32.mrf.mxu0 }
  0xf4   :  { %v85_v26 = vadd.f32 %v84_v25, %v65_v24 }
  0xf6   :  { %v93_v27 = vsel %vm92_vm2, %v85_v26, 0.0 }
  0xf7   :  { %94 = vadd.xlane.f32.xlu1 %v93_v27  ;;  %v2866_v27 = vld [vmem:[%s4103_s4 + $0x1] ss:$0 sm:$0xff] }
  0xfb   :  { %v87_v29 = vpop.f32.mrf.mxu0 }
  0xfc   :  { %v88_v30 = vadd.f32 %v87_v29, %v66_v28 }
  0xfe   :  { %v96_v31 = vsel %vm92_vm2, %v88_v30, 0.0 }
  0xff   :  { %97 = vadd.xlane.f32.xlu1 %v96_v31 }
 0x16a   :  { %v95_v39 = vpop.xlane.xlu1 %94 }
 0x16b   :  { %v106_v40 = vmul.f32 %v3152_v38, %v95_v39  ;;  %v2658_v39 = vld [vmem:[%s4102_s3 + $0x70] sm:$0xff] }
 0x16d   :  { %v108_v41 = vsub.f32 %v85_v26, %v106_v40  ;;  %v2867_v26 = vld [vmem:[%s4103_s4 + $0x2] ss:$0 sm:$0xff] }
 0x16f   :  { %v110_v42 = vmul.f32 %v108_v41, %v108_v41 }
 0x171   :  { %v112_v43 = vsel %vm92_vm2, %v110_v42, 0.0  ;;  %v2656_v42 = vld [vmem:[%s4102_s3 + $0x60] sm:$0xff] }
 0x172   :  { %113 = vadd.xlane.f32.xlu2 %v112_v43  ;;  %v98_v44 = vpop.xlane.xlu1 %97 }
 0x173   :  { %v107_v45 = vmul.f32 %v3152_v38, %v98_v44 }
 0x175   :  { %v3157_v46 = vsub.f32 %v88_v30, %v107_v45  ;;  %v150_v45 = vld [vmem:[%s4100_s1] sm:$0x1] }
 0x177   :  { %v111_v47 = vmul.f32 %v3157_v46, %v3157_v46 }
 0x179   :  { %v115_v48 = vsel %vm92_vm2, %v111_v47, 0.0 }
 0x17a   :  { %116 = vadd.xlane.f32.xlu2 %v115_v48 }
 0x1e5   :  { %v114_v59 = vpop.xlane.xlu2 %113 }
 0x1e6   :  { %v118_v60 = vmul.f32 %v114_v59, %v3152_v38 }
 0x1e8   :  { %v120_v62 = vadd.f32 1e-12, %v118_v60 }
 0x1ea   :  { %2910 = vrsqrt.f32 %v120_v62  ;;  %vm128_vm5 = vweird.f32 %v120_v62 }
 0x1ed   :  { %v117_v0 = vpop.xlane.xlu2 %116 }
 0x1ee   :  { %v119_v1 = vmul.f32 %v117_v0, %v3152_v38 }
 0x1f0   :  { %v2911_v2 = vpop.eup %2910  ;;  %v121_v3 = vadd.f32 1e-12, %v119_v1 }
 0x1f1   :  { %v123_v4 = vmul.f32 %v2911_v2, %v120_v62  ;;  %vm129_vm4 = vweird.f32 %v2911_v2 }
 0x1f2   :  { %2912 = vrsqrt.f32 %v121_v3  ;;  %vm130_vm6 = vmor %vm128_vm5, %vm129_vm4  ;;  %vm138_vm8 = vweird.f32 %v121_v3 }
 0x1f3   :  { %v124_v5 = vmul.f32 %v2911_v2, %v123_v4 }
 0x1f5   :  { %v125_v6 = vmul.f32 0.5, %v124_v5 }
 0x1f7   :  { %v126_v7 = vsub.f32 1.5, %v125_v6 }
 0x1f8   :  { %v2913_v8 = vpop.eup %2912 }
 0x1f9   :  { %v127_v9 = vmul.f32 %v2911_v2, %v126_v7  ;;  %v133_v10 = vmul.f32 %v2913_v8, %v121_v3  ;;  %vm139_vm7 = vweird.f32 %v2913_v8  ;;  %v2665_v7 = vld [vmem:[%s4102_s3 + $0x98] sm:$0xff] }
 0x1fa   :  { %vm140_vm9 = vmor %vm138_vm8, %vm139_vm7 }
 0x1fb   :  { %v131_v12 = vsel %vm130_vm6, %v2911_v2, %v127_v9  ;;  %v134_v13 = vmul.f32 %v2913_v8, %v133_v10  ;;  %v2663_v9 = vld [vmem:[%s4102_s3 + $0x88] sm:$0xff] }
 0x1fc   :  { %v142_v15 = vmul.f32 %v131_v12, %v108_v41  ;;  %v2657_v41 = vld [vmem:[%s4102_s3 + $0x68] sm:$0xff] }
 0x1fd   :  { %v135_v16 = vmul.f32 0.5, %v134_v13 }
 0x1fe   :  { %v145_v17 = vmul.f32 %v2863_v11, %v142_v15 }
 0x1ff   :  { %v136_v18 = vsub.f32 1.5, %v135_v16 }
 0x200   :  { %v3206_v19 = vadd.f32 %v2864_v14, %v145_v17 }
 0x201   :  { %v137_v20 = vmul.f32 %v2913_v8, %v136_v18 }
 0x202   :  { %2634 = vmatmul.msk.f32.vlgmr.msra.gmra.mxu1 %vm92_vm2, %v3206_v19  ;;  %2640 = vmatmul.msk.f32.vlgmr.msra.gmra.mxu2 %vm92_vm2, %v3206_v19 }
 0x203   :  { %v141_v21 = vsel %vm140_vm9, %v2913_v8, %v137_v20  ;;  %v2664_v8 = vld [vmem:[%s4102_s3 + $0x90] sm:$0xff] }
 0x204   :  { %v143_v22 = vmul.f32 %v141_v21, %v3157_v46  ;;  %v151_v46 = vsub.f32 1.0, %v150_v45  ;;  %v2684_v45 = vld [vmem:[%s4102_s3 + $0xd0] sm:$0xff] }
 0x206   :  { %v146_v23 = vmul.f32 %v2863_v11, %v143_v22  ;;  %v152_v47 = vmul.f32 -10000.0, %v151_v46  ;;  %v2662_v11 = vld [vmem:[%s4102_s3 + $0x80] sm:$0xff]  ;;  %v2683_v46 = vld [vmem:[%s4102_s3 + $0xc8] sm:$0xff] }
 0x208   :  { %v3213_v24 = vadd.f32 %v2864_v14, %v146_v23  ;;  %v156_v48 = vperm.slane %v152_v47, 0  ;;  %v2682_v47 = vld [vmem:[%s4102_s3 + $0xc0] sm:$0xff] }
 0x20a   :  { %2635 = vmatmul.msk.f32.gmra.mxu1 %vm92_vm2, %v3213_v24  ;;  %2641 = vmatmul.msk.f32.gmra.mxu2 %vm92_vm2, %v3213_v24  ;;  %v3258_v50 = vadd.f32 %v156_v48, %v153_v49  ;;  %v3265_v56 = vadd.f32 %v156_v48, %v154_v54 }
 0x20b   :  { %2647 = vmatmul.msk.f32.vlgmr.msra.gmra.mxu3 %vm92_vm2, %v3213_v24 }
 0x212   :  { %2646 = vmatmul.msk.f32.vlgmr.msrb.gmra.mxu2 %vm92_vm2, %v3206_v19 }
 0x27f   :  { %v190_v32 = vpop.f32.mrf.mxu1 }
 0x280   :  { %v191_v36 = vadd.f32 %v2865_v33, %v190_v32 }
 0x285   :  { %v220_v25 = vpop.f32.mrf.mxu2 }
 0x286   :  { %v221_v34 = vadd.f32 %v2866_v27, %v220_v25 }
 0x287   :  { %v193_v43 = vpop.f32.mrf.mxu1 }
 0x288   :  { %v194_v44 = vadd.f32 %v2865_v33, %v193_v43  ;;  %v2685_v43 = vld [vmem:[%s4102_s3 + $0xd8] sm:$0xff] }
 0x28d   :  { %v223_v28 = vpop.f32.mrf.mxu2 }
 0x28e   :  { %v224_v29 = vadd.f32 %v2866_v27, %v223_v28  ;;  %v253_v30 = vpop.f32.mrf.mxu3 }
 0x28f   :  { %v254_v31 = vadd.f32 %v2867_v26, %v253_v30 }
 0x290   :  { %2648 = vmatpush.xpose.msk.msrb.mxu1 %vm256_vm10, %v224_v29 }
 0x291   :  { %365 = vmatpush.msra.mxu2 %v254_v31 }
 0x294   :  { %2649 = vmatpush.xpose.msk.msrb.mxu1 %vm256_vm10, %v221_v34 }
 0x295   :  { %v250_v37 = vpop.f32.mrf.mxu2 }
 0x296   :  { %v251_v40 = vadd.f32 %v2867_v26, %v250_v37  ;;  %v374_v37 = vld [vmem:[%s4104_s5 + $0x90] sm:$0xff] }
 0x297   :  { %2650 = vmatmul.msk.f32.vlgmr.msrb.gmra.mxu1 %vm256_vm10, %v191_v36  ;;  %396 = vmatpush.msrb.mxu3 %v374_v37 }
 0x298   :  { %426 = vmatpush.msra.mxu1 %v2659_v35  ;;  %366 = vmatpush.msra.mxu2 %v251_v40  ;;  %v2670_v40 = vld [vmem:[%s4102_s3 + $0xb0] sm:$0xff] }
 0x29a   :  { %427 = vmatpush.msra.mxu1 %v2658_v39  ;;  %456 = vmatpush.msrb.mxu2 %v2665_v7  ;;  %v2671_v39 = vld [vmem:[%s4102_s3 + $0xb8] sm:$0xff] }
 0x29b   :  { %486 = vmatpush.msra.mxu3 %v2671_v39  ;;  %v2694_v39 = vld [vmem:[%s4102_s3 + $0x100] sm:$0xff] }
 0x29c   :  { %428 = vmatpush.msra.mxu1 %v2657_v41  ;;  %457 = vmatpush.msrb.mxu2 %v2664_v8  ;;  %v2669_v41 = vld [vmem:[%s4102_s3 + $0xa8] sm:$0xff] }
 0x29d   :  { %487 = vmatpush.msra.mxu3 %v2670_v40 }
 0x29e   :  { %429 = vmatpush.msra.mxu1 %v2656_v42  ;;  %458 = vmatpush.msrb.mxu2 %v2663_v9  ;;  %v2668_v42 = vld [vmem:[%s4102_s3 + $0xa0] sm:$0xff] }
 0x29f   :  { %2651 = vmatmul.msk.f32.gmra.mxu1 %vm256_vm10, %v194_v44  ;;  %488 = vmatpush.msra.mxu3 %v2669_v41 }
 0x2a0   :  { %459 = vmatpush.msrb.mxu2 %v2662_v11 }
 0x2a1   :  { %489 = vmatpush.msra.mxu3 %v2668_v42 }
 0x2a7   :  { %2660 = vmatmul.msk.f32.vlgmr.msra.gmra.mxu1 %vm92_vm2, %v3206_v19 }
 0x2af   :  { %2661 = vmatmul.msk.f32.gmra.mxu1 %vm92_vm2, %v3213_v24 }
 0x314   :  { %v286_v51 = vpop.f32.mrf.mxu1 }
 0x315   :  { %v292_v52 = vmul.f32 0.35355338, %v286_v51  ;;  %v2869_v51 = vld [vmem:[%s4103_s4 + $0x4] ss:$0 sm:$0xff] }
 0x317   :  { %v294_v53 = vadd.f32 %v292_v52, %v3258_v50 }
 0x319   :  { %v297_v55 = vsel %vm296_vm11, %v294_v53, -inf }
 0x31a   :  { %298 = vmax.xlane.f32.xlu0 %v297_v55  ;;  %v2868_v55 = vld [vmem:[%s4103_s4 + $0x3] ss:$0 sm:$0xff] }
 0x31c   :  { %v289_v57 = vpop.f32.mrf.mxu1 }
 0x31d   :  { %v293_v58 = vmul.f32 0.35355338, %v289_v57 }
 0x31f   :  { %v295_v59 = vadd.f32 %v293_v58, %v3265_v56  ;;  %v2691_v58 = vld [vmem:[%s4102_s3 + $0xf8] sm:$0xff] }
 0x321   :  { %v300_v60 = vsel %vm296_vm11, %v295_v59, -inf }
 0x322   :  { %301 = vmax.xlane.f32.xlu1 %v300_v60  ;;  %v2690_v60 = vld [vmem:[%s4102_s3 + $0xf0] sm:$0xff] }
 0x324   :  { %v431_v54 = vpop.f32.mrf.mxu1 }
 0x38d   :  { %v299_v61 = vpop.xlane.xlu0 %298 }
 0x38e   :  { %v303_v62 = vsub.f32 %v294_v53, %v299_v61  ;;  %v2689_v61 = vld [vmem:[%s4102_s3 + $0xe8] sm:$0xff] }
 0x390   :  { %v305_v63 = vmul.f32 1.442695, %v303_v62  ;;  %v2688_v62 = vld [vmem:[%s4102_s3 + $0xe0] sm:$0xff] }
 0x392   :  { %2914 = vpow2.f32 %v305_v63  ;;  %v434_v63 = vpop.f32.mrf.mxu1 }
 0x395   :  { %v302_v0 = vpop.xlane.xlu1 %301 }
 0x396   :  { %v304_v1 = vsub.f32 %v295_v59, %v302_v0  ;;  %v432_v59 = vadd.f32 %v2868_v55, %v431_v54  ;;  %v435_v0 = vadd.f32 %v2868_v55, %v434_v63  ;;  %v2709_v63 = vld [vmem:[%s4102_s3 + $0x128] sm:$0xff] }
 0x398   :  { %v2915_v2 = vpop.eup %2914  ;;  %v307_v3 = vmul.f32 1.442695, %v304_v1 }
 0x399   :  { %v309_v4 = vsel %vm296_vm11, %v2915_v2, 0.0 }
 0x39a   :  { %2916 = vpow2.f32 %v307_v3  ;;  %310 = vadd.xlane.f32.xlu2 %v309_v4  ;;  %v613_v4 = vld [vmem:[%s4104_s5 + $0x98] sm:$0xff] }
 0x3a0   :  { %v2917_v5 = vpop.eup %2916 }
 0x3a1   :  { %v312_v6 = vsel %vm296_vm11, %v2917_v5, 0.0 }
 0x3a2   :  { %313 = vadd.xlane.f32.xlu1 %v312_v6 }
 0x40d   :  { %v311_v10 = vpop.xlane.xlu2 %310 }
 0x40e   :  { %2918 = vrcp.f32 %v311_v10  ;;  %v326_v16 = vand.u32 2147483648, %v311_v10  ;;  %v324_v18 = vand.u32 2147483647, %v311_v10  ;;  %vm320_vm13 = vweird.f32 %v311_v10 }
 0x410   :  { %v327_v22 = vor.u32 1.1754944e-38, %v326_v16  ;;  %vm325_vm15 = vcmp.eq.f32.partialorder %v324_v18, 8.507059e+37  ;;  %v2873_v18 = vld [vmem:[%s4103_s4 + $0x7] ss:$0 sm:$0xff] }
 0x414   :  { %v2919_v12 = vpop.eup %2918 }
 0x415   :  { %v316_v13 = vmul.f32 %v2919_v12, %v311_v10  ;;  %v314_v14 = vpop.xlane.xlu1 %313  ;;  %vm321_vm12 = vweird.f32 %v2919_v12 }
 0x416   :  { %2920 = vrcp.f32 %v314_v14  ;;  %vm322_vm14 = vmor %vm320_vm13, %vm321_vm12  ;;  %v341_v29 = vand.u32 2147483648, %v314_v14  ;;  %v339_v31 = vand.u32 2147483647, %v314_v14  ;;  %vm335_vm1 = vweird.f32 %v314_v14 }
 0x417   :  { %v317_v15 = vsub.f32 1.0, %v316_v13 }
 0x418   :  { %v342_v33 = vor.u32 1.1754944e-38, %v341_v29  ;;  %vm340_vm4 = vcmp.eq.f32.partialorder %v339_v31, 8.507059e+37 }
 0x419   :  { %v318_v17 = vmul.f32 %v2919_v12, %v317_v15 }
 0x41b   :  { %v319_v20 = vadd.f32 %v2919_v12, %v318_v17 }
 0x41c   :  { %v2921_v21 = vpop.eup %2920 }
 0x41d   :  { %v323_v23 = vsel %vm322_vm14, %v2919_v12, %v319_v20  ;;  %v331_v25 = vmul.f32 %v2921_v21, %v314_v14  ;;  %vm336_vm0 = vweird.f32 %v2921_v21 }
 0x41e   :  { %v328_v26 = vsel %vm325_vm15, %v327_v22, %v323_v23  ;;  %vm337_vm3 = vmor %vm335_vm1, %vm336_vm0 }
 0x41f   :  { %v332_v27 = vsub.f32 1.0, %v331_v25  ;;  %v329_v28 = vmul.f32 %v2915_v2, %v328_v26 }
 0x421   :  { %v333_v30 = vmul.f32 %v2921_v21, %v332_v27  ;;  %2652 = vmatmul.msk.f32.vlgmr.msra.gmra.mxu2 %vm296_vm11, %v329_v28 }
 0x422   :  { %635 = vmatpush.msra.mxu2 %v613_v4  ;;  %v2708_v4 = vld [vmem:[%s4102_s3 + $0x120] sm:$0xff] }
 0x423   :  { %v334_v32 = vadd.f32 %v2921_v21, %v333_v30 }
 0x425   :  { %v338_v34 = vsel %vm337_vm3, %v2921_v21, %v334_v32 }
 0x426   :  { %v343_v35 = vsel %vm340_vm4, %v342_v33, %v338_v34  ;;  %v2697_v34 = vld [vmem:[%s4102_s3 + $0x118] sm:$0xff] }
 0x427   :  { %v344_v36 = vmul.f32 %v2917_v5, %v343_v35  ;;  %v2871_v5 = vld [vmem:[%s4103_s4 + $0x5] ss:$0 sm:$0xff]  ;;  %v2696_v35 = vld [vmem:[%s4102_s3 + $0x110] sm:$0xff] }
 0x429   :  { %2653 = vmatmul.msk.f32.gmra.mxu2 %vm296_vm11, %v344_v36  ;;  %v2695_v36 = vld [vmem:[%s4102_s3 + $0x108] sm:$0xff] }
 0x431   :  { %2666 = vmatmul.msk.f32.vlgmr.msrb.gmra.mxu2 %vm92_vm2, %v3206_v19 }
 0x439   :  { %2667 = vmatmul.msk.f32.gmra.mxu2 %vm92_vm2, %v3213_v24 }
 0x4a4   :  { %v368_v44 = vpop.f32.mrf.mxu2 }
 0x4a5   :  { %2654 = vmatmul.msk.f32.vlgmr.msrb.gmra.mxu3 %vm256_vm10, %v368_v44 }
 0x4a6   :  { %664 = vmatpush.msrb.mxu3 %v2685_v43 }
 0x4a8   :  { %665 = vmatpush.msrb.mxu3 %v2684_v45 }
 0x4aa   :  { %666 = vmatpush.msrb.mxu3 %v2683_v46 }
 0x4ac   :  { %v371_v48 = vpop.f32.mrf.mxu2  ;;  %667 = vmatpush.msrb.mxu3 %v2682_v47 }
 0x4ad   :  { %2655 = vmatmul.msk.f32.gmra.mxu3 %vm256_vm10, %v371_v48 }
 0x4b4   :  { %v461_v49 = vpop.f32.mrf.mxu2 }
 0x4b5   :  { %2672 = vmatmul.msk.f32.vlgmr.msra.gmra.mxu3 %vm92_vm2, %v3206_v19  ;;  %v462_v57 = vadd.f32 %v2869_v51, %v461_v49 }
 0x4bc   :  { %v464_v52 = vpop.f32.mrf.mxu2 }
 0x4bd   :  { %v465_v53 = vadd.f32 %v2869_v51, %v464_v52  ;;  %2673 = vmatmul.msk.f32.gmra.mxu3 %vm92_vm2, %v3213_v24 }
 0x4bf   :  { %2674 = vmatpush.xpose.msk.msrb.mxu0 %vm256_vm10, %v465_v53 }
 0x4c3   :  { %2675 = vmatpush.xpose.msk.msrb.mxu0 %vm256_vm10, %v462_v57  ;;  %v2711_v57 = vld [vmem:[%s4102_s3 + $0x138] sm:$0xff] }
 0x4c5   :  { %2686 = vmatmul.msk.f32.vlgmr.msrb.gmra.mxu3 %vm92_vm2, %v3206_v19 }
 0x4c6   :  { %2676 = vmatmul.msk.f32.vlgmr.msrb.gmra.mxu0 %vm256_vm10, %v432_v59 }
 0x4c7   :  { %694 = vmatpush.msra.mxu0 %v2691_v58 }
 0x4c9   :  { %695 = vmatpush.msra.mxu0 %v2690_v60 }
 0x4cb   :  { %696 = vmatpush.msra.mxu0 %v2689_v61  ;;  %v2710_v61 = vld [vmem:[%s4102_s3 + $0x130] sm:$0xff] }
 0x4cd   :  { %697 = vmatpush.msra.mxu0 %v2688_v62  ;;  %2687 = vmatmul.msk.f32.gmra.mxu3 %vm92_vm2, %v3213_v24 }
 0x4ce   :  { %2677 = vmatmul.msk.f32.gmra.mxu0 %vm256_vm10, %v435_v0 }
 0x4d6   :  { %2692 = vmatmul.msk.f32.vlgmr.msra.gmra.mxu0 %vm92_vm2, %v3206_v19 }
 0x4de   :  { %2693 = vmatmul.msk.f32.gmra.mxu0 %vm92_vm2, %v3213_v24 }
 0x528   :  { %v3352_v1 = vpop.f32.mrf.mxu3 }
 0x530   :  { %v3354_v2 = vpop.f32.mrf.mxu3 }
 0x538   :  { %v491_v3 = vpop.f32.mrf.mxu3 }
 0x539   :  { %v492_v8 = vadd.f32 %v2871_v5, %v491_v3 }
 0x540   :  { %v494_v6 = vpop.f32.mrf.mxu3 }
 0x541   :  { %v495_v7 = vadd.f32 %v2871_v5, %v494_v6 }
 0x543   :  { %v526_v9 = vpop.f32.mrf.mxu0  ;;  %604 = vmatpush.msrb.mxu1 %v495_v7  ;;  %v2717_v7 = vld [vmem:[%s4102_s3 + $0x158] sm:$0xff] }
 0x544   :  { %v532_v10 = vmul.f32 0.35355338, %v526_v9  ;;  %v2716_v9 = vld [vmem:[%s4102_s3 + $0x150] sm:$0xff] }
 0x545   :  { %605 = vmatpush.msrb.mxu1 %v492_v8 }
 0x546   :  { %v534_v11 = vadd.f32 %v532_v10, %v3258_v50  ;;  %v2715_v10 = vld [vmem:[%s4102_s3 + $0x148] sm:$0xff] }
 0x547   :  { %724 = vmatpush.msra.mxu1 %v2697_v34 }
 0x548   :  { %v536_v12 = vsel %vm296_vm11, %v534_v11, -inf }
 0x549   :  { %537 = vmax.xlane.f32.xlu2 %v536_v12  ;;  %725 = vmatpush.msra.mxu1 %v2696_v35 }
 0x54b   :  { %v529_v13 = vpop.f32.mrf.mxu0  ;;  %726 = vmatpush.msra.mxu1 %v2695_v36 }
 0x54c   :  { %v533_v14 = vmul.f32 0.35355338, %v529_v13  ;;  %v669_v13 = vpop.f32.mrf.mxu3 }
 0x54d   :  { %727 = vmatpush.msra.mxu1 %v2694_v39 }
 0x54e   :  { %v535_v15 = vadd.f32 %v533_v14, %v3265_v56  ;;  %v2872_v14 = vld [vmem:[%s4103_s4 + $0x6] ss:$0 sm:$0xff] }
 0x550   :  { %v539_v16 = vsel %vm296_vm11, %v535_v15, -inf }
 0x551   :  { %540 = vmax.xlane.f32.xlu1 %v539_v16 }
 0x553   :  { %v699_v17 = vpop.f32.mrf.mxu0 }
 0x554   :  { %v700_v22 = vadd.f32 %v2873_v18, %v699_v17  ;;  %v672_v17 = vpop.f32.mrf.mxu3 }
 0x55b   :  { %v702_v20 = vpop.f32.mrf.mxu0 }
 0x55c   :  { %v703_v21 = vadd.f32 %v2873_v18, %v702_v20  ;;  %v673_v18 = vadd.f32 %v2872_v14, %v672_v17  ;;  %v2874_v20 = vld [vmem:[%s4103_s4 + $0x8] ss:$0 sm:$0xff] }
 0x55e   :  { %2700 = vmatpush.xpose.msk.msrb.mxu2 %vm256_vm10, %v703_v21 }
 0x562   :  { %2701 = vmatpush.xpose.msk.msrb.mxu2 %vm256_vm10, %v700_v22 }
 0x5bc   :  { %v538_v23 = vpop.xlane.xlu2 %537 }
 0x5bd   :  { %v542_v25 = vsub.f32 %v534_v11, %v538_v23  ;;  %v2714_v11 = vld [vmem:[%s4102_s3 + $0x140] sm:$0xff] }
 0x5bf   :  { %v544_v26 = vmul.f32 1.442695, %v542_v25 }
 0x5c1   :  { %2922 = vpow2.f32 %v544_v26 }
 0x5c4   :  { %v541_v27 = vpop.xlane.xlu1 %540 }
 0x5c5   :  { %v543_v28 = vsub.f32 %v535_v15, %v541_v27  ;;  %v670_v15 = vadd.f32 %v2872_v14, %v669_v13  ;;  %v851_v27 = vld [vmem:[%s4104_s5 + $0xa0] sm:$0xff] }
 0x5c6   :  { %873 = vmatpush.msrb.mxu0 %v851_v27  ;;  %v2875_v27 = vld [vmem:[%s4103_s4 + $0x9] ss:$0 sm:$0xff] }
 0x5c7   :  { %v2923_v29 = vpop.eup %2922  ;;  %v546_v30 = vmul.f32 1.442695, %v543_v28 }
 0x5c8   :  { %v548_v31 = vsel %vm296_vm11, %v2923_v29, 0.0 }
 0x5c9   :  { %2924 = vpow2.f32 %v546_v30  ;;  %549 = vadd.xlane.f32.xlu2 %v548_v31 }
 0x5cf   :  { %v2925_v32 = vpop.eup %2924 }
 0x5d0   :  { %v551_v33 = vsel %vm296_vm11, %v2925_v32, 0.0 }
 0x5d1   :  { %552 = vadd.xlane.f32.xlu1 %v551_v33 }
 0x63c   :  { %v550_v37 = vpop.xlane.xlu2 %549 }
 0x63d   :  { %2926 = vrcp.f32 %v550_v37  ;;  %v565_v44 = vand.u32 2147483648, %v550_v37  ;;  %v563_v46 = vand.u32 2147483647, %v550_v37  ;;  %vm559_vm6 = vweird.f32 %v550_v37 }
 0x63f   :  { %v566_v49 = vor.u32 1.1754944e-38, %v565_v44  ;;  %vm564_vm8 = vcmp.eq.f32.partialorder %v563_v46, 8.507059e+37 }
 0x643   :  { %v2927_v40 = vpop.eup %2926 }
 0x644   :  { %v555_v41 = vmul.f32 %v2927_v40, %v550_v37  ;;  %v553_v42 = vpop.xlane.xlu1 %552  ;;  %vm560_vm5 = vweird.f32 %v2927_v40  ;;  %v2876_v37 = vld [vmem:[%s4103_s4 + $0xa] ss:$0 sm:$0xff] }
 0x645   :  { %2928 = vrcp.f32 %v553_v42  ;;  %vm561_vm7 = vmor %vm559_vm6, %vm560_vm5  ;;  %v580_v58 = vand.u32 2147483648, %v553_v42  ;;  %v578_v60 = vand.u32 2147483647, %v553_v42  ;;  %vm574_vm12 = vweird.f32 %v553_v42 }
 0x646   :  { %v556_v43 = vsub.f32 1.0, %v555_v41 }
 0x647   :  { %v581_v0 = vor.u32 1.1754944e-38, %v580_v58  ;;  %vm579_vm14 = vcmp.eq.f32.partialorder %v578_v60, 8.507059e+37  ;;  %v2720_v58 = vld [vmem:[%s4102_s3 + $0x160] sm:$0xff] }
 0x648   :  { %v557_v45 = vmul.f32 %v2927_v40, %v556_v43 }
 0x64a   :  { %v558_v47 = vadd.f32 %v2927_v40, %v557_v45 }
 0x64b   :  { %v2929_v48 = vpop.eup %2928 }
 0x64c   :  { %v562_v51 = vsel %vm561_vm7, %v2927_v40, %v558_v47  ;;  %v570_v52 = vmul.f32 %v2929_v48, %v553_v42  ;;  %vm575_vm9 = vweird.f32 %v2929_v48 }
 0x64d   :  { %v567_v53 = vsel %vm564_vm8, %v566_v49, %v562_v51  ;;  %vm576_vm13 = vmor %vm574_vm12, %vm575_vm9 }
 0x64e   :  { %v571_v54 = vsub.f32 1.0, %v570_v52  ;;  %v568_v55 = vmul.f32 %v2923_v29, %v567_v53  ;;  %v2723_v53 = vld [vmem:[%s4102_s3 + $0x178] sm:$0xff] }
 0x650   :  { %v572_v59 = vmul.f32 %v2929_v48, %v571_v54  ;;  %2678 = vmatmul.msk.f32.vlgmr.msrb.gmra.mxu1 %vm296_vm11, %v568_v55  ;;  %v2722_v54 = vld [vmem:[%s4102_s3 + $0x170] sm:$0xff]  ;;  %v2721_v55 = vld [vmem:[%s4102_s3 + $0x168] sm:$0xff] }
 0x651   :  { %902 = vmatpush.msrb.mxu1 %v2711_v57 }
 0x652   :  { %v573_v62 = vadd.f32 %v2929_v48, %v572_v59 }
 0x653   :  { %903 = vmatpush.msrb.mxu1 %v2710_v61 }
 0x654   :  { %v577_v3 = vsel %vm576_vm13, %v2929_v48, %v573_v62 }
 0x655   :  { %v582_v5 = vsel %vm579_vm14, %v581_v0, %v577_v3  ;;  %904 = vmatpush.msrb.mxu1 %v2709_v63 }
 0x656   :  { %v583_v6 = vmul.f32 %v2925_v32, %v582_v5 }
 0x657   :  { %905 = vmatpush.msrb.mxu1 %v2708_v4 }
 0x658   :  { %2679 = vmatmul.msk.f32.gmra.mxu1 %vm296_vm11, %v583_v6 }
 0x660   :  { %2698 = vmatmul.msk.f32.vlgmr.msra.gmra.mxu1 %vm92_vm2, %v3206_v19 }
 0x668   :  { %2699 = vmatmul.msk.f32.gmra.mxu1 %vm92_vm2, %v3213_v24 }
 0x670   :  { %2712 = vmatmul.msk.f32.vlgmr.msrb.gmra.mxu1 %vm92_vm2, %v3206_v19 }
 0x678   :  { %2713 = vmatmul.msk.f32.gmra.mxu1 %vm92_vm2, %v3213_v24 }
 0x6cd   :  { %v607_v8 = vpop.f32.mrf.mxu1 }
 0x6ce   :  { %2680 = vmatmul.msk.f32.vlgmr.msra.gmra.mxu2 %vm256_vm10, %v607_v8 }
 0x6cf   :  { %932 = vmatpush.msra.mxu2 %v2717_v7 }
 0x6d1   :  { %933 = vmatpush.msra.mxu2 %v2716_v9 }
 0x6d3   :  { %934 = vmatpush.msra.mxu2 %v2715_v10 }
 0x6d5   :  { %v610_v12 = vpop.f32.mrf.mxu1  ;;  %935 = vmatpush.msra.mxu2 %v2714_v11 }
 0x6d6   :  { %2681 = vmatmul.msk.f32.gmra.mxu2 %vm256_vm10, %v610_v12 }
 0x6dd   :  { %v729_v16 = vpop.f32.mrf.mxu1 }
 0x6de   :  { %2702 = vmatmul.msk.f32.vlgmr.msrb.gmra.mxu2 %vm256_vm10, %v670_v15  ;;  %v730_v23 = vadd.f32 %v2874_v20, %v729_v16 }
 0x6e5   :  { %v732_v21 = vpop.f32.mrf.mxu1 }
 0x6e6   :  { %v733_v22 = vadd.f32 %v2874_v20, %v732_v21  ;;  %2703 = vmatmul.msk.f32.gmra.mxu2 %vm256_vm10, %v673_v18 }
 0x6e8   :  { %842 = vmatpush.msra.mxu3 %v733_v22 }
 0x6ea   :  { %843 = vmatpush.msra.mxu3 %v730_v23 }
 0x6ec   :  { %962 = vmatpush.msrb.mxu3 %v2723_v53 }
 0x6ed   :  { %v907_v23 = vpop.f32.mrf.mxu1 }
 0x6ee   :  { %2718 = vmatmul.msk.f32.vlgmr.msra.gmra.mxu2 %vm92_vm2, %v3206_v19  ;;  %963 = vmatpush.msrb.mxu3 %v2722_v54 }
 0x6f0   :  { %964 = vmatpush.msrb.mxu3 %v2721_v55 }
 0x6f2   :  { %965 = vmatpush.msrb.mxu3 %v2720_v58 }
 0x6f6   :  { %2719 = vmatmul.msk.f32.gmra.mxu2 %vm92_vm2, %v3213_v24 }
 0x751   :  { %v3433_v25 = vpop.f32.mrf.mxu2 }
 0x759   :  { %v3435_v26 = vpop.f32.mrf.mxu2 }
 0x761   :  { %v764_v28 = vpop.f32.mrf.mxu2 }
 0x762   :  { %v770_v29 = vmul.f32 0.35355338, %v764_v28  ;;  %v908_v28 = vadd.f32 %v2875_v27, %v907_v23 }
 0x764   :  { %v772_v30 = vadd.f32 %v770_v29, %v3258_v50 }
 0x766   :  { %v774_v31 = vsel %vm296_vm11, %v772_v30, -inf }
 0x767   :  { %775 = vmax.xlane.f32.xlu2 %v774_v31 }
 0x769   :  { %v767_v32 = vpop.f32.mrf.mxu2 }
 0x76a   :  { %v771_v33 = vmul.f32 0.35355338, %v767_v32  ;;  %v2877_v32 = vld [vmem:[%s4103_s4 + $0xb] ss:$0 sm:$0xff] }
 0x76c   :  { %v773_v34 = vadd.f32 %v771_v33, %v3265_v56 }
 0x76e   :  { %v777_v35 = vsel %vm296_vm11, %v773_v34, -inf }
 0x76f   :  { %778 = vmax.xlane.f32.xlu1 %v777_v35 }
 0x771   :  { %v937_v36 = vpop.f32.mrf.mxu2 }
 0x772   :  { %v938_v41 = vadd.f32 %v2876_v37, %v937_v36  ;;  %v2870_v36 = vld [vmem:[%s4106_s7 + $0x2] ss:$0 sm:$0xff] }
 0x779   :  { %v940_v39 = vpop.f32.mrf.mxu2 }
 0x77a   :  { %v941_v40 = vadd.f32 %v2876_v37, %v940_v39  ;;  %v405_v37 = vadd.f32 %v2870_v36, %v3352_v1 }
 0x77c   :  { %2726 = vmatpush.xpose.msk.msra.mxu0 %vm256_vm10, %v941_v40  ;;  %v643_v39 = vadd.f32 %v3433_v25, %v405_v37 }
 0x780   :  { %2727 = vmatpush.xpose.msk.msra.mxu0 %vm256_vm10, %v938_v41 }
 0x7da   :  { %v776_v42 = vpop.xlane.xlu2 %775 }
 0x7db   :  { %v780_v43 = vsub.f32 %v772_v30, %v776_v42  ;;  %v910_v30 = vpop.f32.mrf.mxu1  ;;  %v406_v42 = vadd.f32 %v2870_v36, %v3354_v2 }
 0x7dc   :  { %v911_v31 = vadd.f32 %v2875_v27, %v910_v30 }
 0x7dd   :  { %v782_v44 = vmul.f32 1.442695, %v780_v43  ;;  %v644_v43 = vadd.f32 %v3435_v26, %v406_v42 }
 0x7df   :  { %2930 = vpow2.f32 %v782_v44 }
 0x7e2   :  { %v779_v45 = vpop.xlane.xlu1 %778 }
 0x7e3   :  { %v781_v46 = vsub.f32 %v773_v34, %v779_v45 }
 0x7e5   :  { %v2931_v47 = vpop.eup %2930  ;;  %v784_v48 = vmul.f32 1.442695, %v781_v46 }
 0x7e6   :  { %v786_v49 = vsel %vm296_vm11, %v2931_v47, 0.0 }
 0x7e7   :  { %2932 = vpow2.f32 %v784_v48  ;;  %787 = vadd.xlane.f32.xlu2 %v786_v49 }
 0x7ed   :  { %v2933_v51 = vpop.eup %2932 }
 0x7ee   :  { %v789_v52 = vsel %vm296_vm11, %v2933_v51, 0.0 }
 0x7ef   :  { %790 = vadd.xlane.f32.xlu1 %v789_v52 }
 0x85a   :  { %v788_v57 = vpop.xlane.xlu2 %787 }
 0x85b   :  { %2934 = vrcp.f32 %v788_v57  ;;  %v803_v63 = vand.u32 2147483648, %v788_v57  ;;  %v801_v3 = vand.u32 2147483647, %v788_v57  ;;  %vm797_vm0 = vweird.f32 %v788_v57 }
 0x85d   :  { %v804_v6 = vor.u32 1.1754944e-38, %v803_v63  ;;  %vm802_vm3 = vcmp.eq.f32.partialorder %v801_v3, 8.507059e+37 }
 0x861   :  { %v2935_v59 = vpop.eup %2934 }
 0x862   :  { %v793_v60 = vmul.f32 %v2935_v59, %v788_v57  ;;  %v791_v61 = vpop.xlane.xlu1 %790  ;;  %vm798_vm15 = vweird.f32 %v2935_v59 }
 0x863   :  { %2936 = vrcp.f32 %v791_v61  ;;  %vm799_vm1 = vmor %vm797_vm0, %vm798_vm15  ;;  %v818_v12 = vand.u32 2147483648, %v791_v61  ;;  %v816_v14 = vand.u32 2147483647, %v791_v61  ;;  %vm812_vm5 = vweird.f32 %v791_v61 }
 0x864   :  { %v794_v62 = vsub.f32 1.0, %v793_v60 }
 0x865   :  { %v819_v16 = vor.u32 1.1754944e-38, %v818_v12  ;;  %vm817_vm7 = vcmp.eq.f32.partialorder %v816_v14, 8.507059e+37 }
 0x866   :  { %v795_v0 = vmul.f32 %v2935_v59, %v794_v62  ;;  %v1089_v62 = vld [vmem:[%s4104_s5 + $0xa8] sm:$0xff] }
 0x867   :  { %1111 = vmatpush.msrb.mxu2 %v1089_v62 }
 0x868   :  { %v796_v4 = vadd.f32 %v2935_v59, %v795_v0 }
 0x869   :  { %v2937_v5 = vpop.eup %2936 }
 0x86a   :  { %v800_v7 = vsel %vm799_vm1, %v2935_v59, %v796_v4  ;;  %v808_v8 = vmul.f32 %v2937_v5, %v791_v61  ;;  %vm813_vm4 = vweird.f32 %v2937_v5 }
 0x86b   :  { %v805_v9 = vsel %vm802_vm3, %v804_v6, %v800_v7  ;;  %vm814_vm6 = vmor %vm812_vm5, %vm813_vm4 }
 0x86c   :  { %v809_v10 = vsub.f32 1.0, %v808_v8  ;;  %v806_v11 = vmul.f32 %v2931_v47, %v805_v9 }
 0x86e   :  { %v810_v13 = vmul.f32 %v2937_v5, %v809_v10  ;;  %2704 = vmatmul.msk.f32.vlgmr.msra.gmra.mxu3 %vm296_vm11, %v806_v11 }
 0x870   :  { %v811_v15 = vadd.f32 %v2937_v5, %v810_v13 }
 0x872   :  { %v815_v17 = vsel %vm814_vm6, %v2937_v5, %v811_v15 }
 0x873   :  { %v820_v18 = vsel %vm817_vm7, %v819_v16, %v815_v17 }
 0x874   :  { %v821_v20 = vmul.f32 %v2933_v51, %v820_v18 }
 0x876   :  { %2705 = vmatmul.msk.f32.gmra.mxu3 %vm296_vm11, %v821_v20 }
 0x87e   :  { %2724 = vmatmul.msk.f32.vlgmr.msrb.gmra.mxu3 %vm92_vm2, %v3206_v19 }
 0x886   :  { %2725 = vmatmul.msk.f32.gmra.mxu3 %vm92_vm2, %v3213_v24 }
 0x8f1   :  { %v845_v21 = vpop.f32.mrf.mxu3 }
 0x8f2   :  { %2706 = vmatmul.msk.f32.vlgmr.msrb.gmra.mxu0 %vm256_vm10, %v845_v21 }
 0x8f9   :  { %v848_v22 = vpop.f32.mrf.mxu3 }
 0x8fa   :  { %2707 = vmatmul.msk.f32.gmra.mxu0 %vm256_vm10, %v848_v22 }
 0x901   :  { %v967_v29 = vpop.f32.mrf.mxu3 }
 0x902   :  { %2728 = vmatmul.msk.f32.vlgmr.msra.gmra.mxu0 %vm256_vm10, %v908_v28  ;;  %v968_v35 = vadd.f32 %v2877_v32, %v967_v29 }
 0x909   :  { %v970_v33 = vpop.f32.mrf.mxu3 }
 0x90a   :  { %v971_v34 = vadd.f32 %v2877_v32, %v970_v33  ;;  %2729 = vmatmul.msk.f32.gmra.mxu0 %vm256_vm10, %v911_v31 }
 0x90c   :  { %1080 = vmatpush.msra.mxu1 %v971_v34 }
 0x90e   :  { %1081 = vmatpush.msra.mxu1 %v968_v35 }
 0x96f   :  { %v875_v40 = vpop.f32.mrf.mxu0 }
 0x970   :  { %v3484_v41 = vadd.f32 %v875_v40, %v643_v39 }
 0x977   :  { %v878_v44 = vpop.f32.mrf.mxu0 }
 0x978   :  { %v3488_v45 = vadd.f32 %v878_v44, %v644_v43 }
 0x97f   :  { %v1002_v46 = vpop.f32.mrf.mxu0 }
 0x980   :  { %v1008_v47 = vmul.f32 0.35355338, %v1002_v46 }
 0x982   :  { %v1010_v48 = vadd.f32 %v1008_v47, %v3258_v50 }
 0x984   :  { %v1012_v49 = vsel %vm296_vm11, %v1010_v48, -inf }
 0x985   :  { %1013 = vmax.xlane.f32.xlu2 %v1012_v49  ;;  %v1177_v49 = vld [vmem:[%s4105_s6 + $0x10] sm:$0xff] }
 0x987   :  { %v1005_v1 = vpop.f32.mrf.mxu0 }
 0x988   :  { %v1009_v51 = vmul.f32 0.35355338, %v1005_v1  ;;  %v1176_v1 = vld [vmem:[%s4105_s6 + $0x8] sm:$0xff] }
 0x98a   :  { %v1011_v25 = vadd.f32 %v1009_v51, %v3265_v56  ;;  %v1175_v51 = vld [vmem:[%s4105_s6] sm:$0xff] }
 0x98c   :  { %v1015_v52 = vsel %vm296_vm11, %v1011_v25, -inf }
 0x98d   :  { %1016 = vmax.xlane.f32.xlu0 %v1015_v52 }
 0x9f8   :  { %v1014_v2 = vpop.xlane.xlu2 %1013 }
 0x9f9   :  { %v1018_v53 = vsub.f32 %v1010_v48, %v1014_v2 }
 0x9fb   :  { %v1020_v26 = vmul.f32 1.442695, %v1018_v53  ;;  %v1243_v53 = vld [vmem:[%s4104_s5 + $0x148] sm:$0xff] }
 0x9fc   :  { %1246 = vmatpush.msrb.mxu0 %v1243_v53 }
 0x9fd   :  { %2938 = vpow2.f32 %v1020_v26  ;;  %v1242_v26 = vld [vmem:[%s4104_s5 + $0x140] sm:$0xff] }
 0x9fe   :  { %1247 = vmatpush.msrb.mxu0 %v1242_v26 }
 0xa00   :  { %v1017_v54 = vpop.xlane.xlu0 %1016 }
 0xa01   :  { %v1019_v55 = vsub.f32 %v1011_v25, %v1017_v54  ;;  %v1241_v54 = vld [vmem:[%s4104_s5 + $0x138] sm:$0xff] }
 0xa02   :  { %1248 = vmatpush.msrb.mxu0 %v1241_v54 }
 0xa03   :  { %v2939_v57 = vpop.eup %2938  ;;  %v1022_v58 = vmul.f32 1.442695, %v1019_v55 }
 0xa04   :  { %v1024_v59 = vsel %vm296_vm11, %v2939_v57, 0.0 }
 0xa05   :  { %2940 = vpow2.f32 %v1022_v58  ;;  %1025 = vadd.xlane.f32.xlu1 %v1024_v59 }
 0xa0b   :  { %v2941_v60 = vpop.eup %2940 }
 0xa0c   :  { %v1027_v61 = vsel %vm296_vm11, %v2941_v60, 0.0 }
 0xa0d   :  { %1028 = vadd.xlane.f32.xlu2 %v1027_v61 }
 0xa78   :  { %v1026_v63 = vpop.xlane.xlu1 %1025 }
 0xa79   :  { %2942 = vrcp.f32 %v1026_v63  ;;  %v1041_v6 = vand.u32 2147483648, %v1026_v63  ;;  %v1039_v8 = vand.u32 2147483647, %v1026_v63  ;;  %vm1035_vm9 = vweird.f32 %v1026_v63 }
 0xa7b   :  { %v1042_v11 = vor.u32 1.1754944e-38, %v1041_v6  ;;  %vm1040_vm13 = vcmp.eq.f32.partialorder %v1039_v8, 8.507059e+37 }
 0xa7f   :  { %v2943_v0 = vpop.eup %2942 }
 0xa80   :  { %v1031_v3 = vmul.f32 %v2943_v0, %v1026_v63  ;;  %v1029_v4 = vpop.xlane.xlu2 %1028  ;;  %vm1036_vm8 = vweird.f32 %v2943_v0 }
 0xa81   :  { %2944 = vrcp.f32 %v1029_v4  ;;  %vm1037_vm12 = vmor %vm1035_vm9, %vm1036_vm8  ;;  %v1056_v17 = vand.u32 2147483648, %v1029_v4  ;;  %v1054_v20 = vand.u32 2147483647, %v1029_v4  ;;  %vm1050_vm15 = vweird.f32 %v1029_v4 }
 0xa82   :  { %v1032_v5 = vsub.f32 1.0, %v1031_v3 }
 0xa83   :  { %v1057_v22 = vor.u32 1.1754944e-38, %v1056_v17  ;;  %vm1055_vm1 = vcmp.eq.f32.partialorder %v1054_v20, 8.507059e+37  ;;  %v1240_v20 = vld [vmem:[%s4104_s5 + $0x130] sm:$0xff] }
 0xa84   :  { %v1033_v7 = vmul.f32 %v2943_v0, %v1032_v5  ;;  %v2878_v5 = vld [vmem:[%s4106_s7 + $0x3] ss:$0 sm:$0xff]  ;;  %1249 = vmatpush.msrb.mxu0 %v1240_v20  ;;  %v2750_v20 = vld [vmem:[%s4102_s3 + $0x1d0] sm:$0xff] }
 0xa86   :  { %v1034_v9 = vadd.f32 %v2943_v0, %v1033_v7 }
 0xa87   :  { %v2945_v10 = vpop.eup %2944 }
 0xa88   :  { %v1038_v12 = vsel %vm1037_vm12, %v2943_v0, %v1034_v9  ;;  %v1046_v13 = vmul.f32 %v2945_v10, %v1029_v4  ;;  %vm1051_vm14 = vweird.f32 %v2945_v10  ;;  %v2879_v9 = vld [vmem:[%s4106_s7 + $0x4] ss:$0 sm:$0xff] }
 0xa89   :  { %v1043_v14 = vsel %vm1040_vm13, %v1042_v11, %v1038_v12  ;;  %vm1052_vm0 = vmor %vm1050_vm15, %vm1051_vm14 }
 0xa8a   :  { %v1047_v15 = vsub.f32 1.0, %v1046_v13  ;;  %v1044_v16 = vmul.f32 %v2939_v57, %v1043_v14 }
 0xa8c   :  { %v1048_v18 = vmul.f32 %v2945_v10, %v1047_v15  ;;  %2730 = vmatmul.msk.f32.vlgmr.msra.gmra.mxu1 %vm296_vm11, %v1044_v16 }
 0xa8e   :  { %v1049_v21 = vadd.f32 %v2945_v10, %v1048_v18 }
 0xa90   :  { %v1053_v23 = vsel %vm1052_vm0, %v2945_v10, %v1049_v21  ;;  %v1239_v21 = vld [vmem:[%s4104_s5 + $0x128] sm:$0xff] }
 0xa91   :  { %v1058_v27 = vsel %vm1055_vm1, %v1057_v22, %v1053_v23  ;;  %1250 = vmatpush.msrb.mxu0 %v1239_v21  ;;  %v1238_v22 = vld [vmem:[%s4104_s5 + $0x120] sm:$0xff]  ;;  %v1237_v23 = vld [vmem:[%s4104_s5 + $0x118] sm:$0xff]  ;;  %v2764_v21 = vld [vmem:[%s4102_s3 + $0x1f0] sm:$0xff] }
 0xa92   :  { %v1059_v28 = vmul.f32 %v2941_v60, %v1058_v27  ;;  %v1236_v27 = vld [vmem:[%s4104_s5 + $0x110] sm:$0xff] }
 0xa93   :  { %1251 = vmatpush.msrb.mxu0 %v1238_v22  ;;  %v2737_v22 = vld [vmem:[%s4102_s3 + $0x188] sm:$0xff] }
 0xa94   :  { %2731 = vmatmul.msk.f32.gmra.mxu1 %vm296_vm11, %v1059_v28  ;;  %v1235_v28 = vld [vmem:[%s4104_s5 + $0x108] sm:$0xff] }
 0xa95   :  { %1252 = vmatpush.msrb.mxu0 %v1237_v23  ;;  %v2743_v23 = vld [vmem:[%s4102_s3 + $0x1a8] sm:$0xff] }
 0xa97   :  { %1253 = vmatpush.msrb.mxu0 %v1236_v27  ;;  %v2749_v27 = vld [vmem:[%s4102_s3 + $0x1c8] sm:$0xff] }
 0xa99   :  { %1254 = vmatpush.msrb.mxu0 %v1235_v28  ;;  %v2763_v28 = vld [vmem:[%s4102_s3 + $0x1e8] sm:$0xff] }
 0xb09   :  { %v1083_v29 = vpop.f32.mrf.mxu1 }
 0xb0a   :  { %2732 = vmatmul.msk.f32.vlgmr.msrb.gmra.mxu2 %vm256_vm10, %v1083_v29  ;;  %v1234_v29 = vld [vmem:[%s4104_s5 + $0x100] sm:$0xff] }
 0xb0b   :  { %1255 = vmatpush.msrb.mxu0 %v1234_v29  ;;  %v2736_v29 = vld [vmem:[%s4102_s3 + $0x180] sm:$0xff] }
 0xb11   :  { %v1086_v30 = vpop.f32.mrf.mxu1 }
 0xb12   :  { %2733 = vmatmul.msk.f32.gmra.mxu2 %vm256_vm10, %v1086_v30  ;;  %v1233_v30 = vld [vmem:[%s4104_s5 + $0xf8] sm:$0xff] }
 0xb13   :  { %1256 = vmatpush.msrb.mxu0 %v1233_v30  ;;  %v2742_v30 = vld [vmem:[%s4102_s3 + $0x1a0] sm:$0xff] }
 0xb8d   :  { %v1113_v31 = vpop.f32.mrf.mxu2 }
 0xb8e   :  { %v1119_v32 = vadd.f32 %v1113_v31, %v3484_v41  ;;  %v1232_v31 = vld [vmem:[%s4104_s5 + $0xf0] sm:$0xff] }
 0xb8f   :  { %1257 = vmatpush.msrb.mxu0 %v1232_v31  ;;  %v2748_v31 = vld [vmem:[%s4102_s3 + $0x1c0] sm:$0xff] }
 0xb90   :  { %v1121_v33 = vadd.f32 %v1119_v32, %v3206_v19  ;;  %v1231_v32 = vld [vmem:[%s4104_s5 + $0xe8] sm:$0xff] }
 0xb91   :  { %1258 = vmatpush.msrb.mxu0 %v1231_v32  ;;  %v2762_v32 = vld [vmem:[%s4102_s3 + $0x1e0] sm:$0xff] }
 0xb92   :  { %v1125_v34 = vsel %vm92_vm2, %v1121_v33, 0.0 }
 0xb93   :  { %1126 = vadd.xlane.f32.xlu0 %v1125_v34  ;;  %v1229_v34 = vld [vmem:[%s4104_s5 + $0xd8] sm:$0xff] }
 0xb95   :  { %v1116_v35 = vpop.f32.mrf.mxu2 }
 0xb96   :  { %v1120_v36 = vadd.f32 %v1116_v35, %v3488_v45  ;;  %v1228_v35 = vld [vmem:[%s4104_s5 + $0xd0] sm:$0xff] }
 0xb98   :  { %v1122_v37 = vadd.f32 %v1120_v36, %v3213_v24  ;;  %v1178_v24 = vld [vmem:[%s4105_s6 + $0x18] sm:$0xff]  ;;  %v2880_v36 = vld [vmem:[%s4107_s8] ss:$0 sm:$0xff] }
 0xb99   :  { %1199 = vmatpush.msra.mxu3 %v1178_v24 }
 0xb9a   :  { %v1128_v39 = vsel %vm92_vm2, %v1122_v37, 0.0 }
 0xb9b   :  { %1129 = vadd.xlane.f32.xlu1 %v1128_v39  ;;  %1200 = vmatpush.msra.mxu3 %v1177_v49 }
 0xb9d   :  { %1201 = vmatpush.msra.mxu3 %v1176_v1 }
 0xb9f   :  { %1202 = vmatpush.msra.mxu3 %v1175_v51 }
 0xc06   :  { %v1127_v40 = vpop.xlane.xlu0 %1126 }
 0xc07   :  { %v1131_v42 = vmul.f32 %v1127_v40, %v3152_v38 }
 0xc09   :  { %v1133_v43 = vsub.f32 %v1121_v33, %v1131_v42  ;;  %v1230_v33 = vld [vmem:[%s4104_s5 + $0xe0] sm:$0xff] }
 0xc0a   :  { %1259 = vmatpush.msrb.mxu0 %v1230_v33 }
 0xc0b   :  { %v1135_v44 = vmul.f32 %v1133_v43, %v1133_v43 }
 0xc0c   :  { %1260 = vmatpush.msrb.mxu0 %v1229_v34 }
 0xc0d   :  { %v1137_v41 = vsel %vm92_vm2, %v1135_v44, 0.0 }
 0xc0e   :  { %1138 = vadd.xlane.f32.xlu2 %v1137_v41  ;;  %v1130_v19 = vpop.xlane.xlu1 %1129  ;;  %1261 = vmatpush.msrb.mxu0 %v1228_v35 }
 0xc0f   :  { %v1132_v46 = vmul.f32 %v1130_v19, %v3152_v38 }
 0xc11   :  { %v1134_v47 = vsub.f32 %v1122_v37, %v1132_v46 }
 0xc13   :  { %v1136_v48 = vmul.f32 %v1134_v47, %v1134_v47 }
 0xc15   :  { %v1140_v45 = vsel %vm92_vm2, %v1136_v48, 0.0 }
 0xc16   :  { %1141 = vadd.xlane.f32.xlu0 %v1140_v45 }
 0xc81   :  { %v1139_v25 = vpop.xlane.xlu2 %1138 }
 0xc82   :  { %v1143_v52 = vmul.f32 %v1139_v25, %v3152_v38 }
 0xc84   :  { %v1145_v2 = vadd.f32 1e-12, %v1143_v52 }
 0xc86   :  { %2946 = vrsqrt.f32 %v1145_v2  ;;  %vm1153_vm4 = vweird.f32 %v1145_v2 }
 0xc89   :  { %v1142_v55 = vpop.xlane.xlu0 %1141 }
 0xc8a   :  { %v1144_v57 = vmul.f32 %v1142_v55, %v3152_v38  ;;  %v2881_v55 = vld [vmem:[%s4106_s7 + $0x5] ss:$0 sm:$0xff] }
 0xc8c   :  { %v2947_v58 = vpop.eup %2946  ;;  %v1146_v59 = vadd.f32 1e-12, %v1144_v57 }
 0xc8d   :  { %v1148_v60 = vmul.f32 %v2947_v58, %v1145_v2  ;;  %vm1154_vm3 = vweird.f32 %v2947_v58 }
 0xc8e   :  { %2948 = vrsqrt.f32 %v1146_v59  ;;  %vm1155_vm5 = vmor %vm1153_vm4, %vm1154_vm3  ;;  %vm1163_vm7 = vweird.f32 %v1146_v59 }
 0xc8f   :  { %v1149_v61 = vmul.f32 %v2947_v58, %v1148_v60 }
 0xc91   :  { %v1150_v62 = vmul.f32 0.5, %v1149_v61 }
 0xc93   :  { %v1151_v63 = vsub.f32 1.5, %v1150_v62 }
 0xc94   :  { %v2949_v0 = vpop.eup %2948 }
 0xc95   :  { %v1152_v3 = vmul.f32 %v2947_v58, %v1151_v63  ;;  %v1158_v4 = vmul.f32 %v2949_v0, %v1146_v59  ;;  %vm1164_vm6 = vweird.f32 %v2949_v0 }
 0xc96   :  { %vm1165_vm8 = vmor %vm1163_vm7, %vm1164_vm6 }
 0xc97   :  { %v1156_v6 = vsel %vm1155_vm5, %v2947_v58, %v1152_v3  ;;  %v1159_v7 = vmul.f32 %v2949_v0, %v1158_v4 }
 0xc98   :  { %v1167_v8 = vmul.f32 %v1156_v6, %v1133_v43 }
 0xc99   :  { %v1160_v10 = vmul.f32 0.5, %v1159_v7 }
 0xc9a   :  { %v1170_v11 = vmul.f32 %v2878_v5, %v1167_v8 }
 0xc9b   :  { %v1161_v12 = vsub.f32 1.5, %v1160_v10 }
 0xc9c   :  { %v3542_v13 = vadd.f32 %v2879_v9, %v1170_v11 }
 0xc9d   :  { %v1162_v14 = vmul.f32 %v2949_v0, %v1161_v12 }
 0xc9e   :  { %2734 = vmatmul.msk.f32.vlgmr.msra.gmra.mxu3 %vm92_vm2, %v3542_v13 }
 0xc9f   :  { %v1166_v15 = vsel %vm1165_vm8, %v2949_v0, %v1162_v14  ;;  %v2745_v14 = vld [vmem:[%s4102_s3 + $0x1b8] sm:$0xff] }
 0xca0   :  { %v1168_v16 = vmul.f32 %v1166_v15, %v1134_v47  ;;  %v2751_v15 = vld [vmem:[%s4102_s3 + $0x1d8] sm:$0xff]  ;;  %1379 = vmatpush.msra.mxu2 %v2745_v14 }
 0xca1   :  { %1409 = vmatpush.msrb.mxu3 %v2751_v15  ;;  %v1536_v15 = vld [vmem:[%s4104_s5 + $0xb0] sm:$0xff] }
 0xca2   :  { %v1171_v17 = vmul.f32 %v2878_v5, %v1168_v16  ;;  %v2765_v16 = vld [vmem:[%s4102_s3 + $0x1f8] sm:$0xff] }
 0xca3   :  { %1588 = vmatpush.msra.mxu0 %v2765_v16  ;;  %1410 = vmatpush.msrb.mxu3 %v2750_v20 }
 0xca4   :  { %v3546_v18 = vadd.f32 %v2879_v9, %v1171_v17  ;;  %v2738_v17 = vld [vmem:[%s4102_s3 + $0x190] sm:$0xff] }
 0xca5   :  { %1589 = vmatpush.msra.mxu0 %v2764_v21  ;;  %1411 = vmatpush.msrb.mxu3 %v2749_v27 }
 0xca6   :  { %2735 = vmatmul.msk.f32.gmra.mxu3 %vm92_vm2, %v3546_v18 }
 0xca7   :  { %1590 = vmatpush.msra.mxu0 %v2763_v28  ;;  %1412 = vmatpush.msrb.mxu3 %v2748_v31 }
 0xca9   :  { %1591 = vmatpush.msra.mxu0 %v2762_v32  ;;  %1558 = vmatpush.msra.mxu3 %v1536_v15  ;;  %v2795_v15 = vld [vmem:[%s4102_s3 + $0x268] sm:$0xff] }
 0xd21   :  { %v1204_v37 = vpop.f32.mrf.mxu3 }
 0xd22   :  { %v1205_v39 = vadd.f32 %v2880_v36, %v1204_v37 }
 0xd24   :  { %v1210_v40 = vmul.f32 %v1205_v39, %v1205_v39 }
 0xd26   :  { %v1212_v42 = vmul.f32 %v1210_v40, %v1205_v39 }
 0xd28   :  { %v1214_v43 = vmul.f32 0.044715, %v1212_v42 }
 0xd29   :  { %v1207_v44 = vpop.f32.mrf.mxu3 }
 0xd2a   :  { %v1216_v41 = vadd.f32 %v1214_v43, %v1205_v39  ;;  %v1208_v19 = vadd.f32 %v2880_v36, %v1207_v44 }
 0xd2c   :  { %v1218_v46 = vmul.f32 0.7978846, %v1216_v41  ;;  %v1211_v47 = vmul.f32 %v1208_v19, %v1208_v19 }
 0xd2e   :  { %2950 = vtanh.f32 %v1218_v46  ;;  %v1213_v48 = vmul.f32 %v1211_v47, %v1208_v19 }
 0xd30   :  { %v1215_v45 = vmul.f32 0.044715, %v1213_v48  ;;  %v2882_v48 = vld [vmem:[%s4106_s7 + $0x6] ss:$0 sm:$0xff] }
 0xd32   :  { %v1217_v24 = vadd.f32 %v1215_v45, %v1208_v19 }
 0xd34   :  { %v2951_v49 = vpop.eup %2950  ;;  %v1219_v1 = vmul.f32 0.7978846, %v1217_v24 }
 0xd35   :  { %v1222_v51 = vadd.f32 1.0, %v2951_v49  ;;  %v2883_v49 = vld [vmem:[%s4106_s7 + $0x7] ss:$0 sm:$0xff] }
 0xd36   :  { %2952 = vtanh.f32 %v1219_v1 }
 0xd37   :  { %v1224_v25 = vmul.f32 0.5, %v1222_v51 }
 0xd39   :  { %v1226_v52 = vmul.f32 %v1224_v25, %v1205_v39 }
 0xd3b   :  { %1262 = vmatmul.f32.vlgmr.msrb.gmra.mxu0 %v1226_v52 }
 0xd3c   :  { %v2953_v2 = vpop.eup %2952 }
 0xd3d   :  { %v1223_v53 = vadd.f32 1.0, %v2953_v2 }
 0xd3f   :  { %v1225_v26 = vmul.f32 0.5, %v1223_v53 }
 0xd41   :  { %v1227_v54 = vmul.f32 %v1225_v26, %v1208_v19 }
 0xd43   :  { %1265 = vmatmul.f32.gmra.mxu0 %v1227_v54 }
 0xdb8   :  { %v1263_v57 = vpop.f32.mrf.mxu0 }
 0xdb9   :  { %v1264_v58 = vadd.f32 %v2881_v55, %v1263_v57 }
 0xdbb   :  { %v1269_v59 = vadd.f32 %v1264_v58, %v3542_v13  ;;  %v2739_v13 = vld [vmem:[%s4102_s3 + $0x198] sm:$0xff] }
 0xdbc   :  { %1349 = vmatpush.msrb.mxu1 %v2739_v13 }
 0xdbd   :  { %v1273_v60 = vsel %vm92_vm2, %v1269_v59, 0.0 }
 0xdbe   :  { %1274 = vadd.xlane.f32.xlu1 %v1273_v60  ;;  %1350 = vmatpush.msrb.mxu1 %v2738_v17  ;;  %v2886_v60 = vld [vmem:[%s4103_s4 + $0xd] ss:$0 sm:$0xff] }
 0xdc0   :  { %v1266_v61 = vpop.f32.mrf.mxu0  ;;  %1351 = vmatpush.msrb.mxu1 %v2737_v22 }
 0xdc1   :  { %v1267_v62 = vadd.f32 %v2881_v55, %v1266_v61  ;;  %v2887_v61 = vld [vmem:[%s4103_s4 + $0xe] ss:$0 sm:$0xff] }
 0xdc2   :  { %1352 = vmatpush.msrb.mxu1 %v2736_v29  ;;  %v2888_v29 = vld [vmem:[%s4103_s4 + $0x10] ss:$0 sm:$0xff] }
 0xdc3   :  { %v1270_v63 = vadd.f32 %v1267_v62, %v3546_v18  ;;  %v2744_v18 = vld [vmem:[%s4102_s3 + $0x1b0] sm:$0xff] }
 0xdc4   :  { %1380 = vmatpush.msra.mxu2 %v2744_v18 }
 0xdc5   :  { %v1276_v0 = vsel %vm92_vm2, %v1270_v63, 0.0 }
 0xdc6   :  { %1277 = vadd.xlane.f32.xlu2 %v1276_v0  ;;  %1381 = vmatpush.msra.mxu2 %v2743_v23 }
 0xdc8   :  { %1382 = vmatpush.msra.mxu2 %v2742_v30 }
 0xe31   :  { %v1275_v3 = vpop.xlane.xlu1 %1274 }
 0xe32   :  { %v1279_v4 = vmul.f32 %v1275_v3, %v3152_v38 }
 0xe34   :  { %v3600_v5 = vsub.f32 %v1269_v59, %v1279_v4 }
 0xe36   :  { %v1283_v6 = vmul.f32 %v3600_v5, %v3600_v5 }
 0xe38   :  { %v1285_v7 = vsel %vm92_vm2, %v1283_v6, 0.0 }
 0xe39   :  { %v1278_v8 = vpop.xlane.xlu2 %1277  ;;  %1286 = vadd.xlane.f32.xlu0 %v1285_v7 }
 0xe3a   :  { %v1280_v9 = vmul.f32 %v1278_v8, %v3152_v38  ;;  %v2771_v8 = vld [vmem:[%s4102_s3 + $0x218] sm:$0xff] }
 0xe3c   :  { %v3606_v10 = vsub.f32 %v1270_v63, %v1280_v9 }
 0xe3e   :  { %v1284_v11 = vmul.f32 %v3606_v10, %v3606_v10 }
 0xe40   :  { %v1288_v12 = vsel %vm92_vm2, %v1284_v11, 0.0  ;;  %v2769_v11 = vld [vmem:[%s4102_s3 + $0x208] sm:$0xff] }
 0xe41   :  { %1289 = vadd.xlane.f32.xlu1 %v1288_v12  ;;  %v2768_v12 = vld [vmem:[%s4102_s3 + $0x200] sm:$0xff] }
 0xeac   :  { %v1287_v33 = vpop.xlane.xlu0 %1286 }
 0xead   :  { %v1291_v34 = vmul.f32 %v1287_v33, %v3152_v38 }
 0xeaf   :  { %v1293_v35 = vadd.f32 1e-12, %v1291_v34 }
 0xeb1   :  { %2954 = vrsqrt.f32 %v1293_v35  ;;  %vm1301_vm12 = vweird.f32 %v1293_v35 }
 0xeb4   :  { %v1290_v36 = vpop.xlane.xlu1 %1289 }
 0xeb5   :  { %v1292_v37 = vmul.f32 %v1290_v36, %v3152_v38 }
 0xeb7   :  { %v2955_v39 = vpop.eup %2954  ;;  %v1294_v40 = vadd.f32 1e-12, %v1292_v37 }
 0xeb8   :  { %v1296_v42 = vmul.f32 %v2955_v39, %v1293_v35  ;;  %vm1302_vm9 = vweird.f32 %v2955_v39 }
 0xeb9   :  { %2956 = vrsqrt.f32 %v1294_v40  ;;  %vm1303_vm13 = vmor %vm1301_vm12, %vm1302_vm9  ;;  %vm1311_vm15 = vweird.f32 %v1294_v40 }
 0xeba   :  { %v1297_v43 = vmul.f32 %v2955_v39, %v1296_v42 }
 0xebc   :  { %v1298_v44 = vmul.f32 0.5, %v1297_v43 }
 0xebe   :  { %v1299_v41 = vsub.f32 1.5, %v1298_v44 }
 0xebf   :  { %v2957_v19 = vpop.eup %2956 }
 0xec0   :  { %v1300_v46 = vmul.f32 %v2955_v39, %v1299_v41  ;;  %v1306_v47 = vmul.f32 %v2957_v19, %v1294_v40  ;;  %vm1312_vm14 = vweird.f32 %v2957_v19  ;;  %v2777_v41 = vld [vmem:[%s4102_s3 + $0x238] sm:$0xff] }
 0xec1   :  { %vm1313_vm0 = vmor %vm1311_vm15, %vm1312_vm14 }
 0xec2   :  { %v1304_v45 = vsel %vm1303_vm13, %v2955_v39, %v1300_v46  ;;  %v1307_v24 = vmul.f32 %v2957_v19, %v1306_v47  ;;  %v2775_v46 = vld [vmem:[%s4102_s3 + $0x228] sm:$0xff] }
 0xec3   :  { %v1315_v1 = vmul.f32 %v1304_v45, %v3600_v5  ;;  %v2884_v5 = vld [vmem:[%s4103_s4 + $0xc] ss:$0 sm:$0xff] }
 0xec4   :  { %v1308_v51 = vmul.f32 0.5, %v1307_v24 }
 0xec5   :  { %v1318_v25 = vmul.f32 %v2882_v48, %v1315_v1 }
 0xec6   :  { %v1309_v52 = vsub.f32 1.5, %v1308_v51 }
 0xec7   :  { %v3668_v2 = vadd.f32 %v2883_v49, %v1318_v25 }
 0xec8   :  { %v1310_v53 = vmul.f32 %v2957_v19, %v1309_v52 }
 0xec9   :  { %2740 = vmatmul.msk.f32.vlgmr.msrb.gmra.mxu1 %vm92_vm2, %v3668_v2  ;;  %2746 = vmatmul.msk.f32.vlgmr.msra.gmra.mxu2 %vm92_vm2, %v3668_v2 }
 0xeca   :  { %v1314_v26 = vsel %vm1313_vm0, %v2957_v19, %v1310_v53  ;;  %2752 = vmatmul.msk.f32.vlgmr.msrb.gmra.mxu3 %vm92_vm2, %v3668_v2  ;;  %2766 = vmatmul.msk.f32.vlgmr.msra.gmra.mxu0 %vm92_vm2, %v3668_v2  ;;  %v2776_v19 = vld [vmem:[%s4102_s3 + $0x230] sm:$0xff] }
 0xecb   :  { %v1316_v54 = vmul.f32 %v1314_v26, %v3606_v10  ;;  %v2770_v10 = vld [vmem:[%s4102_s3 + $0x210] sm:$0xff] }
 0xecd   :  { %v1319_v55 = vmul.f32 %v2882_v48, %v1316_v54  ;;  %v2774_v48 = vld [vmem:[%s4102_s3 + $0x220] sm:$0xff] }
 0xecf   :  { %v3679_v57 = vadd.f32 %v2883_v49, %v1319_v55 }
 0xed1   :  { %2741 = vmatmul.msk.f32.gmra.mxu1 %vm92_vm2, %v3679_v57  ;;  %2747 = vmatmul.msk.f32.gmra.mxu2 %vm92_vm2, %v3679_v57 }
 0xed2   :  { %2753 = vmatmul.msk.f32.gmra.mxu3 %vm92_vm2, %v3679_v57  ;;  %2767 = vmatmul.msk.f32.gmra.mxu0 %vm92_vm2, %v3679_v57 }
 0xf46   :  { %v1354_v4 = vpop.f32.mrf.mxu1 }
 0xf47   :  { %v1355_v9 = vadd.f32 %v2884_v5, %v1354_v4  ;;  %v2790_v4 = vld [vmem:[%s4102_s3 + $0x250] sm:$0xff] }
 0xf4c   :  { %v1384_v58 = vpop.f32.mrf.mxu2 }
 0xf4d   :  { %v1414_v59 = vpop.f32.mrf.mxu3  ;;  %v1385_v7 = vadd.f32 %v2886_v60, %v1384_v58 }
 0xf4e   :  { %v1415_v6 = vadd.f32 %v2887_v61, %v1414_v59  ;;  %v1357_v13 = vpop.f32.mrf.mxu1 }
 0xf4f   :  { %v1358_v14 = vadd.f32 %v2884_v5, %v1357_v13 }
 0xf54   :  { %v1387_v62 = vpop.f32.mrf.mxu2 }
 0xf55   :  { %v1388_v63 = vadd.f32 %v2886_v60, %v1387_v62  ;;  %v1417_v0 = vpop.f32.mrf.mxu3  ;;  %v2791_v62 = vld [vmem:[%s4102_s3 + $0x258] sm:$0xff] }
 0xf56   :  { %v1418_v3 = vadd.f32 %v2887_v61, %v1417_v0 }
 0xf57   :  { %2754 = vmatpush.xpose.msk.msra.mxu1 %vm256_vm10, %v1388_v63 }
 0xf58   :  { %1527 = vmatpush.msrb.mxu2 %v1418_v3 }
 0xf5a   :  { %1528 = vmatpush.msrb.mxu2 %v1415_v6  ;;  %v2789_v6 = vld [vmem:[%s4102_s3 + $0x248] sm:$0xff] }
 0xf5b   :  { %2755 = vmatpush.xpose.msk.msra.mxu1 %vm256_vm10, %v1385_v7 }
 0xf5c   :  { %1648 = vmatpush.msra.mxu2 %v2777_v41 }
 0xf5e   :  { %2756 = vmatmul.msk.f32.vlgmr.msra.gmra.mxu1 %vm256_vm10, %v1355_v9  ;;  %1649 = vmatpush.msra.mxu2 %v2776_v19  ;;  %v2788_v9 = vld [vmem:[%s4102_s3 + $0x240] sm:$0xff]  ;;  %v2892_v19 = vld [vmem:[%s4103_s4 + $0x13] ss:$0 sm:$0xff] }
 0xf5f   :  { %1618 = vmatpush.msrb.mxu1 %v2771_v8 }
 0xf60   :  { %1650 = vmatpush.msra.mxu2 %v2775_v46 }
 0xf61   :  { %1619 = vmatpush.msrb.mxu1 %v2770_v10 }
 0xf62   :  { %1651 = vmatpush.msra.mxu2 %v2774_v48 }
 0xf63   :  { %1620 = vmatpush.msrb.mxu1 %v2769_v11 }
 0xf65   :  { %1621 = vmatpush.msrb.mxu1 %v2768_v12  ;;  %v2797_v12 = vld [vmem:[%s4102_s3 + $0x278] sm:$0xff] }
 0xf66   :  { %2757 = vmatmul.msk.f32.gmra.mxu1 %vm256_vm10, %v1358_v14  ;;  %v2796_v14 = vld [vmem:[%s4102_s3 + $0x270] sm:$0xff] }
 0xf6e   :  { %2772 = vmatmul.msk.f32.vlgmr.msrb.gmra.mxu1 %vm92_vm2, %v3668_v2 }
 0xf76   :  { %2773 = vmatmul.msk.f32.gmra.mxu1 %vm92_vm2, %v3679_v57 }
 0xfdb   :  { %v1449_v16 = vpop.f32.mrf.mxu1 }
 0xfdc   :  { %v1455_v17 = vmul.f32 0.35355338, %v1449_v16  ;;  %v2794_v16 = vld [vmem:[%s4102_s3 + $0x260] sm:$0xff] }
 0xfde   :  { %v1457_v18 = vadd.f32 %v1455_v17, %v3258_v50 }
 0xfe0   :  { %v1459_v20 = vsel %vm296_vm11, %v1457_v18, -inf }
 0xfe1   :  { %1460 = vmax.xlane.f32.xlu2 %v1459_v20  ;;  %v2885_v20 = vld [vmem:[%s4103_s4 + $0xf] ss:$0 sm:$0xff] }
 0xfe3   :  { %v1452_v21 = vpop.f32.mrf.mxu1 }
 0xfe4   :  { %v1456_v22 = vmul.f32 0.35355338, %v1452_v21 }
 0xfe6   :  { %v1458_v23 = vadd.f32 %v1456_v22, %v3265_v56 }
 0xfe8   :  { %v1462_v27 = vsel %vm296_vm11, %v1458_v23, -inf }
 0xfe9   :  { %1463 = vmax.xlane.f32.xlu0 %v1462_v27 }
 0xfeb   :  { %v1623_v28 = vpop.f32.mrf.mxu1 }
 0xfec   :  { %v1624_v32 = vadd.f32 %v2888_v29, %v1623_v28  ;;  %v2889_v28 = vld [vmem:[%s4103_s4 + $0x11] ss:$0 sm:$0xff] }
 0xff3   :  { %v1626_v30 = vpop.f32.mrf.mxu1 }
 0xff4   :  { %v1627_v31 = vadd.f32 %v2888_v29, %v1626_v30 }
 0xff6   :  { %2780 = vmatpush.xpose.msk.msrb.mxu3 %vm256_vm10, %v1627_v31 }
 0xffa   :  { %2781 = vmatpush.xpose.msk.msrb.mxu3 %vm256_vm10, %v1624_v32 }
0x1054   :  { %v1461_v33 = vpop.xlane.xlu2 %1460 }
0x1055   :  { %v1465_v34 = vsub.f32 %v1457_v18, %v1461_v33  ;;  %v1593_v18 = vpop.f32.mrf.mxu0 }
0x1056   :  { %v1594_v21 = vadd.f32 %v2885_v20, %v1593_v18 }
0x1057   :  { %v1467_v35 = vmul.f32 1.442695, %v1465_v34  ;;  %v1775_v34 = vld [vmem:[%s4104_s5 + $0xb8] sm:$0xff] }
0x1058   :  { %1797 = vmatpush.msra.mxu1 %v1775_v34 }
0x1059   :  { %2958 = vpow2.f32 %v1467_v35 }
0x105c   :  { %v1464_v36 = vpop.xlane.xlu0 %1463 }
0x105d   :  { %v1466_v37 = vsub.f32 %v1458_v23, %v1464_v36  ;;  %v1596_v23 = vpop.f32.mrf.mxu0 }
0x105e   :  { %v1597_v27 = vadd.f32 %v2885_v20, %v1596_v23  ;;  %v2816_v20 = vld [vmem:[%s4102_s3 + $0x2b0] sm:$0xff] }
0x105f   :  { %v2959_v39 = vpop.eup %2958  ;;  %v1469_v40 = vmul.f32 1.442695, %v1466_v37 }
0x1060   :  { %v1471_v42 = vsel %vm296_vm11, %v2959_v39, 0.0 }
0x1061   :  { %2960 = vpow2.f32 %v1469_v40  ;;  %1472 = vadd.xlane.f32.xlu1 %v1471_v42 }
0x1067   :  { %v2961_v43 = vpop.eup %2960 }
0x1068   :  { %v1474_v44 = vsel %vm296_vm11, %v2961_v43, 0.0 }
0x1069   :  { %1475 = vadd.xlane.f32.xlu2 %v1474_v44 }
0x10d4   :  { %v1473_v47 = vpop.xlane.xlu1 %1472 }
0x10d5   :  { %2962 = vrcp.f32 %v1473_v47  ;;  %v1488_v51 = vand.u32 2147483648, %v1473_v47  ;;  %v1486_v52 = vand.u32 2147483647, %v1473_v47  ;;  %vm1482_vm3 = vweird.f32 %v1473_v47 }
0x10d7   :  { %v1489_v54 = vor.u32 1.1754944e-38, %v1488_v51  ;;  %vm1487_vm5 = vcmp.eq.f32.partialorder %v1486_v52, 8.507059e+37 }
0x10db   :  { %v2963_v45 = vpop.eup %2962 }
0x10dc   :  { %v1478_v24 = vmul.f32 %v2963_v45, %v1473_v47  ;;  %v1476_v49 = vpop.xlane.xlu2 %1475  ;;  %vm1483_vm1 = vweird.f32 %v2963_v45 }
0x10dd   :  { %2964 = vrcp.f32 %v1476_v49  ;;  %vm1484_vm4 = vmor %vm1482_vm3, %vm1483_vm1  ;;  %v1503_v63 = vand.u32 2147483648, %v1476_v49  ;;  %v1501_v3 = vand.u32 2147483647, %v1476_v49  ;;  %vm1497_vm7 = vweird.f32 %v1476_v49 }
0x10de   :  { %v1479_v1 = vsub.f32 1.0, %v1478_v24 }
0x10df   :  { %v1504_v7 = vor.u32 1.1754944e-38, %v1503_v63  ;;  %vm1502_vm9 = vcmp.eq.f32.partialorder %v1501_v3, 8.507059e+37 }
0x10e0   :  { %v1480_v25 = vmul.f32 %v2963_v45, %v1479_v1 }
0x10e2   :  { %v1481_v53 = vadd.f32 %v2963_v45, %v1480_v25 }
0x10e3   :  { %v2965_v26 = vpop.eup %2964 }
0x10e4   :  { %v1485_v55 = vsel %vm1484_vm4, %v2963_v45, %v1481_v53  ;;  %v1493_v58 = vmul.f32 %v2965_v26, %v1476_v49  ;;  %vm1498_vm6 = vweird.f32 %v2965_v26 }
0x10e5   :  { %v1490_v59 = vsel %vm1487_vm5, %v1489_v54, %v1485_v55  ;;  %vm1499_vm8 = vmor %vm1497_vm7, %vm1498_vm6  ;;  %v2803_v55 = vld [vmem:[%s4102_s3 + $0x298] sm:$0xff] }
0x10e6   :  { %v1494_v60 = vsub.f32 1.0, %v1493_v58  ;;  %v1491_v61 = vmul.f32 %v2959_v39, %v1490_v59  ;;  %v2802_v58 = vld [vmem:[%s4102_s3 + $0x290] sm:$0xff]  ;;  %v2801_v59 = vld [vmem:[%s4102_s3 + $0x288] sm:$0xff] }
0x10e8   :  { %v1495_v0 = vmul.f32 %v2965_v26, %v1494_v60  ;;  %2758 = vmatmul.msk.f32.vlgmr.msrb.gmra.mxu2 %vm296_vm11, %v1491_v61  ;;  %v2800_v61 = vld [vmem:[%s4102_s3 + $0x280] sm:$0xff] }
0x10e9   :  { %1826 = vmatpush.msrb.mxu2 %v2791_v62 }
0x10ea   :  { %v1496_v5 = vadd.f32 %v2965_v26, %v1495_v0 }
0x10eb   :  { %1827 = vmatpush.msrb.mxu2 %v2790_v4 }
0x10ec   :  { %v1500_v8 = vsel %vm1499_vm8, %v2965_v26, %v1496_v5 }
0x10ed   :  { %v1505_v10 = vsel %vm1502_vm9, %v1504_v7, %v1500_v8  ;;  %1828 = vmatpush.msrb.mxu2 %v2789_v6 }
0x10ee   :  { %v1506_v11 = vmul.f32 %v2961_v43, %v1505_v10 }
0x10ef   :  { %1829 = vmatpush.msrb.mxu2 %v2788_v9 }
0x10f0   :  { %2759 = vmatmul.msk.f32.gmra.mxu2 %vm296_vm11, %v1506_v11 }
0x10f8   :  { %2778 = vmatmul.msk.f32.vlgmr.msra.gmra.mxu2 %vm92_vm2, %v3668_v2 }
0x1100   :  { %2779 = vmatmul.msk.f32.gmra.mxu2 %vm92_vm2, %v3679_v57 }
0x1108   :  { %2792 = vmatmul.msk.f32.vlgmr.msrb.gmra.mxu2 %vm92_vm2, %v3668_v2 }
0x1110   :  { %2793 = vmatmul.msk.f32.gmra.mxu2 %vm92_vm2, %v3679_v57 }
0x116b   :  { %v1530_v13 = vpop.f32.mrf.mxu2 }
0x116c   :  { %2760 = vmatmul.msk.f32.vlgmr.msra.gmra.mxu3 %vm256_vm10, %v1530_v13 }
0x116d   :  { %1856 = vmatpush.msra.mxu3 %v2797_v12 }
0x116f   :  { %1857 = vmatpush.msra.mxu3 %v2796_v14 }
0x1171   :  { %1858 = vmatpush.msra.mxu3 %v2795_v15  ;;  %v2817_v15 = vld [vmem:[%s4102_s3 + $0x2b8] sm:$0xff] }
0x1173   :  { %v1533_v17 = vpop.f32.mrf.mxu2  ;;  %1859 = vmatpush.msra.mxu3 %v2794_v16 }
0x1174   :  { %2761 = vmatmul.msk.f32.gmra.mxu3 %vm256_vm10, %v1533_v17 }
0x117b   :  { %v1653_v22 = vpop.f32.mrf.mxu2 }
0x117c   :  { %2782 = vmatmul.msk.f32.vlgmr.msrb.gmra.mxu3 %vm256_vm10, %v1594_v21  ;;  %v1654_v31 = vadd.f32 %v2889_v28, %v1653_v22  ;;  %v2815_v22 = vld [vmem:[%s4102_s3 + $0x2a8] sm:$0xff] }
0x1183   :  { %v1656_v29 = vpop.f32.mrf.mxu2 }
0x1184   :  { %v1657_v30 = vadd.f32 %v2889_v28, %v1656_v29  ;;  %2783 = vmatmul.msk.f32.gmra.mxu3 %vm256_vm10, %v1597_v27  ;;  %v2814_v28 = vld [vmem:[%s4102_s3 + $0x2a0] sm:$0xff] }
0x1186   :  { %1766 = vmatpush.msrb.mxu0 %v1657_v30 }
0x1188   :  { %1767 = vmatpush.msrb.mxu0 %v1654_v31  ;;  %v2823_v31 = vld [vmem:[%s4102_s3 + $0x2d8] sm:$0xff] }
0x118a   :  { %1886 = vmatpush.msra.mxu0 %v2803_v55 }
0x118c   :  { %2798 = vmatmul.msk.f32.vlgmr.msra.gmra.mxu3 %vm92_vm2, %v3668_v2  ;;  %1887 = vmatpush.msra.mxu0 %v2802_v58 }
0x118e   :  { %1888 = vmatpush.msra.mxu0 %v2801_v59 }
0x1190   :  { %1889 = vmatpush.msra.mxu0 %v2800_v61 }
0x1194   :  { %2799 = vmatmul.msk.f32.gmra.mxu3 %vm92_vm2, %v3679_v57 }
0x11ef   :  { %v3792_v32 = vpop.f32.mrf.mxu3 }
0x11f7   :  { %v3794_v33 = vpop.f32.mrf.mxu3 }
0x11ff   :  { %v1688_v35 = vpop.f32.mrf.mxu3 }
0x1200   :  { %v1694_v36 = vmul.f32 0.35355338, %v1688_v35  ;;  %v2822_v35 = vld [vmem:[%s4102_s3 + $0x2d0] sm:$0xff] }
0x1202   :  { %v1696_v37 = vadd.f32 %v1694_v36, %v3258_v50  ;;  %v2821_v36 = vld [vmem:[%s4102_s3 + $0x2c8] sm:$0xff] }
0x1204   :  { %v1698_v39 = vsel %vm296_vm11, %v1696_v37, -inf }
0x1205   :  { %1699 = vmax.xlane.f32.xlu0 %v1698_v39 }
0x1207   :  { %v1691_v40 = vpop.f32.mrf.mxu3 }
0x1208   :  { %v1695_v42 = vmul.f32 0.35355338, %v1691_v40  ;;  %v1831_v40 = vpop.f32.mrf.mxu2 }
0x120a   :  { %v1697_v43 = vadd.f32 %v1695_v42, %v3265_v56  ;;  %v2890_v42 = vld [vmem:[%s4103_s4 + $0x12] ss:$0 sm:$0xff] }
0x120c   :  { %v1701_v44 = vsel %vm296_vm11, %v1697_v43, -inf }
0x120d   :  { %1702 = vmax.xlane.f32.xlu1 %v1701_v44 }
0x120f   :  { %v1861_v41 = vpop.f32.mrf.mxu3 }
0x1210   :  { %v1862_v48 = vadd.f32 %v2892_v19, %v1861_v41  ;;  %v1834_v41 = vpop.f32.mrf.mxu2 }
0x1217   :  { %v1864_v46 = vpop.f32.mrf.mxu3 }
0x1218   :  { %v1865_v47 = vadd.f32 %v2892_v19, %v1864_v46  ;;  %v1835_v19 = vadd.f32 %v2890_v42, %v1834_v41  ;;  %v2893_v46 = vld [vmem:[%s4103_s4 + $0x14] ss:$0 sm:$0xff] }
0x121a   :  { %2806 = vmatpush.xpose.msk.msrb.mxu1 %vm256_vm10, %v1865_v47 }
0x121e   :  { %2807 = vmatpush.xpose.msk.msrb.mxu1 %vm256_vm10, %v1862_v48 }
0x1278   :  { %v1700_v45 = vpop.xlane.xlu0 %1699 }
0x1279   :  { %v1704_v24 = vsub.f32 %v1696_v37, %v1700_v45  ;;  %v2820_v37 = vld [vmem:[%s4102_s3 + $0x2c0] sm:$0xff] }
0x127b   :  { %v1706_v49 = vmul.f32 1.442695, %v1704_v24  ;;  %v2891_v24 = vld [vmem:[%s4106_s7 + $0x8] ss:$0 sm:$0xff] }
0x127d   :  { %2966 = vpow2.f32 %v1706_v49  ;;  %v1567_v49 = vadd.f32 %v2891_v24, %v3792_v32 }
0x1280   :  { %v1703_v1 = vpop.xlane.xlu1 %1702 }
0x1281   :  { %v1705_v51 = vsub.f32 %v1697_v43, %v1703_v1  ;;  %v1832_v43 = vadd.f32 %v2890_v42, %v1831_v40 }
0x1283   :  { %v2967_v25 = vpop.eup %2966  ;;  %v1708_v52 = vmul.f32 1.442695, %v1705_v51 }
0x1284   :  { %v1710_v53 = vsel %vm296_vm11, %v2967_v25, 0.0 }
0x1285   :  { %2968 = vpow2.f32 %v1708_v52  ;;  %1711 = vadd.xlane.f32.xlu2 %v1710_v53 }
0x128b   :  { %v2969_v26 = vpop.eup %2968 }
0x128c   :  { %v1713_v54 = vsel %vm296_vm11, %v2969_v26, 0.0 }
0x128d   :  { %1714 = vadd.xlane.f32.xlu0 %v1713_v54 }
0x12f8   :  { %v1712_v60 = vpop.xlane.xlu2 %1711 }
0x12f9   :  { %2970 = vrcp.f32 %v1712_v60  ;;  %v1727_v4 = vand.u32 2147483648, %v1712_v60  ;;  %v1725_v6 = vand.u32 2147483647, %v1712_v60  ;;  %vm1721_vm13 = vweird.f32 %v1712_v60 }
0x12fb   :  { %v1728_v9 = vor.u32 1.1754944e-38, %v1727_v4  ;;  %vm1726_vm15 = vcmp.eq.f32.partialorder %v1725_v6, 8.507059e+37 }
0x12ff   :  { %v2971_v62 = vpop.eup %2970 }
0x1300   :  { %v1717_v63 = vmul.f32 %v2971_v62, %v1712_v60  ;;  %v1715_v0 = vpop.xlane.xlu0 %1714  ;;  %vm1722_vm12 = vweird.f32 %v2971_v62 }
0x1301   :  { %2972 = vrcp.f32 %v1715_v0  ;;  %vm1723_vm14 = vmor %vm1721_vm13, %vm1722_vm12  ;;  %v1742_v16 = vand.u32 2147483648, %v1715_v0  ;;  %v1740_v18 = vand.u32 2147483647, %v1715_v0  ;;  %vm1736_vm1 = vweird.f32 %v1715_v0 }
0x1302   :  { %v1718_v3 = vsub.f32 1.0, %v1717_v63  ;;  %v2895_v63 = vld [vmem:[%s4103_s4 + $0x16] ss:$0 sm:$0xff] }
0x1303   :  { %v1743_v23 = vor.u32 1.1754944e-38, %v1742_v16  ;;  %vm1741_vm4 = vcmp.eq.f32.partialorder %v1740_v18, 8.507059e+37  ;;  %v2828_v16 = vld [vmem:[%s4102_s3 + $0x2f0] sm:$0xff] }
0x1304   :  { %v1719_v5 = vmul.f32 %v2971_v62, %v1718_v3 }
0x1306   :  { %v1720_v7 = vadd.f32 %v2971_v62, %v1719_v5 }
0x1307   :  { %v2973_v8 = vpop.eup %2972 }
0x1308   :  { %v1724_v10 = vsel %vm1723_vm14, %v2971_v62, %v1720_v7  ;;  %v1732_v11 = vmul.f32 %v2973_v8, %v1715_v0  ;;  %vm1737_vm0 = vweird.f32 %v2973_v8 }
0x1309   :  { %v1729_v12 = vsel %vm1726_vm15, %v1728_v9, %v1724_v10  ;;  %vm1738_vm3 = vmor %vm1736_vm1, %vm1737_vm0 }
0x130a   :  { %v1733_v13 = vsub.f32 1.0, %v1732_v11  ;;  %v1730_v14 = vmul.f32 %v2967_v25, %v1729_v12  ;;  %v1568_v25 = vadd.f32 %v2891_v24, %v3794_v33 }
0x130c   :  { %v1734_v17 = vmul.f32 %v2973_v8, %v1733_v13  ;;  %2784 = vmatmul.msk.f32.vlgmr.msrb.gmra.mxu0 %vm296_vm11, %v1730_v14 }
0x130d   :  { %2064 = vmatpush.msrb.mxu0 %v2817_v15  ;;  %v2829_v15 = vld [vmem:[%s4102_s3 + $0x2f8] sm:$0xff] }
0x130e   :  { %v1735_v21 = vadd.f32 %v2973_v8, %v1734_v17  ;;  %v2827_v17 = vld [vmem:[%s4102_s3 + $0x2e8] sm:$0xff] }
0x130f   :  { %2065 = vmatpush.msrb.mxu0 %v2816_v20  ;;  %v2826_v20 = vld [vmem:[%s4102_s3 + $0x2e0] sm:$0xff] }
0x1310   :  { %v1739_v27 = vsel %vm1738_vm3, %v2973_v8, %v1735_v21 }
0x1311   :  { %v1744_v29 = vsel %vm1741_vm4, %v1743_v23, %v1739_v27  ;;  %2066 = vmatpush.msrb.mxu0 %v2815_v22 }
0x1312   :  { %v1745_v30 = vmul.f32 %v2969_v26, %v1744_v29  ;;  %v2013_v26 = vld [vmem:[%s4104_s5 + $0xc0] sm:$0xff] }
0x1313   :  { %2067 = vmatpush.msrb.mxu0 %v2814_v28  ;;  %2035 = vmatpush.msrb.mxu3 %v2013_v26 }
0x1314   :  { %2785 = vmatmul.msk.f32.gmra.mxu0 %vm296_vm11, %v1745_v30 }
0x131c   :  { %2804 = vmatmul.msk.f32.vlgmr.msra.gmra.mxu0 %vm92_vm2, %v3668_v2 }
0x1324   :  { %2805 = vmatmul.msk.f32.gmra.mxu0 %vm92_vm2, %v3679_v57 }
0x132c   :  { %2818 = vmatmul.msk.f32.vlgmr.msrb.gmra.mxu0 %vm92_vm2, %v3668_v2 }
0x1334   :  { %2819 = vmatmul.msk.f32.gmra.mxu0 %vm92_vm2, %v3679_v57 }
0x1389   :  { %v1769_v34 = vpop.f32.mrf.mxu0 }
0x138a   :  { %2786 = vmatmul.msk.f32.vlgmr.msra.gmra.mxu1 %vm256_vm10, %v1769_v34 }
0x138b   :  { %2094 = vmatpush.msra.mxu1 %v2823_v31 }
0x138d   :  { %2095 = vmatpush.msra.mxu1 %v2822_v35 }
0x138f   :  { %2096 = vmatpush.msra.mxu1 %v2821_v36 }
0x1391   :  { %v1772_v39 = vpop.f32.mrf.mxu0  ;;  %2097 = vmatpush.msra.mxu1 %v2820_v37 }
0x1392   :  { %2787 = vmatmul.msk.f32.gmra.mxu1 %vm256_vm10, %v1772_v39 }
0x1399   :  { %v1891_v44 = vpop.f32.mrf.mxu0 }
0x139a   :  { %2808 = vmatmul.msk.f32.vlgmr.msrb.gmra.mxu1 %vm256_vm10, %v1832_v43  ;;  %v1892_v45 = vadd.f32 %v2893_v46, %v1891_v44 }
0x13a1   :  { %v1894_v47 = vpop.f32.mrf.mxu0 }
0x13a2   :  { %v1895_v48 = vadd.f32 %v2893_v46, %v1894_v47  ;;  %2809 = vmatmul.msk.f32.gmra.mxu1 %vm256_vm10, %v1835_v19 }
0x13a4   :  { %2004 = vmatpush.msra.mxu2 %v1895_v48 }
0x13a6   :  { %2005 = vmatpush.msra.mxu2 %v1892_v45 }
0x13a8   :  { %2124 = vmatpush.msrb.mxu2 %v2829_v15 }
0x13aa   :  { %2824 = vmatmul.msk.f32.vlgmr.msra.gmra.mxu1 %vm92_vm2, %v3668_v2  ;;  %2125 = vmatpush.msrb.mxu2 %v2828_v16 }
0x13ac   :  { %2126 = vmatpush.msrb.mxu2 %v2827_v17 }
0x13ae   :  { %2127 = vmatpush.msrb.mxu2 %v2826_v20 }
0x13b2   :  { %2825 = vmatmul.msk.f32.gmra.mxu1 %vm92_vm2, %v3679_v57 }
0x1407   :  { %v1799_v1 = vpop.f32.mrf.mxu1 }
0x1408   :  { %v3874_v51 = vadd.f32 %v1799_v1, %v1567_v49  ;;  %v2069_v1 = vpop.f32.mrf.mxu0 }
0x140f   :  { %v1802_v52 = vpop.f32.mrf.mxu1 }
0x1410   :  { %v3877_v53 = vadd.f32 %v1802_v52, %v1568_v25  ;;  %v2894_v25 = vld [vmem:[%s4103_s4 + $0x15] ss:$0 sm:$0xff] }
0x1411   :  { %v2070_v52 = vadd.f32 %v2894_v25, %v2069_v1 }
0x1417   :  { %v1926_v54 = vpop.f32.mrf.mxu1 }
0x1418   :  { %v1932_v55 = vmul.f32 0.35355338, %v1926_v54  ;;  %v2072_v54 = vpop.f32.mrf.mxu0 }
0x141a   :  { %v1934_v58 = vadd.f32 %v1932_v55, %v3258_v50  ;;  %v2073_v55 = vadd.f32 %v2894_v25, %v2072_v54 }
0x141c   :  { %v1936_v59 = vsel %vm296_vm11, %v1934_v58, -inf }
0x141d   :  { %1937 = vmax.xlane.f32.xlu1 %v1936_v59 }
0x141f   :  { %v1929_v32 = vpop.f32.mrf.mxu1 }
0x1420   :  { %v1933_v60 = vmul.f32 0.35355338, %v1929_v32 }
0x1422   :  { %v1935_v61 = vadd.f32 %v1933_v60, %v3265_v56 }
0x1424   :  { %v1939_v33 = vsel %vm296_vm11, %v1935_v61, -inf }
0x1425   :  { %1940 = vmax.xlane.f32.xlu2 %v1939_v33 }
0x1427   :  { %v2099_v62 = vpop.f32.mrf.mxu1 }
0x1428   :  { %v2100_v4 = vadd.f32 %v2895_v63, %v2099_v62 }
0x142f   :  { %v2102_v0 = vpop.f32.mrf.mxu1 }
0x1430   :  { %v2103_v3 = vadd.f32 %v2895_v63, %v2102_v0 }
0x1432   :  { %2832 = vmatpush.xpose.msk.msra.mxu3 %vm256_vm10, %v2103_v3 }
0x1436   :  { %2833 = vmatpush.xpose.msk.msra.mxu3 %vm256_vm10, %v2100_v4 }
0x1490   :  { %v1938_v5 = vpop.xlane.xlu1 %1937 }
0x1491   :  { %v1942_v6 = vsub.f32 %v1934_v58, %v1938_v5  ;;  %v2896_v58 = vld [vmem:[%s4103_s4 + $0x17] ss:$0 sm:$0xff] }
0x1493   :  { %v1944_v7 = vmul.f32 1.442695, %v1942_v6 }
0x1495   :  { %2974 = vpow2.f32 %v1944_v7 }
0x1498   :  { %v1941_v8 = vpop.xlane.xlu2 %1940 }
0x1499   :  { %v1943_v9 = vsub.f32 %v1935_v61, %v1941_v8 }
0x149b   :  { %v2975_v10 = vpop.eup %2974  ;;  %v1946_v11 = vmul.f32 1.442695, %v1943_v9 }
0x149c   :  { %v1948_v12 = vsel %vm296_vm11, %v2975_v10, 0.0 }
0x149d   :  { %2976 = vpow2.f32 %v1946_v11  ;;  %1949 = vadd.xlane.f32.xlu0 %v1948_v12 }
0x14a3   :  { %v2977_v13 = vpop.eup %2976 }
0x14a4   :  { %v1951_v14 = vsel %vm296_vm11, %v2977_v13, 0.0 }
0x14a5   :  { %1952 = vadd.xlane.f32.xlu1 %v1951_v14 }
0x1510   :  { %v1950_v18 = vpop.xlane.xlu0 %1949 }
0x1511   :  { %2978 = vrcp.f32 %v1950_v18  ;;  %v1965_v28 = vand.u32 2147483648, %v1950_v18  ;;  %v1963_v30 = vand.u32 2147483647, %v1950_v18  ;;  %vm1959_vm6 = vweird.f32 %v1950_v18 }
0x1513   :  { %v1966_v35 = vor.u32 1.1754944e-38, %v1965_v28  ;;  %vm1964_vm8 = vcmp.eq.f32.partialorder %v1963_v30, 8.507059e+37 }
0x1517   :  { %v2979_v21 = vpop.eup %2978 }
0x1518   :  { %v1955_v22 = vmul.f32 %v2979_v21, %v1950_v18  ;;  %v1953_v23 = vpop.xlane.xlu1 %1952  ;;  %vm1960_vm5 = vweird.f32 %v2979_v21 }
0x1519   :  { %2980 = vrcp.f32 %v1953_v23  ;;  %vm1961_vm7 = vmor %vm1959_vm6, %vm1960_vm5  ;;  %v1980_v43 = vand.u32 2147483648, %v1953_v23  ;;  %v1978_v41 = vand.u32 2147483647, %v1953_v23  ;;  %vm1974_vm12 = vweird.f32 %v1953_v23 }
0x151a   :  { %v1956_v27 = vsub.f32 1.0, %v1955_v22 }
0x151b   :  { %v1981_v46 = vor.u32 1.1754944e-38, %v1980_v43  ;;  %vm1979_vm14 = vcmp.eq.f32.partialorder %v1978_v41, 8.507059e+37 }
0x151c   :  { %v1957_v29 = vmul.f32 %v2979_v21, %v1956_v27 }
0x151e   :  { %v1958_v31 = vadd.f32 %v2979_v21, %v1957_v29 }
0x151f   :  { %v2981_v34 = vpop.eup %2980 }
0x1520   :  { %v1962_v36 = vsel %vm1961_vm7, %v2979_v21, %v1958_v31  ;;  %v1970_v37 = vmul.f32 %v2981_v34, %v1953_v23  ;;  %vm1975_vm9 = vweird.f32 %v2981_v34 }
0x1521   :  { %v1967_v39 = vsel %vm1964_vm8, %v1966_v35, %v1962_v36  ;;  %vm1976_vm13 = vmor %vm1974_vm12, %vm1975_vm9 }
0x1522   :  { %v1971_v40 = vsub.f32 1.0, %v1970_v37  ;;  %v1968_v42 = vmul.f32 %v2975_v10, %v1967_v39 }
0x1524   :  { %v1972_v44 = vmul.f32 %v2981_v34, %v1971_v40  ;;  %2810 = vmatmul.msk.f32.vlgmr.msra.gmra.mxu2 %vm296_vm11, %v1968_v42 }
0x1526   :  { %v1973_v19 = vadd.f32 %v2981_v34, %v1972_v44 }
0x1528   :  { %v1977_v47 = vsel %vm1976_vm13, %v2981_v34, %v1973_v19 }
0x1529   :  { %v1982_v48 = vsel %vm1979_vm14, %v1981_v46, %v1977_v47 }
0x152a   :  { %v1983_v45 = vmul.f32 %v2977_v13, %v1982_v48 }
0x152c   :  { %2811 = vmatmul.msk.f32.gmra.mxu2 %vm296_vm11, %v1983_v45 }
0x1534   :  { %2830 = vmatmul.msk.f32.vlgmr.msrb.gmra.mxu2 %vm92_vm2, %v3668_v2 }
0x153c   :  { %2831 = vmatmul.msk.f32.gmra.mxu2 %vm92_vm2, %v3679_v57 }
0x15a7   :  { %v2007_v24 = vpop.f32.mrf.mxu2 }
0x15a8   :  { %2812 = vmatmul.msk.f32.vlgmr.msrb.gmra.mxu3 %vm256_vm10, %v2007_v24 }
0x15af   :  { %v2010_v49 = vpop.f32.mrf.mxu2 }
0x15b0   :  { %2813 = vmatmul.msk.f32.gmra.mxu3 %vm256_vm10, %v2010_v49 }
0x15b7   :  { %v2129_v26 = vpop.f32.mrf.mxu2 }
0x15b8   :  { %2834 = vmatmul.msk.f32.vlgmr.msra.gmra.mxu3 %vm256_vm10, %v2070_v52  ;;  %v2130_v60 = vadd.f32 %v2896_v58, %v2129_v26 }
0x15bf   :  { %v2132_v59 = vpop.f32.mrf.mxu2 }
0x15c0   :  { %v2133_v32 = vadd.f32 %v2896_v58, %v2132_v59  ;;  %2835 = vmatmul.msk.f32.gmra.mxu3 %vm256_vm10, %v2073_v55 }
0x15c2   :  { %2242 = vmatpush.msra.mxu0 %v2133_v32 }
0x15c4   :  { %2243 = vmatpush.msra.mxu0 %v2130_v60 }
0x162b   :  { %v2037_v61 = vpop.f32.mrf.mxu3 }
0x162c   :  { %v3922_v33 = vadd.f32 %v2037_v61, %v3874_v51 }
0x1633   :  { %v2040_v62 = vpop.f32.mrf.mxu3 }
0x1634   :  { %v3925_v63 = vadd.f32 %v2040_v62, %v3877_v53 }
0x163b   :  { %v2164_v0 = vpop.f32.mrf.mxu3 }
0x163c   :  { %v2170_v3 = vmul.f32 0.35355338, %v2164_v0 }
0x163e   :  { %v2172_v4 = vadd.f32 %v2170_v3, %v3258_v50  ;;  %v2842_v3 = vld [vmem:[%s4105_s6 + $0x30] sm:$0xff] }
0x1640   :  { %v2174_v5 = vsel %vm296_vm11, %v2172_v4, -inf }
0x1641   :  { %2175 = vmax.xlane.f32.xlu2 %v2174_v5  ;;  %v2840_v5 = vld [vmem:[%s4105_s6 + $0x20] sm:$0xff] }
0x1643   :  { %v2167_v6 = vpop.f32.mrf.mxu3 }
0x1644   :  { %v2171_v7 = vmul.f32 0.35355338, %v2167_v6 }
0x1646   :  { %v2173_v8 = vadd.f32 %v2171_v7, %v3265_v56  ;;  %v2251_v56 = vld [vmem:[%s4104_s5 + $0xc8] sm:$0xff] }
0x1647   :  { %2273 = vmatpush.msrb.mxu1 %v2251_v56 }
0x1648   :  { %v2177_v9 = vsel %vm296_vm11, %v2173_v8, -inf }
0x1649   :  { %2178 = vmax.xlane.f32.xlu0 %v2177_v9  ;;  %v2406_v9 = vld [vmem:[%s4104_s5 + $0x1c8] sm:$0xff] }
0x164a   :  { %2409 = vmatpush.msrb.mxu3 %v2406_v9 }
0x16b4   :  { %v2176_v51 = vpop.xlane.xlu2 %2175 }
0x16b5   :  { %v2180_v10 = vsub.f32 %v2172_v4, %v2176_v51  ;;  %v2841_v4 = vld [vmem:[%s4105_s6 + $0x28] sm:$0xff]  ;;  %v2405_v51 = vld [vmem:[%s4104_s5 + $0x1c0] sm:$0xff] }
0x16b6   :  { %2410 = vmatpush.msrb.mxu3 %v2405_v51  ;;  %v2900_v51 = vld [vmem:[%s4106_s7 + $0xb] ss:$0 sm:$0xff] }
0x16b7   :  { %v2182_v11 = vmul.f32 1.442695, %v2180_v10  ;;  %v2404_v10 = vld [vmem:[%s4104_s5 + $0x1b8] sm:$0xff] }
0x16b8   :  { %2411 = vmatpush.msrb.mxu3 %v2404_v10 }
0x16b9   :  { %2982 = vpow2.f32 %v2182_v11 }
0x16bc   :  { %v2179_v53 = vpop.xlane.xlu0 %2178 }
0x16bd   :  { %v2181_v12 = vsub.f32 %v2173_v8, %v2179_v53 }
0x16bf   :  { %v2983_v13 = vpop.eup %2982  ;;  %v2184_v14 = vmul.f32 1.442695, %v2181_v12 }
0x16c0   :  { %v2186_v50 = vsel %vm296_vm11, %v2983_v13, 0.0 }
0x16c1   :  { %2984 = vpow2.f32 %v2184_v14  ;;  %2187 = vadd.xlane.f32.xlu1 %v2186_v50 }
0x16c7   :  { %v2985_v15 = vpop.eup %2984 }
0x16c8   :  { %v2189_v16 = vsel %vm296_vm11, %v2985_v15, 0.0 }
0x16c9   :  { %2190 = vadd.xlane.f32.xlu2 %v2189_v16 }
0x1734   :  { %v2188_v17 = vpop.xlane.xlu1 %2187 }
0x1735   :  { %2986 = vrcp.f32 %v2188_v17  ;;  %v2203_v23 = vand.u32 2147483648, %v2188_v17  ;;  %v2201_v28 = vand.u32 2147483647, %v2188_v17  ;;  %vm2197_vm0 = vweird.f32 %v2188_v17 }
0x1737   :  { %v2204_v31 = vor.u32 1.1754944e-38, %v2203_v23  ;;  %vm2202_vm3 = vcmp.eq.f32.partialorder %v2201_v28, 8.507059e+37  ;;  %v2898_v23 = vld [vmem:[%s4106_s7 + $0xa] ss:$0 sm:$0xff] }
0x173b   :  { %v2987_v18 = vpop.eup %2986 }
0x173c   :  { %v2193_v20 = vmul.f32 %v2987_v18, %v2188_v17  ;;  %v2191_v21 = vpop.xlane.xlu2 %2190  ;;  %vm2198_vm15 = vweird.f32 %v2987_v18 }
0x173d   :  { %2988 = vrcp.f32 %v2191_v21  ;;  %vm2199_vm1 = vmor %vm2197_vm0, %vm2198_vm15  ;;  %v2218_v40 = vand.u32 2147483648, %v2191_v21  ;;  %v2216_v43 = vand.u32 2147483647, %v2191_v21  ;;  %vm2212_vm5 = vweird.f32 %v2191_v21 }
0x173e   :  { %v2194_v22 = vsub.f32 1.0, %v2193_v20  ;;  %v2897_v20 = vld [vmem:[%s4106_s7 + $0x9] ss:$0 sm:$0xff] }
0x173f   :  { %v2219_v41 = vor.u32 1.1754944e-38, %v2218_v40  ;;  %vm2217_vm7 = vcmp.eq.f32.partialorder %v2216_v43, 8.507059e+37  ;;  %v2403_v40 = vld [vmem:[%s4104_s5 + $0x1b0] sm:$0xff]  ;;  %v2401_v43 = vld [vmem:[%s4104_s5 + $0x1a0] sm:$0xff] }
0x1740   :  { %v2195_v27 = vmul.f32 %v2987_v18, %v2194_v22  ;;  %2412 = vmatpush.msrb.mxu3 %v2403_v40 }
0x1742   :  { %v2196_v29 = vadd.f32 %v2987_v18, %v2195_v27 }
0x1743   :  { %v2989_v30 = vpop.eup %2988 }
0x1744   :  { %v2200_v34 = vsel %vm2199_vm1, %v2987_v18, %v2196_v29  ;;  %v2208_v35 = vmul.f32 %v2989_v30, %v2191_v21  ;;  %vm2213_vm4 = vweird.f32 %v2989_v30 }
0x1745   :  { %v2205_v36 = vsel %vm2202_vm3, %v2204_v31, %v2200_v34  ;;  %vm2214_vm6 = vmor %vm2212_vm5, %vm2213_vm4 }
0x1746   :  { %v2209_v37 = vsub.f32 1.0, %v2208_v35  ;;  %v2206_v39 = vmul.f32 %v2983_v13, %v2205_v36 }
0x1748   :  { %v2210_v42 = vmul.f32 %v2989_v30, %v2209_v37  ;;  %2836 = vmatmul.msk.f32.vlgmr.msra.gmra.mxu0 %vm296_vm11, %v2206_v39 }
0x174a   :  { %v2211_v44 = vadd.f32 %v2989_v30, %v2210_v42  ;;  %v2402_v42 = vld [vmem:[%s4104_s5 + $0x1a8] sm:$0xff] }
0x174b   :  { %2413 = vmatpush.msrb.mxu3 %v2402_v42 }
0x174c   :  { %v2215_v19 = vsel %vm2214_vm6, %v2989_v30, %v2211_v44  ;;  %v2400_v44 = vld [vmem:[%s4104_s5 + $0x198] sm:$0xff] }
0x174d   :  { %v2220_v46 = vsel %vm2217_vm7, %v2219_v41, %v2215_v19  ;;  %2414 = vmatpush.msrb.mxu3 %v2401_v43  ;;  %v2399_v41 = vld [vmem:[%s4104_s5 + $0x190] sm:$0xff]  ;;  %v2398_v19 = vld [vmem:[%s4104_s5 + $0x188] sm:$0xff] }
0x174e   :  { %v2221_v47 = vmul.f32 %v2985_v15, %v2220_v46  ;;  %v2397_v46 = vld [vmem:[%s4104_s5 + $0x180] sm:$0xff] }
0x174f   :  { %2415 = vmatpush.msrb.mxu3 %v2400_v44 }
0x1750   :  { %2837 = vmatmul.msk.f32.gmra.mxu0 %vm296_vm11, %v2221_v47  ;;  %v2396_v47 = vld [vmem:[%s4104_s5 + $0x178] sm:$0xff] }
0x1751   :  { %2416 = vmatpush.msrb.mxu3 %v2399_v41 }
0x1753   :  { %2417 = vmatpush.msrb.mxu3 %v2398_v19 }
0x1755   :  { %2418 = vmatpush.msrb.mxu3 %v2397_v46 }
0x1757   :  { %2419 = vmatpush.msrb.mxu3 %v2396_v47 }
0x17c5   :  { %v2245_v48 = vpop.f32.mrf.mxu0 }
0x17c6   :  { %2838 = vmatmul.msk.f32.vlgmr.msrb.gmra.mxu1 %vm256_vm10, %v2245_v48  ;;  %v2395_v48 = vld [vmem:[%s4104_s5 + $0x170] sm:$0xff] }
0x17c7   :  { %2420 = vmatpush.msrb.mxu3 %v2395_v48 }
0x17cd   :  { %v2248_v45 = vpop.f32.mrf.mxu0 }
0x17ce   :  { %2839 = vmatmul.msk.f32.gmra.mxu1 %vm256_vm10, %v2248_v45  ;;  %v2394_v45 = vld [vmem:[%s4104_s5 + $0x168] sm:$0xff] }
0x17cf   :  { %2421 = vmatpush.msrb.mxu3 %v2394_v45 }
0x1843   :  { %v2275_v24 = vpop.f32.mrf.mxu1 }
0x1844   :  { %v2281_v49 = vadd.f32 %v2275_v24, %v3922_v33  ;;  %v2393_v24 = vld [vmem:[%s4104_s5 + $0x160] sm:$0xff] }
0x1845   :  { %2422 = vmatpush.msrb.mxu3 %v2393_v24 }
0x1846   :  { %v2283_v1 = vadd.f32 %v2281_v49, %v3668_v2  ;;  %v2392_v49 = vld [vmem:[%s4104_s5 + $0x158] sm:$0xff] }
0x1847   :  { %2423 = vmatpush.msrb.mxu3 %v2392_v49 }
0x1848   :  { %v2287_v25 = vsel %vm92_vm2, %v2283_v1, 0.0 }
0x1849   :  { %2288 = vadd.xlane.f32.xlu0 %v2287_v25  ;;  %v2899_v25 = vld [vmem:[%s4107_s8 + $0x1] ss:$0 sm:$0xff] }
0x184b   :  { %v2278_v52 = vpop.f32.mrf.mxu1 }
0x184c   :  { %v2282_v26 = vadd.f32 %v2278_v52, %v3925_v63 }
0x184e   :  { %v2284_v54 = vadd.f32 %v2282_v26, %v3679_v57  ;;  %v2843_v57 = vld [vmem:[%s4105_s6 + $0x38] sm:$0xff] }
0x184f   :  { %2362 = vmatpush.msra.mxu2 %v2843_v57 }
0x1850   :  { %v2290_v55 = vsel %vm92_vm2, %v2284_v54, 0.0 }
0x1851   :  { %2291 = vadd.xlane.f32.xlu1 %v2290_v55  ;;  %2363 = vmatpush.msra.mxu2 %v2842_v3 }
0x1853   :  { %2364 = vmatpush.msra.mxu2 %v2841_v4 }
0x1855   :  { %2365 = vmatpush.msra.mxu2 %v2840_v5 }
0x18bc   :  { %v2289_v58 = vpop.xlane.xlu0 %2288 }
0x18bd   :  { %v2293_v59 = vmul.f32 %v2289_v58, %v3152_v38 }
0x18bf   :  { %v2295_v32 = vsub.f32 %v2283_v1, %v2293_v59  ;;  %v2391_v1 = vld [vmem:[%s4104_s5 + $0x150] sm:$0xff] }
0x18c0   :  { %2424 = vmatpush.msrb.mxu3 %v2391_v1 }
0x18c1   :  { %v2297_v60 = vmul.f32 %v2295_v32, %v2295_v32 }
0x18c3   :  { %v2299_v61 = vsel %vm92_vm2, %v2297_v60, 0.0 }
0x18c4   :  { %2300 = vadd.xlane.f32.xlu2 %v2299_v61  ;;  %v2292_v2 = vpop.xlane.xlu1 %2291 }
0x18c5   :  { %v2294_v33 = vmul.f32 %v2292_v2, %v3152_v38 }
0x18c7   :  { %v2296_v62 = vsub.f32 %v2284_v54, %v2294_v33 }
0x18c9   :  { %v2298_v0 = vmul.f32 %v2296_v62, %v2296_v62 }
0x18cb   :  { %v2302_v63 = vsel %vm92_vm2, %v2298_v0, 0.0 }
0x18cc   :  { %2303 = vadd.xlane.f32.xlu0 %v2302_v63 }
0x1937   :  { %v2301_v6 = vpop.xlane.xlu2 %2300 }
0x1938   :  { %v2305_v7 = vmul.f32 %v2301_v6, %v3152_v38 }
0x193a   :  { %v2307_v8 = vadd.f32 1e-12, %v2305_v7 }
0x193c   :  { %2990 = vrsqrt.f32 %v2307_v8  ;;  %vm2315_vm8 = vweird.f32 %v2307_v8 }
0x193f   :  { %v2304_v11 = vpop.xlane.xlu0 %2303 }
0x1940   :  { %v2306_v53 = vmul.f32 %v2304_v11, %v3152_v38 }
0x1942   :  { %v2991_v12 = vpop.eup %2990  ;;  %v2308_v13 = vadd.f32 1e-12, %v2306_v53 }
0x1943   :  { %v2310_v14 = vmul.f32 %v2991_v12, %v2307_v8  ;;  %vm2316_vm10 = vweird.f32 %v2991_v12 }
0x1944   :  { %2992 = vrsqrt.f32 %v2308_v13  ;;  %vm2317_vm9 = vmor %vm2315_vm8, %vm2316_vm10  ;;  %vm2325_vm13 = vweird.f32 %v2308_v13 }
0x1945   :  { %v2311_v50 = vmul.f32 %v2991_v12, %v2310_v14 }
0x1947   :  { %v2312_v15 = vmul.f32 0.5, %v2311_v50 }
0x1949   :  { %v2313_v16 = vsub.f32 1.5, %v2312_v15 }
0x194a   :  { %v2993_v56 = vpop.eup %2992 }
0x194b   :  { %v2314_v17 = vmul.f32 %v2991_v12, %v2313_v16  ;;  %v2320_v18 = vmul.f32 %v2993_v56, %v2308_v13  ;;  %vm2326_vm12 = vweird.f32 %v2993_v56 }
0x194c   :  { %vm2327_vm14 = vmor %vm2325_vm13, %vm2326_vm12 }
0x194d   :  { %v2318_v21 = vsel %vm2317_vm9, %v2991_v12, %v2314_v17  ;;  %v2321_v22 = vmul.f32 %v2993_v56, %v2320_v18 }
0x194e   :  { %v2329_v27 = vmul.f32 %v2318_v21, %v2295_v32 }
0x194f   :  { %v2322_v28 = vmul.f32 0.5, %v2321_v22 }
0x1950   :  { %v2332_v29 = vmul.f32 %v2897_v20, %v2329_v27 }
0x1951   :  { %v2323_v30 = vsub.f32 1.5, %v2322_v28 }
0x1952   :  { %v3979_v31 = vadd.f32 %v2898_v23, %v2332_v29 }
0x1953   :  { %v2324_v34 = vmul.f32 %v2993_v56, %v2323_v30 }
0x1954   :  { %2844 = vmatmul.msk.f32.vlgmr.msra.gmra.mxu2 %vm92_vm2, %v3979_v31 }
0x1955   :  { %v2328_v35 = vsel %vm2327_vm14, %v2993_v56, %v2324_v34 }
0x1956   :  { %v2330_v36 = vmul.f32 %v2328_v35, %v2296_v62 }
0x1958   :  { %v2333_v37 = vmul.f32 %v2897_v20, %v2330_v36 }
0x195a   :  { %v3983_v39 = vadd.f32 %v2898_v23, %v2333_v37 }
0x195c   :  { %2845 = vmatmul.msk.f32.gmra.mxu2 %vm92_vm2, %v3983_v39 }
0x19d7   :  { %v2367_v52 = vpop.f32.mrf.mxu2 }
0x19d8   :  { %v2368_v26 = vadd.f32 %v2899_v25, %v2367_v52 }
0x19da   :  { %v2373_v54 = vmul.f32 %v2368_v26, %v2368_v26 }
0x19dc   :  { %v2375_v55 = vmul.f32 %v2373_v54, %v2368_v26 }
0x19de   :  { %v2377_v58 = vmul.f32 0.044715, %v2375_v55 }
0x19df   :  { %v2370_v59 = vpop.f32.mrf.mxu2 }
0x19e0   :  { %v2379_v32 = vadd.f32 %v2377_v58, %v2368_v26  ;;  %v2371_v60 = vadd.f32 %v2899_v25, %v2370_v59  ;;  %v2486_v59 = vld [vmem:[%s4101_s2 + $0x10] sm:$0x3] }
0x19e2   :  { %v2381_v61 = vmul.f32 0.7978846, %v2379_v32  ;;  %v2374_v2 = vmul.f32 %v2371_v60, %v2371_v60  ;;  %v2513_v32 = vld [vmem:[%s4104_s5 + $0x1e8] sm:$0xff] }
0x19e4   :  { %2994 = vtanh.f32 %v2381_v61  ;;  %v2376_v33 = vmul.f32 %v2374_v2, %v2371_v60  ;;  %v2511_v61 = vld [vmem:[%s4104_s5 + $0x1d8] sm:$0xff]  ;;  %v2510_v2 = vld [vmem:[%s4104_s5 + $0x1d0] sm:$0xff] }
0x19e6   :  { %v2378_v62 = vmul.f32 0.044715, %v2376_v33 }
0x19e8   :  { %v2380_v0 = vadd.f32 %v2378_v62, %v2371_v60  ;;  %v2543_v62 = vld [vmem:[%s4106_s7 + $0x12] sm:$0x1] }
0x19ea   :  { %v2995_v63 = vpop.eup %2994  ;;  %v2382_v57 = vmul.f32 0.7978846, %v2380_v0  ;;  %v2544_v0 = vadd.f32 1e-05, %v2543_v62 }
0x19eb   :  { %v2385_v3 = vadd.f32 1.0, %v2995_v63  ;;  %v2851_v63 = vld [vmem:[%s4105_s6 + $0x58] sm:$0xff] }
0x19ec   :  { %2996 = vtanh.f32 %v2382_v57  ;;  %2585 = vmatpush.msra.mxu1 %v2851_v63  ;;  %v2850_v57 = vld [vmem:[%s4105_s6 + $0x50] sm:$0xff] }
0x19ed   :  { %v2387_v4 = vmul.f32 0.5, %v2385_v3 }
0x19ee   :  { %2586 = vmatpush.msra.mxu1 %v2850_v57 }
0x19ef   :  { %v2389_v5 = vmul.f32 %v2387_v4, %v2368_v26  ;;  %v2902_v26 = vld [vmem:[%s4106_s7 + $0xd] ss:$0 sm:$0xff] }
0x19f0   :  { %v2849_v4 = vld [vmem:[%s4105_s6 + $0x48] sm:$0xff] }
0x19f1   :  { %2425 = vmatmul.f32.vlgmr.msrb.gmra.mxu3 %v2389_v5  ;;  %2587 = vmatpush.msra.mxu1 %v2849_v4  ;;  %v2848_v5 = vld [vmem:[%s4105_s6 + $0x40] sm:$0xff] }
0x19f2   :  { %v2997_v6 = vpop.eup %2996 }
0x19f3   :  { %v2386_v7 = vadd.f32 1.0, %v2997_v6  ;;  %2588 = vmatpush.msra.mxu1 %v2848_v5 }
0x19f5   :  { %v2388_v8 = vmul.f32 0.5, %v2386_v7 }
0x19f7   :  { %v2390_v9 = vmul.f32 %v2388_v8, %v2371_v60  ;;  %v2512_v60 = vld [vmem:[%s4104_s5 + $0x1e0] sm:$0xff] }
0x19f9   :  { %2428 = vmatmul.f32.gmra.mxu3 %v2390_v9  ;;  %v2903_v9 = vld [vmem:[%s4106_s7 + $0xe] ss:$0 sm:$0xff] }
0x1a74   :  { %v2426_v10 = vpop.f32.mrf.mxu3 }
0x1a75   :  { %v2427_v11 = vadd.f32 %v2900_v51, %v2426_v10 }
0x1a77   :  { %v2432_v53 = vadd.f32 %v2427_v11, %v3979_v31 }
0x1a79   :  { %v2436_v12 = vsel %vm92_vm2, %v2432_v53, 0.0 }
0x1a7a   :  { %2437 = vadd.xlane.f32.xlu2 %v2436_v12 }
0x1a7c   :  { %v2429_v13 = vpop.f32.mrf.mxu3 }
0x1a7d   :  { %v2430_v14 = vadd.f32 %v2900_v51, %v2429_v13  ;;  %v2904_v13 = vld [vmem:[%s4106_s7 + $0x11] ss:$0 sm:$0xff] }
0x1a7f   :  { %v2433_v50 = vadd.f32 %v2430_v14, %v3983_v39 }
0x1a81   :  { %v2439_v15 = vsel %vm92_vm2, %v2433_v50, 0.0 }
0x1a82   :  { %2440 = vadd.xlane.f32.xlu1 %v2439_v15 }
0x1aed   :  { %v2438_v16 = vpop.xlane.xlu2 %2437 }
0x1aee   :  { %v2442_v56 = vmul.f32 %v2438_v16, %v3152_v38  ;;  %v2905_v16 = vld [vmem:[%s4106_s7 + $0xf] ss:$0 sm:$0xff] }
0x1af0   :  { %v2444_v17 = vsub.f32 %v2432_v53, %v2442_v56 }
0x1af2   :  { %v2446_v18 = vmul.f32 %v2444_v17, %v2444_v17 }
0x1af4   :  { %v2448_v20 = vsel %vm92_vm2, %v2446_v18, 0.0 }
0x1af5   :  { %2449 = vadd.xlane.f32.xlu1 %v2448_v20  ;;  %v2441_v21 = vpop.xlane.xlu1 %2440 }
0x1af6   :  { %v2443_v22 = vmul.f32 %v2441_v21, %v3152_v38  ;;  %v2907_v21 = vld [vmem:[%s4107_s8 + $0x2] ss:$0 sm:$0xff]  ;;  %s2621_s8 = sshll.u32 %s4108_s9, 4  ;;  %s2622_s8 = int_to_ptr.hbm [resolvable:$true] %s2621_s8 }
0x1af8   :  { %v2445_v23 = vsub.f32 %v2433_v50, %v2443_v22 }
0x1afa   :  { %v2447_v27 = vmul.f32 %v2445_v23, %v2445_v23 }
0x1afc   :  { %v2451_v28 = vsel %vm92_vm2, %v2447_v27, 0.0 }
0x1afd   :  { %2452 = vadd.xlane.f32.xlu0 %v2451_v28 }
0x1b68   :  { %v2450_v29 = vpop.xlane.xlu1 %2449 }
0x1b69   :  { %v2454_v30 = vmul.f32 %v2450_v29, %v3152_v38 }
0x1b6b   :  { %v2456_v31 = vadd.f32 1e-12, %v2454_v30 }
0x1b6d   :  { %2998 = vrsqrt.f32 %v2456_v31  ;;  %vm2464_vm0 = vweird.f32 %v2456_v31 }
0x1b70   :  { %v2453_v34 = vpop.xlane.xlu0 %2452 }
0x1b71   :  { %v2455_v35 = vmul.f32 %v2453_v34, %v3152_v38  ;;  %v2901_v38 = vld [vmem:[%s4106_s7 + $0xc] ss:$0 sm:$0xff] }
0x1b73   :  { %v2999_v36 = vpop.eup %2998  ;;  %v2457_v37 = vadd.f32 1e-12, %v2455_v35 }
0x1b74   :  { %v2459_v39 = vmul.f32 %v2999_v36, %v2456_v31  ;;  %vm2465_vm15 = vweird.f32 %v2999_v36 }
0x1b75   :  { %3000 = vrsqrt.f32 %v2457_v37  ;;  %vm2466_vm1 = vmor %vm2464_vm0, %vm2465_vm15  ;;  %vm2474_vm4 = vweird.f32 %v2457_v37 }
0x1b76   :  { %v2460_v40 = vmul.f32 %v2999_v36, %v2459_v39  ;;  %3002 = vrsqrt.f32 %v2544_v0 }
0x1b78   :  { %v2461_v42 = vmul.f32 0.5, %v2460_v40 }
0x1b7a   :  { %v2462_v43 = vsub.f32 1.5, %v2461_v42 }
0x1b7b   :  { %v3001_v44 = vpop.eup %3000 }
0x1b7c   :  { %v2469_v41 = vmul.f32 %v3001_v44, %v2457_v37  ;;  %v2463_v19 = vmul.f32 %v2999_v36, %v2462_v43  ;;  %vm2475_vm3 = vweird.f32 %v3001_v44  ;;  %v3003_v3 = vpop.eup %3002 }
0x1b7d   :  { %vm2476_vm5 = vmor %vm2474_vm4, %vm2475_vm3  ;;  %v2546_v6 = vmul.f32 %v3003_v3, %v2544_v0  ;;  %vm2552_vm6 = vweird.f32 %v3003_v3 }
0x1b7e   :  { %v2470_v46 = vmul.f32 %v3001_v44, %v2469_v41  ;;  %v2467_v48 = vsel %vm2466_vm1, %v2999_v36, %v2463_v19 }
0x1b7f   :  { %v2478_v49 = vmul.f32 %v2467_v48, %v2444_v17  ;;  %v2547_v7 = vmul.f32 %v3003_v3, %v2546_v6  ;;  %v2906_v17 = vld [vmem:[%s4106_s7 + $0x10] ss:$0 sm:$0xff]  ;;  %s3039_s7 = smov [#allocation2]  }
0x1b80   :  { %v2471_v47 = vmul.f32 0.5, %v2470_v46  ;;  %s2619_s1 = sshll.u32 %s3039_s7, 4  ;;  %s2620_s1 = int_to_ptr.vmem [resolvable:$true] %s2619_s1 }
0x1b81   :  { %v2481_v54 = vmul.f32 %v2901_v38, %v2478_v49  ;;  %v2548_v8 = vmul.f32 0.5, %v2547_v7 }
0x1b82   :  { %v2472_v45 = vsub.f32 1.5, %v2471_v47 }
0x1b83   :  { %v2484_v58 = vadd.f32 %v2902_v26, %v2481_v54  ;;  %v2549_v51 = vsub.f32 1.5, %v2548_v8 }
0x1b84   :  { %v2473_v24 = vmul.f32 %v3001_v44, %v2472_v45 }
0x1b85   :  { %v2550_v53 = vmul.f32 %v3003_v3, %v2549_v51 }
0x1b86   :  { %v2477_v1 = vsel %vm2476_vm5, %v3001_v44, %v2473_v24 }
0x1b87   :  { %v2479_v25 = vmul.f32 %v2477_v1, %v2445_v23 }
0x1b89   :  { %v2482_v52 = vmul.f32 %v2901_v38, %v2479_v25 }
0x1b8b   :  { %v2485_v55 = vadd.f32 %v2902_v26, %v2482_v52 }
0x1b8d   :  { %2504 = vmatpush.msrb.mxu0 %v2485_v55 }
0x1b8f   :  { %2505 = vmatpush.msrb.mxu0 %v2484_v58 }
0x1b90   :  { %2846 = vmatmul.msk.f32.vlgmr.msrb.gmra.mxu0 %vm296_vm11, %v2486_v59  ;;  %vm2551_vm11 = vweird.f32 %v2544_v0 }
0x1b91   :  { %2531 = vmatpush.msra.mxu0 %v2513_v32  ;;  %vm2553_vm7 = vmor %vm2551_vm11, %vm2552_vm6 }
0x1b92   :  { %v2554_v12 = vsel %vm2553_vm7, %v3003_v3, %v2550_v53 }
0x1b93   :  { %2532 = vmatpush.msra.mxu0 %v2512_v60  ;;  %v2555_v14 = vperm.slane %v2554_v12, 0 }
0x1b95   :  { %2533 = vmatpush.msra.mxu0 %v2511_v61 }
0x1b97   :  { %2534 = vmatpush.msra.mxu0 %v2510_v2 }
0x1c0d   :  { %v2507_v33 = vpop.f32.mrf.mxu0 }
0x1c0e   :  { %2847 = vmatmul.msk.f32.vlgmr.msra.gmra.mxu0 %vm92_vm2, %v2507_v33 }
0x1c8b   :  { %v2536_v10 = vpop.f32.mrf.mxu0 }
0x1c8c   :  { %v2537_v11 = vadd.f32 %v2903_v9, %v2536_v10 }
0x1c8e   :  { %3004 = vtanh.f32 %v2537_v11 }
0x1c94   :  { %v3005_v50 = vpop.eup %3004 }
0x1c95   :  { %v2542_v15 = vsub.f32 %v3005_v50, %v2904_v13 }
0x1c97   :  { %v2556_v56 = vmul.f32 %v2555_v14, %v2542_v15 }
0x1c99   :  { %v2559_v18 = vmul.f32 %v2905_v16, %v2556_v56 }
0x1c9b   :  { %v2562_v20 = vadd.f32 %v2906_v17, %v2559_v18 }
0x1c9d   :  { %2852 = vmatmul.msk.f32.vlgmr.msra.gmra.mxu1 %vm92_vm2, %v2562_v20 }
0x1d1a   :  { %v2590_v22 = vpop.f32.mrf.mxu1 }
0x1d1b   :  { %v2591_v23 = vadd.f32 %v2907_v21, %v2590_v22 }
0x1d1d   :  { %v2593_v27 = vmax.f32 %v2591_v23, 0.0 }
0x1d1f   :  { %v2853_v28 = vmul.f32 -1.442695, %v2593_v27 }
0x1d21   :  { %3006 = vpow2.f32 %v2853_v28 }
0x1d27   :  { %v3007_v29 = vpop.eup %3006 }
0x1d28   :  { %v2597_v30 = vadd.f32 1.0, %v3007_v29 }
0x1d2a   :  { %3008 = vrcp.f32 %v2597_v30  ;;  %v2609_v36 = vand.u32 2147483648, %v2597_v30  ;;  %v2607_v39 = vand.u32 2147483647, %v2597_v30  ;;  %vm2603_vm2 = vweird.f32 %v2597_v30 }
0x1d2c   :  { %v2610_v42 = vor.u32 1.1754944e-38, %v2609_v36  ;;  %vm2608_vm9 = vcmp.eq.f32.partialorder %v2607_v39, 8.507059e+37 }
0x1d30   :  { %v3009_v31 = vpop.eup %3008 }
0x1d31   :  { %v2599_v34 = vmul.f32 %v3009_v31, %v2597_v30  ;;  %vm2604_vm10 = vweird.f32 %v3009_v31 }
0x1d32   :  { %vm2605_vm8 = vmor %vm2603_vm2, %vm2604_vm10 }
0x1d33   :  { %v2600_v35 = vsub.f32 1.0, %v2599_v34 }
0x1d35   :  { %v2601_v37 = vmul.f32 %v3009_v31, %v2600_v35 }
0x1d37   :  { %v2602_v40 = vadd.f32 %v3009_v31, %v2601_v37 }
0x1d39   :  { %v2606_v43 = vsel %vm2605_vm8, %v3009_v31, %v2602_v40 }
0x1d3a   :  { %v2611_v44 = vsel %vm2608_vm9, %v2610_v42, %v2606_v43 }
0x1d3b   :  { %2613 = vst [vmem:[#allocation2] sm:$0x3] %v2611_v44 }
0x1d3c   :  { %2624 = dma.vmem_to_hbm [thread:$0]  %s2620_s1, 32, %s2622_s8, [#allocation3]  }
0x1d3d   :  { %3034 = dma.done.wait [#allocation3], 32  }
0x1d3e   :  { %3035 = vsyncadd [#allocation3], 4294967264 }
0x1d3f   :  { %2629 = vsyncpa [#allocation3], 1 }

</bundles_post_ra>
